<compile_context>
chip_gen: v5e
topology: v5e:2x2
jax: 0.10.0
libtpu: 0.0.40
codegen_flags: <defaults>
</compile_context>

<pallas_src>
import jax
import jax.numpy as jnp
from jax import lax
from jax.experimental import pallas as pl
from jax.experimental.pallas import tpu as pltpu


def _make_gbt_kernel(N, F, D, B,
                     feat_drop_1, edge_drop_1, feat_drop_2, edge_drop_2):
    """Builds the fused two-view encoder + root-gather + GBT-loss kernel body."""

    def kernel(seed_ref,                              # SMEM: (1,) int32
               x_ref, adj_ref, w_ref, roots_ref,      # VMEM inputs
               loss_ref):                             # SMEM output: (1, 1) f32
        seed_u = seed_ref[0].astype(jnp.uint32)

        # ---------------- shared constants, built once for both views ------------
        eye_n = (lax.broadcasted_iota(jnp.int32, (N, N), 0)
                 == lax.broadcasted_iota(jnp.int32, (N, N), 1)).astype(jnp.float32)

        def keep_mask(shape, drop_prob, salt):
            # Deterministic per-element integer hash (VPU-only; no pltpu.prng_* so it
            # also lowers under interpret mode), thresholded directly on the raw
            # bits: keep <=> bits_24 >= round(drop * 2^24).
            r = lax.broadcasted_iota(jnp.int32, shape, 0).astype(jnp.uint32)
            c = lax.broadcasted_iota(jnp.int32, shape, 1).astype(jnp.uint32)
            h = (r * jnp.uint32(0x9E3779B1)
                 ^ (c * jnp.uint32(0x85EBCA77))
                 ^ (seed_u * jnp.uint32(0xC2B2AE3D))
                 ^ jnp.uint32(salt))
            h = (h ^ (h >> 16)) * jnp.uint32(0x045D9F3B)
            h = (h ^ (h >> 16)) * jnp.uint32(0x045D9F3B)
            h = h ^ (h >> 16)
            u24 = (h >> 8).astype(jnp.int32)                     # uniform in [0, 2^24)
            thresh = jnp.int32(int(round(float(drop_prob) * float(1 << 24))))
            return (u24 >= thresh).astype(jnp.float32)

        # -------- feature drop folded onto W, both views batched to [F, 2D] ------
        # (X ∘ m) @ W == X @ (W ∘ m_row); X stays shared across the two views.
        fk1 = keep_mask((F, 1), feat_drop_1, 0x1111)
        fk2 = keep_mask((F, 1), feat_drop_2, 0x2222)
        w = w_ref[...]
        w_cat = jnp.concatenate([w * fk1, w * fk2], axis=1).astype(jnp.bfloat16)

        # -------- single 256-lane feature GEMM shared by both views --------------
        x_bf = x_ref[...].astype(jnp.bfloat16)
        h_cat = jnp.dot(x_bf, w_cat, preferred_element_type=jnp.float32)   # [N, 2D]

        # -------- per-view edge drop + self loops + row-normalize + aggregate ----
        adj = adj_ref[...]

        def aggregate(h_view, edge_drop, salt):
            ek = keep_mask((N, N), edge_drop, salt)
            a = jnp.maximum(adj * ek, eye_n)                 # drop edges, keep self loops
            a = a / jnp.sum(a, axis=1, keepdims=True)        # exact row normalization
            z = jnp.dot(a.astype(jnp.bfloat16), h_view.astype(jnp.bfloat16),
                        preferred_element_type=jnp.float32)  # [N, D]
            return jnp.maximum(z, 0.0)                       # ReLU

        z1 = aggregate(h_cat[:, :D], edge_drop_1, 0x3333)
        z2 = aggregate(h_cat[:, D:], edge_drop_2, 0x4444)
        z_cat = jnp.concatenate([z1, z2], axis=1)            # [N, 2D] f32

        # -------- root gather: one-hot built once, batched over both views -------
        # selT[n, b] = (roots[b] == n); contraction over the node axis gives an exact
        # gather (f32 one-hot, so no bf16 rounding of the embeddings).
        selT = (lax.broadcasted_iota(jnp.int32, (N, B), 0)
                == roots_ref[...]).astype(jnp.float32)        # roots: (1, B) lane-major
        zr = lax.dot_general(selT, z_cat, (((0,), (0,)), ((), ())),
                             preferred_element_type=jnp.float32)   # [B, 2D]
        za = zr[:, :D]
        zb = zr[:, D:]

        # -------- GBT (Barlow-Twins) loss -----------------------------------------
        eps = 1e-6   # reference uses 1e-15, a no-op in f32 unless std == 0
        ca = za - jnp.mean(za, axis=0, keepdims=True)
        cb = zb - jnp.mean(zb, axis=0, keepdims=True)
        # torch.std default is unbiased (ddof = 1)
        std_a = jnp.sqrt(jnp.sum(ca * ca, axis=0, keepdims=True) / (B - 1))
        std_b = jnp.sqrt(jnp.sum(cb * cb, axis=0, keepdims=True) / (B - 1))
        za_n = ca / (std_a + eps)
        zb_n = cb / (std_b + eps)

        # cross-correlation matrix C = za_n^T @ zb_n / B   -> [D, D]
        c = lax.dot_general(za_n, zb_n, (((0,), (0,)), ((), ())),
                            preferred_element_type=jnp.float32) * (1.0 / B)

        # loss = Σ_d (1 - C_dd)^2 + λ Σ_{d≠e} C_de^2 ,  λ = 1/D  (single diagonal mask)
        lam = 1.0 / D
        if D == N:
            dmask = eye_n                                    # reuse the shared identity
        else:
            dmask = (lax.broadcasted_iota(jnp.int32, (D, D), 0)
                     == lax.broadcasted_iota(jnp.int32, (D, D), 1)).astype(jnp.float32)
        total_sq = jnp.sum(c * c)
        diag_sum = jnp.sum(c * dmask)
        diag_sq = jnp.sum(c * c * dmask)
        loss_ref[0, 0] = ((D - 2.0 * diag_sum + diag_sq)
                          + lam * (total_sq - diag_sq))

    return kernel


def gbt_forward(x, adj_bin, w, roots, seed=0, *,
                feat_drop_1=0.2, edge_drop_1=0.2,
                feat_drop_2=0.2, edge_drop_2=0.2):
    """Fused GBT task forward.

    x        : [N, F] node features
    adj_bin  : [N, N] binary adjacency with self loops (normalized in-kernel)
    w        : [F, D] encoder weight
    roots    : [B]    root_node_indices
    Returns (loss, n_root_nodes) like the PyTorch module.
    """
    N, F = x.shape
    D = w.shape[1]
    B = int(roots.shape[0])

    seed_arr = jnp.full((1,), seed, dtype=jnp.int32)
    roots_row = roots.astype(jnp.int32).reshape(1, B)   # lane-major, avoids (B,1) tile

    kernel = _make_gbt_kernel(N, F, D, B,
                              feat_drop_1, edge_drop_1, feat_drop_2, edge_drop_2)

    loss = pl.pallas_call(
        kernel,
        out_shape=jax.ShapeDtypeStruct((1, 1), jnp.float32),
        in_specs=[
            pl.BlockSpec(memory_space=pltpu.MemorySpace.SMEM),   # seed (scalar)
            pl.BlockSpec(memory_space=pltpu.MemorySpace.VMEM),   # x     (resident)
            pl.BlockSpec(memory_space=pltpu.MemorySpace.VMEM),   # adj   (resident)
            pl.BlockSpec(memory_space=pltpu.MemorySpace.VMEM),   # w     (resident)
            pl.BlockSpec(memory_space=pltpu.MemorySpace.VMEM),   # roots (1, B)
        ],
        out_specs=pl.BlockSpec(memory_space=pltpu.MemorySpace.SMEM),  # scalar loss
    )(seed_arr, x, adj_bin, w, roots_row)
    return loss[0, 0], B


if __name__ == "__main__":
    key = jax.random.PRNGKey(0)
    N, F, D, B = 128, 128, 128, 32  # nodes, in-features, hidden dim, root nodes
    k_x, k_adj, k_w, k_roots = jax.random.split(key, 4)

    # deterministic synthetic graph + parameters
    x = jax.random.normal(k_x, (N, F), dtype=jnp.float32)
    # binary adjacency with self loops; row normalization happens in-kernel AFTER
    # edge dropout (drop-then-normalize, as in the reference augmentation pipeline)
    adj = (jax.random.uniform(k_adj, (N, N)) < 0.10).astype(jnp.float32)
    adj = jnp.maximum(adj, jnp.eye(N, dtype=jnp.float32))
    w = jax.random.normal(k_w, (F, D), dtype=jnp.float32) / jnp.sqrt(float(F))
    roots = jax.random.permutation(k_roots, N)[:B]  # root_node_indices

    loss, n = gbt_forward(x, adj, w, roots, seed=0)
    loss = jax.block_until_ready(loss)
    assert n == B
    assert jnp.isfinite(loss), "GBT loss is not finite"
    print("KERNEL_OK")
</pallas_src>

<mosaic_0001>
module attributes {stable_mosaic.version = 11 : i64} {
  func.func @kernel(%arg0: memref<1xi32, #tpu.memory_space<smem>>, %arg1: memref<128x128xf32, #tpu.memory_space<vmem>>, %arg2: memref<128x128xf32, #tpu.memory_space<vmem>>, %arg3: memref<128x128xf32, #tpu.memory_space<vmem>>, %arg4: memref<1x32xi32, #tpu.memory_space<vmem>>, %arg5: memref<1x1xf32, #tpu.memory_space<smem>>) attributes {dimension_semantics = [], scalar_prefetch = 0 : i64, scratch_operands = 0 : i64, tpu.core_type = #tpu.core_type<tc>} {
    %c0 = arith.constant 0 : index
    %0 = memref.load %arg0[%c0] : memref<1xi32, #tpu.memory_space<smem>>
    %1 = tpu.iota {dimensions = array<i32: 0>} : vector<128x128xi32>
    %2 = tpu.iota {dimensions = array<i32: 1>} : vector<128x128xi32>
    %3 = arith.cmpi eq, %1, %2 : vector<128x128xi32>
    %4 = arith.extui %3 : vector<128x128xi1> to vector<128x128xi32>
    %5 = arith.sitofp %4 : vector<128x128xi32> to vector<128x128xf32>
    %6 = tpu.iota {dimensions = array<i32: 0>} : vector<128x1xi32>
    %7 = tpu.iota {dimensions = array<i32: 1>} : vector<128x1xi32>
    %c-1640531535_i32 = arith.constant -1640531535 : i32
    %8 = vector.broadcast %c-1640531535_i32 : i32 to vector<128x1xi32>
    %9 = arith.muli %6, %8 : vector<128x1xi32>
    %c-2048144777_i32 = arith.constant -2048144777 : i32
    %10 = vector.broadcast %c-2048144777_i32 : i32 to vector<128x1xi32>
    %11 = arith.muli %7, %10 : vector<128x1xi32>
    %12 = arith.xori %9, %11 : vector<128x1xi32>
    %c-1028477379_i32 = arith.constant -1028477379 : i32
    %13 = arith.muli %0, %c-1028477379_i32 : i32
    %14 = vector.broadcast %13 : i32 to vector<128x1xi32>
    %15 = arith.xori %12, %14 : vector<128x1xi32>
    %c4369_i32 = arith.constant 4369 : i32
    %16 = vector.broadcast %c4369_i32 : i32 to vector<128x1xi32>
    %17 = arith.xori %15, %16 : vector<128x1xi32>
    %c16_i32 = arith.constant 16 : i32
    %18 = vector.broadcast %c16_i32 : i32 to vector<128x1xi32>
    %19 = arith.shrui %17, %18 : vector<128x1xi32>
    %20 = arith.xori %17, %19 : vector<128x1xi32>
    %c73244475_i32 = arith.constant 73244475 : i32
    %21 = vector.broadcast %c73244475_i32 : i32 to vector<128x1xi32>
    %22 = arith.muli %20, %21 : vector<128x1xi32>
    %c16_i32_0 = arith.constant 16 : i32
    %23 = vector.broadcast %c16_i32_0 : i32 to vector<128x1xi32>
    %24 = arith.shrui %22, %23 : vector<128x1xi32>
    %25 = arith.xori %22, %24 : vector<128x1xi32>
    %c73244475_i32_1 = arith.constant 73244475 : i32
    %26 = vector.broadcast %c73244475_i32_1 : i32 to vector<128x1xi32>
    %27 = arith.muli %25, %26 : vector<128x1xi32>
    %c16_i32_2 = arith.constant 16 : i32
    %28 = vector.broadcast %c16_i32_2 : i32 to vector<128x1xi32>
    %29 = arith.shrui %27, %28 : vector<128x1xi32>
    %30 = arith.xori %27, %29 : vector<128x1xi32>
    %c8_i32 = arith.constant 8 : i32
    %31 = vector.broadcast %c8_i32 : i32 to vector<128x1xi32>
    %32 = arith.shrui %30, %31 : vector<128x1xi32>
    %c3355443_i32 = arith.constant 3355443 : i32
    %33 = vector.broadcast %c3355443_i32 : i32 to vector<128x1xi32>
    %34 = arith.cmpi sge, %32, %33 : vector<128x1xi32>
    %35 = arith.extui %34 : vector<128x1xi1> to vector<128x1xi32>
    %36 = arith.sitofp %35 : vector<128x1xi32> to vector<128x1xf32>
    %37 = tpu.iota {dimensions = array<i32: 0>} : vector<128x1xi32>
    %38 = tpu.iota {dimensions = array<i32: 1>} : vector<128x1xi32>
    %c-1640531535_i32_3 = arith.constant -1640531535 : i32
    %39 = vector.broadcast %c-1640531535_i32_3 : i32 to vector<128x1xi32>
    %40 = arith.muli %37, %39 : vector<128x1xi32>
    %c-2048144777_i32_4 = arith.constant -2048144777 : i32
    %41 = vector.broadcast %c-2048144777_i32_4 : i32 to vector<128x1xi32>
    %42 = arith.muli %38, %41 : vector<128x1xi32>
    %43 = arith.xori %40, %42 : vector<128x1xi32>
    %c-1028477379_i32_5 = arith.constant -1028477379 : i32
    %44 = arith.muli %0, %c-1028477379_i32_5 : i32
    %45 = vector.broadcast %44 : i32 to vector<128x1xi32>
    %46 = arith.xori %43, %45 : vector<128x1xi32>
    %c8738_i32 = arith.constant 8738 : i32
    %47 = vector.broadcast %c8738_i32 : i32 to vector<128x1xi32>
    %48 = arith.xori %46, %47 : vector<128x1xi32>
    %c16_i32_6 = arith.constant 16 : i32
    %49 = vector.broadcast %c16_i32_6 : i32 to vector<128x1xi32>
    %50 = arith.shrui %48, %49 : vector<128x1xi32>
    %51 = arith.xori %48, %50 : vector<128x1xi32>
    %c73244475_i32_7 = arith.constant 73244475 : i32
    %52 = vector.broadcast %c73244475_i32_7 : i32 to vector<128x1xi32>
    %53 = arith.muli %51, %52 : vector<128x1xi32>
    %c16_i32_8 = arith.constant 16 : i32
    %54 = vector.broadcast %c16_i32_8 : i32 to vector<128x1xi32>
    %55 = arith.shrui %53, %54 : vector<128x1xi32>
    %56 = arith.xori %53, %55 : vector<128x1xi32>
    %c73244475_i32_9 = arith.constant 73244475 : i32
    %57 = vector.broadcast %c73244475_i32_9 : i32 to vector<128x1xi32>
    %58 = arith.muli %56, %57 : vector<128x1xi32>
    %c16_i32_10 = arith.constant 16 : i32
    %59 = vector.broadcast %c16_i32_10 : i32 to vector<128x1xi32>
    %60 = arith.shrui %58, %59 : vector<128x1xi32>
    %61 = arith.xori %58, %60 : vector<128x1xi32>
    %c8_i32_11 = arith.constant 8 : i32
    %62 = vector.broadcast %c8_i32_11 : i32 to vector<128x1xi32>
    %63 = arith.shrui %61, %62 : vector<128x1xi32>
    %c3355443_i32_12 = arith.constant 3355443 : i32
    %64 = vector.broadcast %c3355443_i32_12 : i32 to vector<128x1xi32>
    %65 = arith.cmpi sge, %63, %64 : vector<128x1xi32>
    %66 = arith.extui %65 : vector<128x1xi1> to vector<128x1xi32>
    %67 = arith.sitofp %66 : vector<128x1xi32> to vector<128x1xf32>
    %c0_13 = arith.constant 0 : index
    %c0_14 = arith.constant 0 : index
    %68 = vector.load %arg3[%c0_13, %c0_14] : memref<128x128xf32, #tpu.memory_space<vmem>>, vector<128x128xf32>
    %69 = vector.broadcast %36 : vector<128x1xf32> to vector<128x128xf32>
    %70 = arith.mulf %68, %69 : vector<128x128xf32>
    %71 = vector.broadcast %67 : vector<128x1xf32> to vector<128x128xf32>
    %72 = arith.mulf %68, %71 : vector<128x128xf32>
    %73 = tpu.concatenate %70, %72 in 1 : vector<128x128xf32>, vector<128x128xf32> -> vector<128x256xf32>
    %74 = arith.truncf %73 : vector<128x256xf32> to vector<128x256xbf16>
    %c0_15 = arith.constant 0 : index
    %c0_16 = arith.constant 0 : index
    %75 = vector.load %arg1[%c0_15, %c0_16] : memref<128x128xf32, #tpu.memory_space<vmem>>, vector<128x128xf32>
    %76 = arith.truncf %75 : vector<128x128xf32> to vector<128x128xbf16>
    %cst = arith.constant dense<0.000000e+00> : vector<128x256xf32>
    %77 = tpu.matmul %76, %74, %cst {dimension_numbers = #tpu.dot_dimension_numbers<[1], [0], [0], [1], [0, 0, 1, 1], [], []>} : vector<128x128xbf16>, vector<128x256xbf16>, vector<128x256xf32> -> vector<128x256xf32>
    %c0_17 = arith.constant 0 : index
    %c0_18 = arith.constant 0 : index
    %78 = vector.load %arg2[%c0_17, %c0_18] : memref<128x128xf32, #tpu.memory_space<vmem>>, vector<128x128xf32>
    %79 = vector.extract_strided_slice %77 {offsets = [0, 0], sizes = [128, 128], strides = [1, 1]} : vector<128x256xf32> to vector<128x128xf32>
    %80 = tpu.iota {dimensions = array<i32: 0>} : vector<128x128xi32>
    %81 = tpu.iota {dimensions = array<i32: 1>} : vector<128x128xi32>
    %c-1640531535_i32_19 = arith.constant -1640531535 : i32
    %82 = vector.broadcast %c-1640531535_i32_19 : i32 to vector<128x128xi32>
    %83 = arith.muli %80, %82 : vector<128x128xi32>
    %c-2048144777_i32_20 = arith.constant -2048144777 : i32
    %84 = vector.broadcast %c-2048144777_i32_20 : i32 to vector<128x128xi32>
    %85 = arith.muli %81, %84 : vector<128x128xi32>
    %86 = arith.xori %83, %85 : vector<128x128xi32>
    %c-1028477379_i32_21 = arith.constant -1028477379 : i32
    %87 = arith.muli %0, %c-1028477379_i32_21 : i32
    %88 = vector.broadcast %87 : i32 to vector<128x128xi32>
    %89 = arith.xori %86, %88 : vector<128x128xi32>
    %c13107_i32 = arith.constant 13107 : i32
    %90 = vector.broadcast %c13107_i32 : i32 to vector<128x128xi32>
    %91 = arith.xori %89, %90 : vector<128x128xi32>
    %c16_i32_22 = arith.constant 16 : i32
    %92 = vector.broadcast %c16_i32_22 : i32 to vector<128x128xi32>
    %93 = arith.shrui %91, %92 : vector<128x128xi32>
    %94 = arith.xori %91, %93 : vector<128x128xi32>
    %c73244475_i32_23 = arith.constant 73244475 : i32
    %95 = vector.broadcast %c73244475_i32_23 : i32 to vector<128x128xi32>
    %96 = arith.muli %94, %95 : vector<128x128xi32>
    %c16_i32_24 = arith.constant 16 : i32
    %97 = vector.broadcast %c16_i32_24 : i32 to vector<128x128xi32>
    %98 = arith.shrui %96, %97 : vector<128x128xi32>
    %99 = arith.xori %96, %98 : vector<128x128xi32>
    %c73244475_i32_25 = arith.constant 73244475 : i32
    %100 = vector.broadcast %c73244475_i32_25 : i32 to vector<128x128xi32>
    %101 = arith.muli %99, %100 : vector<128x128xi32>
    %c16_i32_26 = arith.constant 16 : i32
    %102 = vector.broadcast %c16_i32_26 : i32 to vector<128x128xi32>
    %103 = arith.shrui %101, %102 : vector<128x128xi32>
    %104 = arith.xori %101, %103 : vector<128x128xi32>
    %c8_i32_27 = arith.constant 8 : i32
    %105 = vector.broadcast %c8_i32_27 : i32 to vector<128x128xi32>
    %106 = arith.shrui %104, %105 : vector<128x128xi32>
    %c3355443_i32_28 = arith.constant 3355443 : i32
    %107 = vector.broadcast %c3355443_i32_28 : i32 to vector<128x128xi32>
    %108 = arith.cmpi sge, %106, %107 : vector<128x128xi32>
    %109 = arith.extui %108 : vector<128x128xi1> to vector<128x128xi32>
    %110 = arith.sitofp %109 : vector<128x128xi32> to vector<128x128xf32>
    %111 = arith.mulf %78, %110 : vector<128x128xf32>
    %112 = arith.maximumf %111, %5 : vector<128x128xf32>
    %cst_29 = arith.constant dense<0.000000e+00> : vector<128xf32>
    %113 = vector.multi_reduction <add>, %112, %cst_29 [1] : vector<128x128xf32> to vector<128xf32>
    %114 = vector.shape_cast %113 : vector<128xf32> to vector<128x1xf32>
    %115 = vector.broadcast %114 : vector<128x1xf32> to vector<128x128xf32>
    %116 = arith.divf %112, %115 : vector<128x128xf32>
    %117 = arith.truncf %116 : vector<128x128xf32> to vector<128x128xbf16>
    %118 = arith.truncf %79 : vector<128x128xf32> to vector<128x128xbf16>
    %cst_30 = arith.constant dense<0.000000e+00> : vector<128x128xf32>
    %119 = tpu.matmul %117, %118, %cst_30 {dimension_numbers = #tpu.dot_dimension_numbers<[1], [0], [0], [1], [0, 0, 1, 1], [], []>} : vector<128x128xbf16>, vector<128x128xbf16>, vector<128x128xf32> -> vector<128x128xf32>
    %cst_31 = arith.constant 0.000000e+00 : f32
    %120 = vector.broadcast %cst_31 : f32 to vector<128x128xf32>
    %121 = arith.maximumf %119, %120 : vector<128x128xf32>
    %122 = vector.extract_strided_slice %77 {offsets = [0, 128], sizes = [128, 128], strides = [1, 1]} : vector<128x256xf32> to vector<128x128xf32>
    %123 = tpu.iota {dimensions = array<i32: 0>} : vector<128x128xi32>
    %124 = tpu.iota {dimensions = array<i32: 1>} : vector<128x128xi32>
    %c-1640531535_i32_32 = arith.constant -1640531535 : i32
    %125 = vector.broadcast %c-1640531535_i32_32 : i32 to vector<128x128xi32>
    %126 = arith.muli %123, %125 : vector<128x128xi32>
    %c-2048144777_i32_33 = arith.constant -2048144777 : i32
    %127 = vector.broadcast %c-2048144777_i32_33 : i32 to vector<128x128xi32>
    %128 = arith.muli %124, %127 : vector<128x128xi32>
    %129 = arith.xori %126, %128 : vector<128x128xi32>
    %c-1028477379_i32_34 = arith.constant -1028477379 : i32
    %130 = arith.muli %0, %c-1028477379_i32_34 : i32
    %131 = vector.broadcast %130 : i32 to vector<128x128xi32>
    %132 = arith.xori %129, %131 : vector<128x128xi32>
    %c17476_i32 = arith.constant 17476 : i32
    %133 = vector.broadcast %c17476_i32 : i32 to vector<128x128xi32>
    %134 = arith.xori %132, %133 : vector<128x128xi32>
    %c16_i32_35 = arith.constant 16 : i32
    %135 = vector.broadcast %c16_i32_35 : i32 to vector<128x128xi32>
    %136 = arith.shrui %134, %135 : vector<128x128xi32>
    %137 = arith.xori %134, %136 : vector<128x128xi32>
    %c73244475_i32_36 = arith.constant 73244475 : i32
    %138 = vector.broadcast %c73244475_i32_36 : i32 to vector<128x128xi32>
    %139 = arith.muli %137, %138 : vector<128x128xi32>
    %c16_i32_37 = arith.constant 16 : i32
    %140 = vector.broadcast %c16_i32_37 : i32 to vector<128x128xi32>
    %141 = arith.shrui %139, %140 : vector<128x128xi32>
    %142 = arith.xori %139, %141 : vector<128x128xi32>
    %c73244475_i32_38 = arith.constant 73244475 : i32
    %143 = vector.broadcast %c73244475_i32_38 : i32 to vector<128x128xi32>
    %144 = arith.muli %142, %143 : vector<128x128xi32>
    %c16_i32_39 = arith.constant 16 : i32
    %145 = vector.broadcast %c16_i32_39 : i32 to vector<128x128xi32>
    %146 = arith.shrui %144, %145 : vector<128x128xi32>
    %147 = arith.xori %144, %146 : vector<128x128xi32>
    %c8_i32_40 = arith.constant 8 : i32
    %148 = vector.broadcast %c8_i32_40 : i32 to vector<128x128xi32>
    %149 = arith.shrui %147, %148 : vector<128x128xi32>
    %c3355443_i32_41 = arith.constant 3355443 : i32
    %150 = vector.broadcast %c3355443_i32_41 : i32 to vector<128x128xi32>
    %151 = arith.cmpi sge, %149, %150 : vector<128x128xi32>
    %152 = arith.extui %151 : vector<128x128xi1> to vector<128x128xi32>
    %153 = arith.sitofp %152 : vector<128x128xi32> to vector<128x128xf32>
    %154 = arith.mulf %78, %153 : vector<128x128xf32>
    %155 = arith.maximumf %154, %5 : vector<128x128xf32>
    %cst_42 = arith.constant dense<0.000000e+00> : vector<128xf32>
    %156 = vector.multi_reduction <add>, %155, %cst_42 [1] : vector<128x128xf32> to vector<128xf32>
    %157 = vector.shape_cast %156 : vector<128xf32> to vector<128x1xf32>
    %158 = vector.broadcast %157 : vector<128x1xf32> to vector<128x128xf32>
    %159 = arith.divf %155, %158 : vector<128x128xf32>
    %160 = arith.truncf %159 : vector<128x128xf32> to vector<128x128xbf16>
    %161 = arith.truncf %122 : vector<128x128xf32> to vector<128x128xbf16>
    %cst_43 = arith.constant dense<0.000000e+00> : vector<128x128xf32>
    %162 = tpu.matmul %160, %161, %cst_43 {dimension_numbers = #tpu.dot_dimension_numbers<[1], [0], [0], [1], [0, 0, 1, 1], [], []>} : vector<128x128xbf16>, vector<128x128xbf16>, vector<128x128xf32> -> vector<128x128xf32>
    %cst_44 = arith.constant 0.000000e+00 : f32
    %163 = vector.broadcast %cst_44 : f32 to vector<128x128xf32>
    %164 = arith.maximumf %162, %163 : vector<128x128xf32>
    %165 = tpu.concatenate %121, %164 in 1 : vector<128x128xf32>, vector<128x128xf32> -> vector<128x256xf32>
    %166 = tpu.iota {dimensions = array<i32: 0>} : vector<128x32xi32>
    %c0_45 = arith.constant 0 : index
    %c0_46 = arith.constant 0 : index
    %167 = vector.load %arg4[%c0_45, %c0_46] : memref<1x32xi32, #tpu.memory_space<vmem>>, vector<1x32xi32>
    %168 = vector.broadcast %167 : vector<1x32xi32> to vector<128x32xi32>
    %169 = arith.cmpi eq, %166, %168 : vector<128x32xi32>
    %170 = arith.extui %169 : vector<128x32xi1> to vector<128x32xi32>
    %171 = arith.sitofp %170 : vector<128x32xi32> to vector<128x32xf32>
    %cst_47 = arith.constant dense<0.000000e+00> : vector<32x256xf32>
    %172 = tpu.matmul %171, %165, %cst_47 {dimension_numbers = #tpu.dot_dimension_numbers<[0], [0], [1], [1], [0, 1, 1, 1], [], []>} : vector<128x32xf32>, vector<128x256xf32>, vector<32x256xf32> -> vector<32x256xf32>
    %173 = vector.extract_strided_slice %172 {offsets = [0, 0], sizes = [32, 128], strides = [1, 1]} : vector<32x256xf32> to vector<32x128xf32>
    %174 = vector.extract_strided_slice %172 {offsets = [0, 128], sizes = [32, 128], strides = [1, 1]} : vector<32x256xf32> to vector<32x128xf32>
    %cst_48 = arith.constant dense<0.000000e+00> : vector<128xf32>
    %175 = vector.multi_reduction <add>, %173, %cst_48 [0] : vector<32x128xf32> to vector<128xf32>
    %176 = vector.shape_cast %175 : vector<128xf32> to vector<1x128xf32>
    %cst_49 = arith.constant 3.200000e+01 : f32
    %177 = vector.broadcast %cst_49 : f32 to vector<1x128xf32>
    %178 = arith.divf %176, %177 : vector<1x128xf32>
    %179 = vector.broadcast %178 : vector<1x128xf32> to vector<32x128xf32>
    %180 = arith.subf %173, %179 : vector<32x128xf32>
    %cst_50 = arith.constant dense<0.000000e+00> : vector<128xf32>
    %181 = vector.multi_reduction <add>, %174, %cst_50 [0] : vector<32x128xf32> to vector<128xf32>
    %182 = vector.shape_cast %181 : vector<128xf32> to vector<1x128xf32>
    %cst_51 = arith.constant 3.200000e+01 : f32
    %183 = vector.broadcast %cst_51 : f32 to vector<1x128xf32>
    %184 = arith.divf %182, %183 : vector<1x128xf32>
    %185 = vector.broadcast %184 : vector<1x128xf32> to vector<32x128xf32>
    %186 = arith.subf %174, %185 : vector<32x128xf32>
    %187 = arith.mulf %180, %180 : vector<32x128xf32>
    %cst_52 = arith.constant dense<0.000000e+00> : vector<128xf32>
    %188 = vector.multi_reduction <add>, %187, %cst_52 [0] : vector<32x128xf32> to vector<128xf32>
    %189 = vector.shape_cast %188 : vector<128xf32> to vector<1x128xf32>
    %cst_53 = arith.constant 3.100000e+01 : f32
    %190 = vector.broadcast %cst_53 : f32 to vector<1x128xf32>
    %191 = arith.divf %189, %190 : vector<1x128xf32>
    %192 = math.sqrt %191 : vector<1x128xf32>
    %193 = arith.mulf %186, %186 : vector<32x128xf32>
    %cst_54 = arith.constant dense<0.000000e+00> : vector<128xf32>
    %194 = vector.multi_reduction <add>, %193, %cst_54 [0] : vector<32x128xf32> to vector<128xf32>
    %195 = vector.shape_cast %194 : vector<128xf32> to vector<1x128xf32>
    %cst_55 = arith.constant 3.100000e+01 : f32
    %196 = vector.broadcast %cst_55 : f32 to vector<1x128xf32>
    %197 = arith.divf %195, %196 : vector<1x128xf32>
    %198 = math.sqrt %197 : vector<1x128xf32>
    %cst_56 = arith.constant 9.99999997E-7 : f32
    %199 = vector.broadcast %cst_56 : f32 to vector<1x128xf32>
    %200 = arith.addf %192, %199 : vector<1x128xf32>
    %201 = vector.broadcast %200 : vector<1x128xf32> to vector<32x128xf32>
    %202 = arith.divf %180, %201 : vector<32x128xf32>
    %cst_57 = arith.constant 9.99999997E-7 : f32
    %203 = vector.broadcast %cst_57 : f32 to vector<1x128xf32>
    %204 = arith.addf %198, %203 : vector<1x128xf32>
    %205 = vector.broadcast %204 : vector<1x128xf32> to vector<32x128xf32>
    %206 = arith.divf %186, %205 : vector<32x128xf32>
    %cst_58 = arith.constant dense<0.000000e+00> : vector<128x128xf32>
    %207 = tpu.matmul %202, %206, %cst_58 {dimension_numbers = #tpu.dot_dimension_numbers<[0], [0], [1], [1], [0, 1, 1, 1], [], []>} : vector<32x128xf32>, vector<32x128xf32>, vector<128x128xf32> -> vector<128x128xf32>
    %cst_59 = arith.constant 3.125000e-02 : f32
    %208 = vector.broadcast %cst_59 : f32 to vector<128x128xf32>
    %209 = arith.mulf %207, %208 : vector<128x128xf32>
    %210 = arith.mulf %209, %209 : vector<128x128xf32>
    %211 = vector.shape_cast %210 : vector<128x128xf32> to vector<1x128x128xf32>
    %cst_60 = arith.constant dense<0.000000e+00> : vector<1xf32>
    %212 = vector.multi_reduction <add>, %211, %cst_60 [1, 2] : vector<1x128x128xf32> to vector<1xf32>
    %213 = vector.shape_cast %212 : vector<1xf32> to vector<1x1x1xf32>
    %214 = vector.extract %213[0, 0, 0] : f32 from vector<1x1x1xf32>
    %215 = arith.mulf %209, %5 : vector<128x128xf32>
    %216 = vector.shape_cast %215 : vector<128x128xf32> to vector<1x128x128xf32>
    %cst_61 = arith.constant dense<0.000000e+00> : vector<1xf32>
    %217 = vector.multi_reduction <add>, %216, %cst_61 [1, 2] : vector<1x128x128xf32> to vector<1xf32>
    %218 = vector.shape_cast %217 : vector<1xf32> to vector<1x1x1xf32>
    %219 = vector.extract %218[0, 0, 0] : f32 from vector<1x1x1xf32>
    %220 = arith.mulf %209, %209 : vector<128x128xf32>
    %221 = arith.mulf %220, %5 : vector<128x128xf32>
    %222 = vector.shape_cast %221 : vector<128x128xf32> to vector<1x128x128xf32>
    %cst_62 = arith.constant dense<0.000000e+00> : vector<1xf32>
    %223 = vector.multi_reduction <add>, %222, %cst_62 [1, 2] : vector<1x128x128xf32> to vector<1xf32>
    %224 = vector.shape_cast %223 : vector<1xf32> to vector<1x1x1xf32>
    %225 = vector.extract %224[0, 0, 0] : f32 from vector<1x1x1xf32>
    %cst_63 = arith.constant 2.000000e+00 : f32
    %226 = arith.mulf %cst_63, %219 : f32
    %cst_64 = arith.constant 1.280000e+02 : f32
    %227 = arith.subf %cst_64, %226 : f32
    %228 = arith.addf %227, %225 : f32
    %229 = arith.subf %214, %225 : f32
    %cst_65 = arith.constant 7.812500e-03 : f32
    %230 = arith.mulf %cst_65, %229 : f32
    %231 = arith.addf %228, %230 : f32
    %c0_66 = arith.constant 0 : index
    %c0_67 = arith.constant 0 : index
    %232 = memref.load %arg5[%c0_66, %c0_67] : memref<1x1xf32, #tpu.memory_space<smem>>
    memref.store %231, %arg5[%c0_66, %c0_67] : memref<1x1xf32, #tpu.memory_space<smem>>
    return
  }
}

</mosaic_0001>

<bundles_post_ra>
// kernel: tpu_custom_call.1
= control target key start
LH: loop header
LB: loop body
LE: loop exit
PB: predicated region body
PF: predicated region fallthrough
CT: control target
= control target key end

     0   :  { %11 = vsyncpa [#allocation4], 0  ;;  %s5017_s0 = inlined_call_operand.<no memory space> [shape: s32[1], index: 0, kind: input, shape index: {}]   ;;  %s5018_s1 = inlined_call_operand.hbm [shape: f32[128,128], index: 1, kind: input, shape index: {}]   ;;  %s5019_s2 = inlined_call_operand.hbm [shape: f32[128,128], index: 2, kind: input, shape index: {}]   ;;  %s5020_s3 = inlined_call_operand.hbm [shape: f32[128,128], index: 3, kind: input, shape index: {}]   ;;  %s5021_s4 = inlined_call_operand.vmem [shape: s32[1,32], index: 4, kind: input, shape index: {}]   ;;  %s5022_s5 = inlined_call_operand.hbm [shape: f32[1,1], index: 5, kind: output, shape index: {}]  }
   0x1   :  { %12 = vsyncpa [#allocation7], 0 }
   0x2   :  { %13 = vsyncpa [#allocation5], 0  ;;  %s33_s20 = sshll.u32 %s5019_s2, 4  ;;  %s3206_s21 = smov [#allocation6]   ;;  %s34_s20 = int_to_ptr.hbm [resolvable:$true] %s33_s20 }
   0x3   :  { %s35_s22 = sshll.u32 %s3206_s21, 4  ;;  %s20_s25 = sshll.u32 %s5018_s1, 4  ;;  %s36_s22 = int_to_ptr.vmem [resolvable:$true] %s35_s22  ;;  %s21_s25 = int_to_ptr.hbm [resolvable:$true] %s20_s25 }
   0x4   :  { %s3207_s26 = smov 128   ;;  %s3208_s27 = smov 8  }
   0x5   :  { %41 = dma.hbm_to_vmem [thread:$0]  %s34_s20, 2048, %s36_s22, [#allocation7], %s3207_s26, %s3207_s26, %s3208_s27  }
   0x6   :  { %s3209_s28 = smov [#allocation3]   ;;  %s46_s7 = sshll.u32 %s5020_s3, 4  ;;  %s47_s7 = int_to_ptr.hbm [resolvable:$true] %s46_s7 }
   0x7   :  { %s22_s29 = sshll.u32 %s3209_s28, 4  ;;  %s3210_s2 = smov [#allocation8]   ;;  %s23_s29 = int_to_ptr.vmem [resolvable:$true] %s22_s29 }
   0x8   :  { %28 = dma.hbm_to_vmem [thread:$0]  %s21_s25, 2048, %s23_s29, [#allocation4], %s3207_s26, %s3207_s26, %s3208_s27  }
   0x9   :  { %s48_s8 = sshll.u32 %s3210_s2, 4  ;;  %s49_s8 = int_to_ptr.vmem [resolvable:$true] %s48_s8 }
   0xa   :  { %54 = dma.hbm_to_vmem [thread:$0]  %s47_s7, 2048, %s49_s8, [#allocation7], %s3207_s26, %s3207_s26, %s3208_s27  }
   0xb   :  { %3200 = dma.done.wait [#allocation4], 2048  }
   0xc   :  { %3201 = vsyncadd [#allocation4], 4294965248  ;;  %v70_v0 = vlaneseq }
   0xd   :  { %3202 = dma.done.wait [#allocation7], 4096  }
   0xe   :  { %3203 = vsyncadd [#allocation7], 4294963200  ;;  %v3211_v1 = vmov 0   ;;  %v3258_v2 = vshrl.u32 %v70_v0, 7  ;;  %v3260_v3 = vand.u32 127, %v70_v0  ;;  %s2719_s18 = sshll.u32 %s5022_s5, 4  ;;  %s2720_s18 = int_to_ptr.hbm [resolvable:$true] %s2719_s18 }
   0xf   :  { %2967 = vset.pattern.permute.xlu1 %v3211_v1  ;;  %2956 = vset.pattern.permute.xlu0 %v3211_v1  ;;  %s170_s9 = smul.u32 3266489917, %s5017_s0  ;;  %s3216_s22 = smov [#allocation9]  }
  0x10   :  { %5111 = vst [vmem:[#allocation13_spill] sm:$0xff] %v3258_v2  ;;  %2978 = vset.pattern.permute.xlu2 %v3211_v1  ;;  %v3266_v4 = vadd.s32 112, %v3258_v2  ;;  %v3269_v5 = vadd.s32 120, %v3258_v2  ;;  %v3272_v6 = vmul.u32 2246822519, %v3260_v3  ;;  %v3275_v7 = vadd.s32 80, %v3258_v2 }
  0x11   :  { %v3278_v8 = vadd.s32 88, %v3258_v2  ;;  %v3281_v9 = vadd.s32 96, %v3258_v2  ;;  %v3284_v10 = vadd.s32 104, %v3258_v2  ;;  %v3287_v11 = vadd.s32 64, %v3258_v2 }
  0x12   :  { %5112 = vst [vmem:[#allocation14_spill] sm:$0xff] %v3266_v4  ;;  %v151_v12 = vmul.u32 2654435761, %v3266_v4  ;;  %v152_v13 = vmul.u32 2654435761, %v3269_v5  ;;  %v3292_v15 = vstv %s170_s9  ;;  %v3301_v22 = vadd.s32 72, %v3258_v2 }
  0x13   :  { %5113 = vst [vmem:[#allocation15_spill] sm:$0xff] %v3269_v5  ;;  %v147_v14 = vmul.u32 2654435761, %v3275_v7  ;;  %v148_v16 = vmul.u32 2654435761, %v3278_v8 }
  0x14   :  { %5114 = vst [vmem:[#allocation16_spill] sm:$0xff] %v3275_v7  ;;  %v149_v17 = vmul.u32 2654435761, %v3281_v9  ;;  %v150_v18 = vmul.u32 2654435761, %v3284_v10  ;;  %v168_v19 = vxor.u32 %v3272_v6, %v151_v12  ;;  %v169_v20 = vxor.u32 %v3272_v6, %v152_v13 }
  0x15   :  { %5115 = vst [vmem:[#allocation17_spill] sm:$0xff] %v3278_v8  ;;  %v164_v21 = vxor.u32 %v3272_v6, %v147_v14  ;;  %v165_v23 = vxor.u32 %v3272_v6, %v148_v16  ;;  %v145_v26 = vmul.u32 2654435761, %v3287_v11  ;;  %v146_v30 = vmul.u32 2654435761, %v3301_v22 }
  0x16   :  { %5116 = vst [vmem:[#allocation18_spill] sm:$0xff] %v3281_v9  ;;  %v166_v24 = vxor.u32 %v3272_v6, %v149_v17  ;;  %v167_v25 = vxor.u32 %v3272_v6, %v150_v18  ;;  %v3308_v27 = vxor.u32 %v3292_v15, %v168_v19  ;;  %v3311_v28 = vxor.u32 %v3292_v15, %v169_v20 }
  0x17   :  { %5117 = vst [vmem:[#allocation19_spill] sm:$0xff] %v3284_v10  ;;  %v3314_v29 = vxor.u32 %v3292_v15, %v164_v21  ;;  %v3318_v31 = vxor.u32 %v3292_v15, %v165_v23  ;;  %v162_v34 = vxor.u32 %v3272_v6, %v145_v26  ;;  %v163_v38 = vxor.u32 %v3272_v6, %v146_v30 }
  0x18   :  { %5118 = vst [vmem:[#allocation20_spill] sm:$0xff] %v3287_v11  ;;  %v3321_v32 = vxor.u32 %v3292_v15, %v166_v24  ;;  %v3324_v33 = vxor.u32 %v3292_v15, %v167_v25  ;;  %v202_v35 = vxor.u32 4369, %v3308_v27  ;;  %v203_v36 = vxor.u32 4369, %v3311_v28 }
  0x19   :  { %5119 = vst [vmem:[#allocation21_spill] sm:$0xff] %v3301_v22  ;;  %v198_v37 = vxor.u32 4369, %v3314_v29  ;;  %v199_v39 = vxor.u32 4369, %v3318_v31  ;;  %v3335_v42 = vxor.u32 %v3292_v15, %v162_v34  ;;  %v3338_v46 = vxor.u32 %v3292_v15, %v163_v38 }
  0x1a   :  { %v200_v40 = vxor.u32 4369, %v3321_v32  ;;  %v201_v41 = vxor.u32 4369, %v3324_v33  ;;  %v218_v43 = vshrl.u32 %v202_v35, 16  ;;  %v219_v44 = vshrl.u32 %v203_v36, 16 }
  0x1b   :  { %v214_v45 = vshrl.u32 %v198_v37, 16  ;;  %5120 = vst [vmem:[#allocation22_spill] sm:$0xff] %v3338_v46  ;;  %v215_v47 = vshrl.u32 %v199_v39, 16  ;;  %v196_v50 = vxor.u32 4369, %v3335_v42  ;;  %v197_v54 = vxor.u32 4369, %v3338_v46 }
  0x1c   :  { %v216_v48 = vshrl.u32 %v200_v40, 16  ;;  %v217_v49 = vshrl.u32 %v201_v41, 16  ;;  %v234_v51 = vxor.u32 %v218_v43, %v202_v35  ;;  %v235_v52 = vxor.u32 %v219_v44, %v203_v36 }
  0x1d   :  { %v230_v53 = vxor.u32 %v214_v45, %v198_v37  ;;  %v231_v55 = vxor.u32 %v215_v47, %v199_v39  ;;  %v212_v58 = vshrl.u32 %v196_v50, 16  ;;  %v213_v16 = vshrl.u32 %v197_v54, 16 }
  0x1e   :  { %v232_v56 = vxor.u32 %v216_v48, %v200_v40  ;;  %v233_v57 = vxor.u32 %v217_v49, %v201_v41  ;;  %v250_v59 = vmul.u32 73244475, %v234_v51  ;;  %v251_v60 = vmul.u32 73244475, %v235_v52 }
  0x1f   :  { %v246_v61 = vmul.u32 73244475, %v230_v53  ;;  %v247_v62 = vmul.u32 73244475, %v231_v55  ;;  %v228_v1 = vxor.u32 %v212_v58, %v196_v50  ;;  %v229_v25 = vxor.u32 %v213_v16, %v197_v54 }
  0x20   :  { %v248_v63 = vmul.u32 73244475, %v232_v56  ;;  %v249_v0 = vmul.u32 73244475, %v233_v57  ;;  %v266_v12 = vshrl.u32 %v250_v59, 16  ;;  %v267_v13 = vshrl.u32 %v251_v60, 16 }
  0x21   :  { %v262_v14 = vshrl.u32 %v246_v61, 16  ;;  %v263_v17 = vshrl.u32 %v247_v62, 16  ;;  %v244_v20 = vmul.u32 73244475, %v228_v1  ;;  %v245_v48 = vmul.u32 73244475, %v229_v25 }
  0x22   :  { %v264_v18 = vshrl.u32 %v248_v63, 16  ;;  %v265_v19 = vshrl.u32 %v249_v0, 16  ;;  %v282_v21 = vxor.u32 %v266_v12, %v250_v59  ;;  %v283_v23 = vxor.u32 %v267_v13, %v251_v60 }
  0x23   :  { %v278_v24 = vxor.u32 %v262_v14, %v246_v61  ;;  %v279_v26 = vxor.u32 %v263_v17, %v247_v62  ;;  %v260_v35 = vshrl.u32 %v244_v20, 16  ;;  %v261_v56 = vshrl.u32 %v245_v48, 16 }
  0x24   :  { %v280_v30 = vxor.u32 %v264_v18, %v248_v63  ;;  %v281_v34 = vxor.u32 %v265_v19, %v249_v0  ;;  %v298_v36 = vmul.u32 73244475, %v282_v21  ;;  %v299_v37 = vmul.u32 73244475, %v283_v23 }
  0x25   :  { %v294_v38 = vmul.u32 73244475, %v278_v24  ;;  %v295_v39 = vmul.u32 73244475, %v279_v26  ;;  %v276_v43 = vxor.u32 %v260_v35, %v244_v20  ;;  %v277_v13 = vxor.u32 %v261_v56, %v245_v48 }
  0x26   :  { %v296_v40 = vmul.u32 73244475, %v280_v30  ;;  %v297_v41 = vmul.u32 73244475, %v281_v34  ;;  %v314_v44 = vshrl.u32 %v298_v36, 16  ;;  %v315_v45 = vshrl.u32 %v299_v37, 16 }
  0x27   :  { %v310_v47 = vshrl.u32 %v294_v38, 16  ;;  %v311_v49 = vshrl.u32 %v295_v39, 16  ;;  %v292_v52 = vmul.u32 73244475, %v276_v43  ;;  %v5023_v16 = vmov 0.0  }
  0x28   :  { %v312_v50 = vshrl.u32 %v296_v40, 16  ;;  %v313_v51 = vshrl.u32 %v297_v41, 16  ;;  %v330_v53 = vxor.u32 %v314_v44, %v298_v36  ;;  %v331_v54 = vxor.u32 %v315_v45, %v299_v37 }
  0x29   :  { %v326_v55 = vxor.u32 %v310_v47, %v294_v38  ;;  %v327_v57 = vxor.u32 %v311_v49, %v295_v39  ;;  %v308_v60 = vshrl.u32 %v292_v52, 16  ;;  %v293_v26 = vmul.u32 73244475, %v277_v13 }
  0x2a   :  { %v328_v58 = vxor.u32 %v312_v50, %v296_v40  ;;  %v329_v59 = vxor.u32 %v313_v51, %v297_v41  ;;  %v346_v61 = vshrl.u32 %v330_v53, 8  ;;  %v347_v62 = vshrl.u32 %v331_v54, 8 }
  0x2b   :  { %v342_v63 = vshrl.u32 %v326_v55, 8  ;;  %v343_v0 = vshrl.u32 %v327_v57, 8  ;;  %v324_v14 = vxor.u32 %v308_v60, %v292_v52  ;;  %v3349_v34 = vadd.s32 48, %v3258_v2 }
  0x2c   :  { %v344_v1 = vshrl.u32 %v328_v58, 8  ;;  %v345_v12 = vshrl.u32 %v329_v59, 8  ;;  %vm362_vm0 = vcmp.ge.s32.totalorder %v346_v61, 3355443  ;;  %vm363_vm1 = vcmp.ge.s32.totalorder %v347_v62, 3355443 }
  0x2d   :  { %vm358_vm2 = vcmp.ge.s32.totalorder %v342_v63, 3355443  ;;  %v2761_v17 = vsel %vm362_vm0, 1.0, %v5023_v16  ;;  %v2762_v18 = vsel %vm363_vm1, 1.0, %v5023_v16  ;;  %vm359_vm3 = vcmp.ge.s32.totalorder %v343_v0, 3355443 }
  0x2e   :  { %v2757_v19 = vsel %vm358_vm2, 1.0, %v5023_v16  ;;  %v2957_v20 = vpack.i.bf16 %v2762_v18, %v2761_v17  ;;  %v2758_v21 = vsel %vm359_vm3, 1.0, %v5023_v16  ;;  %vm360_vm4 = vcmp.ge.s32.totalorder %v344_v1, 3355443  ;;  %5121 = vst [vmem:[#allocation23_spill] sm:$0xff] %v3349_v34 }
  0x2f   :  { %vm361_vm5 = vcmp.ge.s32.totalorder %v345_v12, 3355443  ;;  %v2968_v23 = vpack.i.bf16 %v2758_v21, %v2757_v19  ;;  %v2759_v24 = vsel %vm360_vm4, 1.0, %v5023_v16  ;;  %v340_v30 = vshrl.u32 %v324_v14, 8 }
  0x30   :  { %v2760_v25 = vsel %vm361_vm5, 1.0, %v5023_v16  ;;  %2958 = vperm.xlu0 %2956, %v2957_v20   ;;  %v3352_v35 = vadd.s32 56, %v3258_v2  ;;  %v309_v36 = vshrl.u32 %v293_v26, 16  ;;  %v3355_v37 = vadd.s32 32, %v3258_v2 }
  0x31   :  { %2969 = vperm.xlu1 %2967, %v2968_v23   ;;  %v3358_v38 = vadd.s32 40, %v3258_v2  ;;  %v3361_v39 = vadd.s32 16, %v3258_v2  ;;  %v2962_v40 = vpack.i.bf16 %v2760_v25, %v2759_v24  ;;  %vm356_vm6 = vcmp.ge.s32.totalorder %v340_v30, 3355443 }
  0x32   :  { %5122 = vst [vmem:[#allocation24_spill] sm:$0xff] %v3352_v35  ;;  %v143_v41 = vmul.u32 2654435761, %v3349_v34  ;;  %v144_v43 = vmul.u32 2654435761, %v3352_v35  ;;  %v325_v44 = vxor.u32 %v309_v36, %v293_v26  ;;  %v2755_v45 = vsel %vm356_vm6, 1.0, %v5023_v16 }
  0x33   :  { %5123 = vst [vmem:[#allocation25_spill] sm:$0xff] %v3355_v37  ;;  %v141_v47 = vmul.u32 2654435761, %v3355_v37  ;;  %v142_v48 = vmul.u32 2654435761, %v3358_v38  ;;  %v3371_v51 = vadd.s32 24, %v3258_v2 }
  0x34   :  { %5124 = vst [vmem:[#allocation26_spill] sm:$0xff] %v3358_v38  ;;  %v160_v49 = vxor.u32 %v3272_v6, %v143_v41  ;;  %v161_v50 = vxor.u32 %v3272_v6, %v144_v43  ;;  %v139_v52 = vmul.u32 2654435761, %v3361_v39  ;;  %v341_v53 = vshrl.u32 %v325_v44, 8 }
  0x35   :  { %5125 = vst [vmem:[#allocation27_spill] sm:$0xff] %v3361_v39  ;;  %v158_v54 = vxor.u32 %v3272_v6, %v141_v47  ;;  %v159_v55 = vxor.u32 %v3272_v6, %v142_v48  ;;  %v3377_v56 = vadd.s32 8, %v3258_v2  ;;  %v140_v59 = vmul.u32 2654435761, %v3371_v51 }
  0x36   :  { %5126 = vst [vmem:[#allocation28_spill] sm:$0xff] %v3371_v51  ;;  %v3380_v57 = vxor.u32 %v3292_v15, %v160_v49  ;;  %v3383_v58 = vxor.u32 %v3292_v15, %v161_v50  ;;  %v156_v60 = vxor.u32 %v3272_v6, %v139_v52  ;;  %vm357_vm7 = vcmp.ge.s32.totalorder %v341_v53, 3355443 }
  0x37   :  { %5127 = vst [vmem:[#allocation29_spill] sm:$0xff] %v3377_v56  ;;  %v3388_v61 = vxor.u32 %v3292_v15, %v158_v54  ;;  %v3391_v62 = vxor.u32 %v3292_v15, %v159_v55  ;;  %v137_v63 = vmul.u32 2654435761, %v3258_v2  ;;  %v2756_v0 = vsel %vm357_vm7, 1.0, %v5023_v16 }
  0x38   :  { %2963 = vperm.xlu0 %2956, %v2962_v40   ;;  %v194_v1 = vxor.u32 4369, %v3380_v57  ;;  %v195_v12 = vxor.u32 4369, %v3383_v58  ;;  %v157_v13 = vxor.u32 %v3272_v6, %v140_v59  ;;  %v2973_v14 = vpack.i.bf16 %v2756_v0, %v2755_v45 }
  0x39   :  { %v192_v17 = vxor.u32 4369, %v3388_v61  ;;  %v193_v18 = vxor.u32 4369, %v3391_v62  ;;  %v3401_v19 = vxor.u32 %v3292_v15, %v156_v60  ;;  %v138_v24 = vmul.u32 2654435761, %v3377_v56 }
  0x3a   :  { %v210_v20 = vshrl.u32 %v194_v1, 16  ;;  %v211_v21 = vshrl.u32 %v195_v12, 16  ;;  %v3404_v23 = vxor.u32 %v3292_v15, %v157_v13  ;;  %2974 = vperm.xlu1 %2967, %v2973_v14   ;;  %v154_v36 = vxor.u32 %v3272_v6, %v137_v63 }
  0x3b   :  { %v208_v25 = vshrl.u32 %v192_v17, 16  ;;  %v209_v26 = vshrl.u32 %v193_v18, 16  ;;  %v190_v30 = vxor.u32 4369, %v3401_v19  ;;  %v155_v44 = vxor.u32 %v3272_v6, %v138_v24 }
  0x3c   :  { %v226_v40 = vxor.u32 %v210_v20, %v194_v1  ;;  %v227_v41 = vxor.u32 %v211_v21, %v195_v12  ;;  %v191_v43 = vxor.u32 4369, %v3404_v23  ;;  %v3412_v49 = vxor.u32 %v3292_v15, %v154_v36 }
  0x3d   :  { %v224_v45 = vxor.u32 %v208_v25, %v192_v17  ;;  %v225_v47 = vxor.u32 %v209_v26, %v193_v18  ;;  %v206_v48 = vshrl.u32 %v190_v30, 16  ;;  %v3415_v54 = vxor.u32 %v3292_v15, %v155_v44 }
  0x3e   :  { %v242_v50 = vmul.u32 73244475, %v226_v40  ;;  %v243_v52 = vmul.u32 73244475, %v227_v41  ;;  %v207_v53 = vshrl.u32 %v191_v43, 16  ;;  %v188_v63 = vxor.u32 4369, %v3412_v49 }
  0x3f   :  { %v240_v55 = vmul.u32 73244475, %v224_v45  ;;  %v241_v59 = vmul.u32 73244475, %v225_v47  ;;  %v222_v60 = vxor.u32 %v206_v48, %v190_v30  ;;  %v189_v12 = vxor.u32 4369, %v3415_v54 }
  0x40   :  { %v258_v0 = vshrl.u32 %v242_v50, 16  ;;  %v259_v1 = vshrl.u32 %v243_v52, 16  ;;  %v223_v6 = vxor.u32 %v207_v53, %v191_v43  ;;  %v204_v18 = vshrl.u32 %v188_v63, 16 }
  0x41   :  { %v256_v13 = vshrl.u32 %v240_v55, 16  ;;  %v257_v14 = vshrl.u32 %v241_v59, 16  ;;  %v238_v17 = vmul.u32 73244475, %v222_v60  ;;  %v205_v25 = vshrl.u32 %v189_v12, 16 }
  0x42   :  { %v274_v20 = vxor.u32 %v258_v0, %v242_v50  ;;  %v275_v21 = vxor.u32 %v259_v1, %v243_v52  ;;  %v239_v24 = vmul.u32 73244475, %v223_v6  ;;  %v220_v40 = vxor.u32 %v204_v18, %v188_v63 }
  0x43   :  { %v272_v15 = vxor.u32 %v256_v13, %v240_v55  ;;  %v273_v26 = vxor.u32 %v257_v14, %v241_v59  ;;  %v254_v36 = vshrl.u32 %v238_v17, 16  ;;  %v221_v45 = vxor.u32 %v205_v25, %v189_v12 }
  0x44   :  { %v290_v30 = vmul.u32 73244475, %v274_v20  ;;  %v291_v41 = vmul.u32 73244475, %v275_v21  ;;  %v255_v44 = vshrl.u32 %v239_v24, 16 }
  0x45   :  { %v288_v47 = vmul.u32 73244475, %v272_v15  ;;  %v289_v43 = vmul.u32 73244475, %v273_v26  ;;  %v270_v48 = vxor.u32 %v254_v36, %v238_v17  ;;  %v236_v53 = vmul.u32 73244475, %v220_v40 }
  0x46   :  { %v306_v16 = vshrl.u32 %v290_v30, 16  ;;  %v307_v22 = vshrl.u32 %v291_v41, 16  ;;  %v271_v60 = vxor.u32 %v255_v44, %v239_v24  ;;  %v237_v34 = vmul.u32 73244475, %v221_v45 }
  0x47   :  { %v304_v50 = vshrl.u32 %v288_v47, 16  ;;  %v305_v52 = vshrl.u32 %v289_v43, 16  ;;  %v286_v0 = vmul.u32 73244475, %v270_v48  ;;  %v252_v1 = vshrl.u32 %v236_v53, 16 }
  0x48   :  { %v322_v55 = vxor.u32 %v306_v16, %v290_v30  ;;  %v323_v59 = vxor.u32 %v307_v22, %v291_v41  ;;  %v287_v6 = vmul.u32 73244475, %v271_v60  ;;  %v253_v63 = vshrl.u32 %v237_v34, 16 }
  0x49   :  { %v320_v13 = vxor.u32 %v304_v50, %v288_v47  ;;  %v321_v14 = vxor.u32 %v305_v52, %v289_v43  ;;  %v302_v18 = vshrl.u32 %v286_v0, 16  ;;  %v268_v12 = vxor.u32 %v252_v1, %v236_v53 }
  0x4a   :  { %v338_v20 = vshrl.u32 %v322_v55, 8  ;;  %v339_v21 = vshrl.u32 %v323_v59, 8  ;;  %v303_v17 = vshrl.u32 %v287_v6, 16  ;;  %v269_v25 = vxor.u32 %v253_v63, %v237_v34 }
  0x4b   :  { %v336_v15 = vshrl.u32 %v320_v13, 8  ;;  %v337_v26 = vshrl.u32 %v321_v14, 8  ;;  %v318_v24 = vxor.u32 %v302_v18, %v286_v0  ;;  %v284_v36 = vmul.u32 73244475, %v268_v12 }
  0x4c   :  { %vm354_vm8 = vcmp.ge.s32.totalorder %v338_v20, 3355443  ;;  %vm355_vm9 = vcmp.ge.s32.totalorder %v339_v21, 3355443  ;;  %v319_v40 = vxor.u32 %v303_v17, %v287_v6  ;;  %v285_v44 = vmul.u32 73244475, %v269_v25 }
  0x4d   :  { %v5128_v16 = vmov 0.0   ;;  %vm352_vm10 = vcmp.ge.s32.totalorder %v336_v15, 3355443  ;;  %vm353_vm11 = vcmp.ge.s32.totalorder %v337_v26, 3355443  ;;  %v334_v34 = vshrl.u32 %v318_v24, 8 }
  0x4e   :  { %v2753_v22 = vsel %vm354_vm8, 1.0, %v5128_v16  ;;  %v2754_v30 = vsel %vm355_vm9, 1.0, %v5128_v16  ;;  %v2751_v45 = vsel %vm352_vm10, 1.0, %v5128_v16  ;;  %v2752_v47 = vsel %vm353_vm11, 1.0, %v5128_v16 }
  0x4f   :  { %v2979_v41 = vpack.i.bf16 %v2754_v30, %v2753_v22  ;;  %v2984_v43 = vpack.i.bf16 %v2752_v47, %v2751_v45  ;;  %v335_v48 = vshrl.u32 %v319_v40, 8  ;;  %v300_v53 = vshrl.u32 %v284_v36, 16 }
  0x50   :  { %v301_v60 = vshrl.u32 %v285_v44, 16  ;;  %vm350_vm12 = vcmp.ge.s32.totalorder %v334_v34, 3355443  ;;  %v410_v50 = vxor.u32 8738, %v3308_v27  ;;  %v411_v52 = vxor.u32 8738, %v3311_v28 }
  0x51   :  { %2980 = vperm.xlu2 %2978, %v2979_v41   ;;  %v408_v0 = vxor.u32 8738, %v3321_v32  ;;  %vm351_vm13 = vcmp.ge.s32.totalorder %v335_v48, 3355443  ;;  %v2749_v1 = vsel %vm350_vm12, 1.0, %v5128_v16  ;;  %v316_v55 = vxor.u32 %v300_v53, %v284_v36 }
  0x52   :  { %v317_v59 = vxor.u32 %v301_v60, %v285_v44  ;;  %v2750_v6 = vsel %vm351_vm13, 1.0, %v5128_v16  ;;  %v426_v63 = vshrl.u32 %v410_v50, 16  ;;  %v427_v13 = vshrl.u32 %v411_v52, 16 }
  0x53   :  { %v409_v14 = vxor.u32 8738, %v3324_v33  ;;  %v2989_v18 = vpack.i.bf16 %v2750_v6, %v2749_v1  ;;  %v332_v12 = vshrl.u32 %v316_v55, 8  ;;  %v424_v21 = vshrl.u32 %v408_v0, 16 }
  0x54   :  { %v333_v20 = vshrl.u32 %v317_v59, 8  ;;  %v442_v17 = vxor.u32 %v426_v63, %v410_v50  ;;  %v443_v25 = vxor.u32 %v427_v13, %v411_v52  ;;  %v406_v26 = vxor.u32 8738, %v3314_v29 }
  0x55   :  { %v425_v15 = vshrl.u32 %v409_v14, 16  ;;  %2990 = vperm.xlu0 %2956, %v2989_v18   ;;  %vm348_vm14 = vcmp.ge.s32.totalorder %v332_v12, 3355443  ;;  %v440_v24 = vxor.u32 %v424_v21, %v408_v0  ;;  %v407_v36 = vxor.u32 8738, %v3318_v31 }
  0x56   :  { %vm349_vm15 = vcmp.ge.s32.totalorder %v333_v20, 3355443  ;;  %v2747_v40 = vsel %vm348_vm14, 1.0, %v5128_v16  ;;  %v458_v22 = vmul.u32 73244475, %v442_v17  ;;  %v422_v34 = vshrl.u32 %v406_v26, 16 }
  0x57   :  { %v2748_v44 = vsel %vm349_vm15, 1.0, %v5128_v16  ;;  %v459_v30 = vmul.u32 73244475, %v443_v25  ;;  %v441_v45 = vxor.u32 %v425_v15, %v409_v14  ;;  %v456_v47 = vmul.u32 73244475, %v440_v24 }
  0x58   :  { %v2994_v41 = vpack.i.bf16 %v2748_v44, %v2747_v40  ;;  %v474_v48 = vshrl.u32 %v458_v22, 16  ;;  %v423_v60 = vshrl.u32 %v407_v36, 16  ;;  %v404_v50 = vxor.u32 8738, %v3335_v42 }
  0x59   :  { %2985 = vperm.xlu2 %2978, %v2984_v43   ;;  %v475_v53 = vshrl.u32 %v459_v30, 16  ;;  %v457_v52 = vmul.u32 73244475, %v441_v45  ;;  %v472_v0 = vshrl.u32 %v456_v47, 16  ;;  %v438_v1 = vxor.u32 %v422_v34, %v406_v26 }
  0x5a   :  { %2995 = vperm.xlu1 %2967, %v2994_v41   ;;  %v405_v55 = vxor.u32 8738, %v3338_v46  ;;  %v490_v59 = vxor.u32 %v474_v48, %v458_v22  ;;  %v439_v63 = vxor.u32 %v423_v60, %v407_v36  ;;  %v420_v13 = vshrl.u32 %v404_v50, 16 }
  0x5b   :  { %v491_v6 = vxor.u32 %v475_v53, %v459_v30  ;;  %v473_v18 = vshrl.u32 %v457_v52, 16  ;;  %v488_v14 = vxor.u32 %v472_v0, %v456_v47  ;;  %v454_v12 = vmul.u32 73244475, %v438_v1 }
  0x5c   :  { %v421_v20 = vshrl.u32 %v405_v55, 16  ;;  %v506_v43 = vmul.u32 73244475, %v490_v59  ;;  %v455_v17 = vmul.u32 73244475, %v439_v63  ;;  %v436_v25 = vxor.u32 %v420_v13, %v404_v50 }
  0x5d   :  { %v507_v21 = vmul.u32 73244475, %v491_v6  ;;  %v489_v15 = vxor.u32 %v473_v18, %v457_v52  ;;  %v504_v24 = vmul.u32 73244475, %v488_v14  ;;  %v470_v40 = vshrl.u32 %v454_v12, 16 }
  0x5e   :  { %v437_v44 = vxor.u32 %v421_v20, %v405_v55  ;;  %v522_v41 = vshrl.u32 %v506_v43, 16  ;;  %v471_v45 = vshrl.u32 %v455_v17, 16  ;;  %v452_v34 = vmul.u32 73244475, %v436_v25 }
  0x5f   :  { %v523_v26 = vshrl.u32 %v507_v21, 16  ;;  %v505_v22 = vmul.u32 73244475, %v489_v15  ;;  %v520_v30 = vshrl.u32 %v504_v24, 16  ;;  %v486_v36 = vxor.u32 %v470_v40, %v454_v12 }
  0x60   :  { %v453_v48 = vmul.u32 73244475, %v437_v44  ;;  %v538_v53 = vxor.u32 %v522_v41, %v506_v43  ;;  %v487_v60 = vxor.u32 %v471_v45, %v455_v17  ;;  %v468_v0 = vshrl.u32 %v452_v34, 16 }
  0x61   :  { %v539_v47 = vxor.u32 %v523_v26, %v507_v21  ;;  %v521_v1 = vshrl.u32 %v505_v22, 16  ;;  %v536_v59 = vxor.u32 %v520_v30, %v504_v24  ;;  %v502_v6 = vmul.u32 73244475, %v486_v36 }
  0x62   :  { %v469_v50 = vshrl.u32 %v453_v48, 16  ;;  %v554_v52 = vshrl.u32 %v538_v53, 8  ;;  %v503_v13 = vmul.u32 73244475, %v487_v60  ;;  %v484_v55 = vxor.u32 %v468_v0, %v452_v34 }
  0x63   :  { %v555_v63 = vshrl.u32 %v539_v47, 8  ;;  %v537_v18 = vxor.u32 %v521_v1, %v505_v22  ;;  %v552_v14 = vshrl.u32 %v536_v59, 8  ;;  %v518_v20 = vshrl.u32 %v502_v6, 16 }
  0x64   :  { %v485_v25 = vxor.u32 %v469_v50, %v453_v48  ;;  %vm570_vm0 = vcmp.ge.s32.totalorder %v554_v52, 3355443  ;;  %v519_v12 = vshrl.u32 %v503_v13, 16  ;;  %v402_v43 = vxor.u32 8738, %v3380_v57 }
  0x65   :  { %vm571_vm1 = vcmp.ge.s32.totalorder %v555_v63, 3355443  ;;  %v2777_v21 = vsel %vm570_vm0, 1.0, %v5128_v16  ;;  %v553_v15 = vshrl.u32 %v537_v18, 8  ;;  %vm568_vm2 = vcmp.ge.s32.totalorder %v552_v14, 3355443 }
  0x66   :  { %v2778_v17 = vsel %vm571_vm1, 1.0, %v5128_v16  ;;  %v2775_v40 = vsel %vm568_vm2, 1.0, %v5128_v16  ;;  %v534_v44 = vxor.u32 %v518_v20, %v502_v6  ;;  %v535_v41 = vxor.u32 %v519_v12, %v503_v13 }
  0x67   :  { %v2999_v24 = vpack.i.bf16 %v2778_v17, %v2777_v21  ;;  %vm569_vm3 = vcmp.ge.s32.totalorder %v553_v15, 3355443  ;;  %v500_v26 = vmul.u32 73244475, %v484_v55  ;;  %v501_v45 = vmul.u32 73244475, %v485_v25 }
  0x68   :  { %v2776_v34 = vsel %vm569_vm3, 1.0, %v5128_v16  ;;  %v550_v22 = vshrl.u32 %v534_v44, 8  ;;  %v551_v30 = vshrl.u32 %v535_v41, 8  ;;  %v403_v36 = vxor.u32 8738, %v3383_v58 }
  0x69   :  { %3000 = vperm.xlu2 %2978, %v2999_v24   ;;  %v3004_v48 = vpack.i.bf16 %v2776_v34, %v2775_v40  ;;  %v516_v53 = vshrl.u32 %v500_v26, 16  ;;  %v517_v47 = vshrl.u32 %v501_v45, 16  ;;  %v418_v60 = vshrl.u32 %v402_v43, 16 }
  0x6a   :  { %vm566_vm4 = vcmp.ge.s32.totalorder %v550_v22, 3355443  ;;  %vm567_vm5 = vcmp.ge.s32.totalorder %v551_v30, 3355443  ;;  %v419_v0 = vshrl.u32 %v403_v36, 16  ;;  %v400_v1 = vxor.u32 8738, %v3388_v61 }
  0x6b   :  { %3005 = vperm.xlu0 %2956, %v3004_v48   ;;  %v2773_v59 = vsel %vm566_vm4, 1.0, %v5128_v16  ;;  %v2774_v6 = vsel %vm567_vm5, 1.0, %v5128_v16  ;;  %v532_v50 = vxor.u32 %v516_v53, %v500_v26  ;;  %v533_v52 = vxor.u32 %v517_v47, %v501_v45 }
  0x6c   :  { %v3009_v63 = vpack.i.bf16 %v2774_v6, %v2773_v59  ;;  %v434_v13 = vxor.u32 %v418_v60, %v402_v43  ;;  %v435_v55 = vxor.u32 %v419_v0, %v403_v36  ;;  %v401_v18 = vxor.u32 8738, %v3391_v62 }
  0x6d   :  { %v548_v14 = vshrl.u32 %v532_v50, 8  ;;  %v549_v20 = vshrl.u32 %v533_v52, 8  ;;  %v416_v25 = vshrl.u32 %v400_v1, 16  ;;  %v398_v12 = vxor.u32 8738, %v3401_v19 }
  0x6e   :  { %3010 = vperm.xlu1 %2967, %v3009_v63   ;;  %v450_v21 = vmul.u32 73244475, %v434_v13  ;;  %v451_v17 = vmul.u32 73244475, %v435_v55  ;;  %v417_v15 = vshrl.u32 %v401_v18, 16  ;;  %v399_v24 = vxor.u32 8738, %v3404_v23 }
  0x6f   :  { %vm564_vm6 = vcmp.ge.s32.totalorder %v548_v14, 3355443  ;;  %vm565_vm7 = vcmp.ge.s32.totalorder %v549_v20, 3355443  ;;  %v432_v40 = vxor.u32 %v416_v25, %v400_v1  ;;  %v414_v44 = vshrl.u32 %v398_v12, 16 }
  0x70   :  { %v2771_v43 = vsel %vm564_vm6, 1.0, %v5128_v16  ;;  %v2772_v41 = vsel %vm565_vm7, 1.0, %v5128_v16  ;;  %v466_v26 = vshrl.u32 %v450_v21, 16  ;;  %v467_v45 = vshrl.u32 %v451_v17, 16 }
  0x71   :  { %v3014_v34 = vpack.i.bf16 %v2772_v41, %v2771_v43  ;;  %v433_v22 = vxor.u32 %v417_v15, %v401_v18  ;;  %v448_v30 = vmul.u32 73244475, %v432_v40  ;;  %v415_v36 = vshrl.u32 %v399_v24, 16 }
  0x72   :  { %v482_v48 = vxor.u32 %v466_v26, %v450_v21  ;;  %v483_v53 = vxor.u32 %v467_v45, %v451_v17  ;;  %v430_v47 = vxor.u32 %v414_v44, %v398_v12  ;;  %v396_v60 = vxor.u32 8738, %v3412_v49 }
  0x73   :  { %3015 = vperm.xlu2 %2978, %v3014_v34   ;;  %v449_v0 = vmul.u32 73244475, %v433_v22  ;;  %v464_v59 = vshrl.u32 %v448_v30, 16  ;;  %v431_v1 = vxor.u32 %v415_v36, %v399_v24  ;;  %v397_v6 = vxor.u32 8738, %v3415_v54 }
  0x74   :  { %v498_v50 = vmul.u32 73244475, %v482_v48  ;;  %v499_v52 = vmul.u32 73244475, %v483_v53  ;;  %v446_v63 = vmul.u32 73244475, %v430_v47  ;;  %vm100_vm0 = vcmp.eq.s32.totalorder %v3278_v8, %v3260_v3 }
  0x75   :  { %v465_v13 = vshrl.u32 %v449_v0, 16  ;;  %v480_v55 = vxor.u32 %v464_v59, %v448_v30  ;;  %v447_v14 = vmul.u32 73244475, %v431_v1  ;;  %v412_v18 = vshrl.u32 %v396_v60, 16 }
  0x76   :  { %v514_v20 = vshrl.u32 %v498_v50, 16  ;;  %v515_v25 = vshrl.u32 %v499_v52, 16  ;;  %v462_v21 = vshrl.u32 %v446_v63, 16  ;;  %v413_v17 = vshrl.u32 %v397_v6, 16 }
  0x77   :  { %v481_v12 = vxor.u32 %v465_v13, %v449_v0  ;;  %v496_v15 = vmul.u32 73244475, %v480_v55  ;;  %v463_v40 = vshrl.u32 %v447_v14, 16  ;;  %v428_v44 = vxor.u32 %v412_v18, %v396_v60 }
  0x78   :  { %v530_v43 = vxor.u32 %v514_v20, %v498_v50  ;;  %v531_v41 = vxor.u32 %v515_v25, %v499_v52  ;;  %v478_v24 = vxor.u32 %v462_v21, %v446_v63  ;;  %v429_v26 = vxor.u32 %v413_v17, %v397_v6 }
  0x79   :  { %v497_v45 = vmul.u32 73244475, %v481_v12  ;;  %v512_v34 = vshrl.u32 %v496_v15, 16  ;;  %v479_v22 = vxor.u32 %v463_v40, %v447_v14  ;;  %v444_v36 = vmul.u32 73244475, %v428_v44 }
  0x7a   :  { %v546_v48 = vshrl.u32 %v530_v43, 8  ;;  %v547_v30 = vshrl.u32 %v531_v41, 8  ;;  %v494_v53 = vmul.u32 73244475, %v478_v24  ;;  %v445_v47 = vmul.u32 73244475, %v429_v26 }
  0x7b   :  { %v513_v59 = vshrl.u32 %v497_v45, 16  ;;  %v528_v1 = vxor.u32 %v512_v34, %v496_v15  ;;  %v495_v46 = vmul.u32 73244475, %v479_v22  ;;  %v460_v35 = vshrl.u32 %v444_v36, 16 }
  0x7c   :  { %vm562_vm8 = vcmp.ge.s32.totalorder %v546_v48, 3355443  ;;  %vm563_vm9 = vcmp.ge.s32.totalorder %v547_v30, 3355443  ;;  %v510_v0 = vshrl.u32 %v494_v53, 16  ;;  %v461_v60 = vshrl.u32 %v445_v47, 16 }
  0x7d   :  { %v2769_v50 = vsel %vm562_vm8, 1.0, %v5128_v16  ;;  %v2770_v6 = vsel %vm563_vm9, 1.0, %v5128_v16  ;;  %v529_v52 = vxor.u32 %v513_v59, %v497_v45  ;;  %v544_v63 = vshrl.u32 %v528_v1, 8 }
  0x7e   :  { %v3019_v13 = vpack.i.bf16 %v2770_v6, %v2769_v50  ;;  %v511_v55 = vshrl.u32 %v495_v46, 16  ;;  %v526_v14 = vxor.u32 %v510_v0, %v494_v53  ;;  %v476_v18 = vxor.u32 %v460_v35, %v444_v36  ;;  %v619_v50 = vld [vmem:[#allocation8 + $0x78] sm:$0xff] }
  0x7f   :  { %v545_v20 = vshrl.u32 %v529_v52, 8  ;;  %vm560_vm10 = vcmp.ge.s32.totalorder %v544_v63, 3355443  ;;  %v477_v25 = vxor.u32 %v461_v60, %v445_v47  ;;  %v618_v60 = vld [vmem:[#allocation8 + $0x70] sm:$0xff]  ;;  %vm102_vm3 = vcmp.eq.s32.totalorder %v3284_v10, %v3260_v3 }
  0x80   :  { %3020 = vperm.xlu0 %2956, %v3019_v13   ;;  %v2767_v21 = vsel %vm560_vm10, 1.0, %v5128_v16  ;;  %v527_v17 = vxor.u32 %v511_v55, %v495_v46  ;;  %v542_v12 = vshrl.u32 %v526_v14, 8  ;;  %v492_v15 = vmul.u32 73244475, %v476_v18 }
  0x81   :  { %vm561_vm11 = vcmp.ge.s32.totalorder %v545_v20, 3355443  ;;  %v493_v40 = vmul.u32 73244475, %v477_v25  ;;  %v3459_v20 = vld [vmem:[#allocation8 + $0x60] sm:$0xff]  ;;  %v3461_v25 = vld [vmem:[#allocation8 + $0x68] sm:$0xff]  ;;  %vm99_vm4 = vcmp.eq.s32.totalorder %v3275_v7, %v3260_v3  ;;  %vm101_vm5 = vcmp.eq.s32.totalorder %v3281_v9, %v3260_v3 }
  0x82   :  { %v2768_v44 = vsel %vm561_vm11, 1.0, %v5128_v16  ;;  %v543_v43 = vshrl.u32 %v527_v17, 8  ;;  %vm558_vm12 = vcmp.ge.s32.totalorder %v542_v12, 3355443  ;;  %v508_v41 = vshrl.u32 %v492_v15, 16 }
  0x83   :  { %v3024_v24 = vpack.i.bf16 %v2768_v44, %v2767_v21  ;;  %v2765_v26 = vsel %vm558_vm12, 1.0, %v5128_v16  ;;  %v509_v35 = vshrl.u32 %v493_v40, 16  ;;  %vm104_vm6 = vcmp.eq.s32.totalorder %v3269_v5, %v3260_v3 }
  0x84   :  { %vm559_vm13 = vcmp.ge.s32.totalorder %v543_v43, 3355443  ;;  %v524_v45 = vxor.u32 %v508_v41, %v492_v15  ;;  %vm103_vm7 = vcmp.eq.s32.totalorder %v3266_v4, %v3260_v3  ;;  %vm91_vm10 = vcmp.eq.s32.totalorder %v3361_v39, %v3260_v3 }
  0x85   :  { %3025 = vperm.xlu1 %2967, %v3024_v24   ;;  %v2766_v34 = vsel %vm559_vm13, 1.0, %v5128_v16  ;;  %v525_v22 = vxor.u32 %v509_v35, %v493_v40  ;;  %v3465_v35 = vld [vmem:[#allocation8 + $0x50] sm:$0xff]  ;;  %vm90_vm11 = vcmp.eq.s32.totalorder %v3377_v56, %v3260_v3  ;;  %vm89_vm12 = vcmp.eq.s32.totalorder %v3258_v2, %v3260_v3 }
  0x86   :  { %v3029_v46 = vpack.i.bf16 %v2766_v34, %v2765_v26  ;;  %v540_v36 = vshrl.u32 %v524_v45, 8  ;;  %v3467_v45 = vld [vmem:[#allocation8 + $0x58] sm:$0xff]  ;;  %v3469_v34 = vld [vmem:[#allocation8 + $0x40] sm:$0xff]  ;;  %vm94_vm13 = vcmp.eq.s32.totalorder %v3358_v38, %v3260_v3 }
  0x87   :  { %v541_v48 = vshrl.u32 %v525_v22, 8 }
  0x88   :  { %3030 = vperm.xlu2 %2978, %v3029_v46   ;;  %vm556_vm14 = vcmp.ge.s32.totalorder %v540_v36, 3355443 }
  0x89   :  { %vm557_vm15 = vcmp.ge.s32.totalorder %v541_v48, 3355443  ;;  %v2763_v30 = vsel %vm556_vm14, 1.0, %v5128_v16  ;;  %v3473_v48 = vld [vmem:[#allocation8 + $0x48] sm:$0xff] }
  0x8a   :  { %v2764_v53 = vsel %vm557_vm15, 1.0, %v5128_v16 }
  0x8b   :  { %v3034_v47 = vpack.i.bf16 %v2764_v53, %v2763_v30 }
  0x8d   :  { %3035 = vperm.xlu0 %2956, %v3034_v47  }
  0xa2   :  { %v2959_v59 = vpop.permute.xlu0 %2958 }
  0xa3   :  { %v2961_v1 = vunpack.i.h.bf16 %v2959_v59  ;;  %v2960_v0 = vunpack.i.l.bf16 %v2959_v59  ;;  %v2970_v15 = vpop.permute.xlu1 %2969 }
  0xa4   :  { %v2972_v43 = vunpack.i.h.bf16 %v2970_v15  ;;  %v2971_v41 = vunpack.i.l.bf16 %v2970_v15 }
  0xa5   :  { %v714_v6 = vmul.f32 %v2960_v0, %v618_v60  ;;  %v715_v52 = vmul.f32 %v2961_v1, %v619_v50 }
  0xa6   :  { %v710_v46 = vmul.f32 %v2971_v41, %v3465_v35  ;;  %v711_v36 = vmul.f32 %v2972_v43, %v3467_v45  ;;  %v3485_v43 = vld [vmem:[#allocation8 + $0x28] sm:$0xff] }
  0xa7   :  { %v826_v63 = vpack.c.bf16 %v715_v52, %v714_v6 }
  0xa8   :  { %v822_v1 = vpack.c.bf16 %v711_v36, %v710_v46  ;;  %v3489_v46 = vld [vmem:[#allocation8 + $0x10] sm:$0xff]  ;;  %v3491_v36 = vld [vmem:[#allocation8 + $0x18] sm:$0xff] }
  0xa9   :  { %852 = vmatpush.bf16.msra.mxu0 %v826_v63 }
  0xaa   :  { %v2964_v13 = vpop.permute.xlu0 %2963 }
  0xab   :  { %v2966_v55 = vunpack.i.h.bf16 %v2964_v13  ;;  %v2965_v14 = vunpack.i.l.bf16 %v2964_v13  ;;  %v2981_v18 = vpop.permute.xlu2 %2980  ;;  %v3477_v13 = vld [vmem:[#allocation8 + $0x30] sm:$0xff] }
  0xac   :  { %v2975_v44 = vpop.permute.xlu1 %2974  ;;  %v2983_v30 = vunpack.i.h.bf16 %v2981_v18  ;;  %v2982_v59 = vunpack.i.l.bf16 %v2981_v18 }
  0xad   :  { %v712_v21 = vmul.f32 %v2965_v14, %v3459_v20  ;;  %v713_v17 = vmul.f32 %v2966_v55, %v3461_v25  ;;  %v2977_v24 = vunpack.i.h.bf16 %v2975_v44  ;;  %v2976_v26 = vunpack.i.l.bf16 %v2975_v44  ;;  %v3479_v55 = vld [vmem:[#allocation8 + $0x38] sm:$0xff]  ;;  %v3483_v44 = vld [vmem:[#allocation8 + $0x20] sm:$0xff] }
  0xae   :  { %v706_v15 = vmul.f32 %v2982_v59, %v3477_v13  ;;  %v707_v18 = vmul.f32 %v2983_v30, %v3479_v55 }
  0xaf   :  { %v824_v12 = vpack.c.bf16 %v713_v17, %v712_v21  ;;  %v708_v0 = vmul.f32 %v2976_v26, %v3469_v34  ;;  %v709_v6 = vmul.f32 %v2977_v24, %v3473_v48 }
  0xb1   :  { %853 = vmatpush.bf16.msra.mxu0 %v824_v12  ;;  %v820_v12 = vpack.c.bf16 %v709_v6, %v708_v0  ;;  %v3495_v0 = vld [vmem:[#allocation8] sm:$0xff]  ;;  %v3497_v6 = vld [vmem:[#allocation8 + $0x8] sm:$0xff] }
  0xb3   :  { %v2986_v40 = vpop.permute.xlu2 %2985 }
  0xb4   :  { %v2988_v14 = vunpack.i.h.bf16 %v2986_v40  ;;  %v2987_v21 = vunpack.i.l.bf16 %v2986_v40  ;;  %v818_v40 = vpack.c.bf16 %v707_v18, %v706_v15  ;;  %v828_v18 = vld [vmem:[#allocation3] sm:$0xff] }
  0xb5   :  { %854 = vmatpush.bf16.msra.mxu0 %v822_v1 }
  0xb9   :  { %855 = vmatpush.bf16.msra.mxu0 %v820_v12 }
  0xbd   :  { %856 = vmatpush.bf16.msra.mxu0 %v818_v40 }
  0xc3   :  { %v3001_v22 = vpop.permute.xlu2 %3000 }
  0xc4   :  { %v3003_v53 = vunpack.i.h.bf16 %v3001_v22  ;;  %v3002_v47 = vunpack.i.l.bf16 %v3001_v22 }
  0xc6   :  { %v810_v52 = vmul.f32 %v3002_v47, %v618_v60  ;;  %v811_v63 = vmul.f32 %v3003_v53, %v619_v50  ;;  %v704_v60 = vmul.f32 %v2987_v21, %v3483_v44  ;;  %v705_v50 = vmul.f32 %v2988_v14, %v3485_v43 }
  0xc7   :  { %v2991_v41 = vpop.permute.xlu0 %2990 }
  0xc8   :  { %v827_v17 = vpack.c.bf16 %v811_v63, %v810_v52  ;;  %v2993_v24 = vunpack.i.h.bf16 %v2991_v41  ;;  %v2992_v26 = vunpack.i.l.bf16 %v2991_v41  ;;  %v816_v30 = vpack.c.bf16 %v705_v50, %v704_v60  ;;  %v829_v41 = vld [vmem:[#allocation3 + $0x8] sm:$0xff] }
  0xc9   :  { %v844_v60 = vpack.c.bf16 %v829_v41, %v828_v18 }
  0xca   :  { %901 = vmatpush.bf16.msra.mxu1 %v827_v17  ;;  %v702_v59 = vmul.f32 %v2992_v26, %v3489_v46  ;;  %v703_v1 = vmul.f32 %v2993_v24, %v3491_v36  ;;  %857 = vmatpush.bf16.msra.mxu0 %v816_v30 }
  0xcc   :  { %v2996_v22 = vpop.permute.xlu1 %2995  ;;  %v814_v52 = vpack.c.bf16 %v703_v1, %v702_v59 }
  0xcd   :  { %v2998_v53 = vunpack.i.h.bf16 %v2996_v22  ;;  %v2997_v47 = vunpack.i.l.bf16 %v2996_v22  ;;  %v3016_v40 = vpop.permute.xlu2 %3015 }
  0xce   :  { %858 = vmatpush.bf16.msra.mxu0 %v814_v52 }
  0xcf   :  { %v700_v63 = vmul.f32 %v2997_v47, %v3495_v0  ;;  %v701_v14 = vmul.f32 %v2998_v53, %v3497_v6  ;;  %v3018_v47 = vunpack.i.h.bf16 %v3016_v40  ;;  %v3017_v53 = vunpack.i.l.bf16 %v3016_v40 }
  0xd1   :  { %v812_v21 = vpack.c.bf16 %v701_v14, %v700_v63  ;;  %v804_v14 = vmul.f32 %v3017_v53, %v3469_v34  ;;  %v832_v53 = vld [vmem:[#allocation3 + $0x20] sm:$0xff] }
  0xd3   :  { %859 = vmatpush.bf16.msra.mxu0 %v812_v21  ;;  %v805_v21 = vmul.f32 %v3018_v47, %v3473_v48 }
  0xd6   :  { %860 = vmatmul.bf16.vlgmr.msra.gmra.mxu0 %v844_v60 }
  0xdd   :  { %v3006_v17 = vpop.permute.xlu0 %3005 }
  0xde   :  { %v3008_v12 = vunpack.i.h.bf16 %v3006_v17  ;;  %v3007_v15 = vunpack.i.l.bf16 %v3006_v17  ;;  %v831_v17 = vld [vmem:[#allocation3 + $0x18] sm:$0xff] }
  0xe0   :  { %v3011_v50 = vpop.permute.xlu1 %3010  ;;  %v808_v24 = vmul.f32 %v3007_v15, %v3459_v20  ;;  %v809_v26 = vmul.f32 %v3008_v12, %v3461_v25  ;;  %v821_v20 = vpack.c.bf16 %v805_v21, %v804_v14  ;;  %v830_v25 = vld [vmem:[#allocation3 + $0x10] sm:$0xff] }
  0xe1   :  { %v3013_v22 = vunpack.i.h.bf16 %v3011_v50  ;;  %v3012_v30 = vunpack.i.l.bf16 %v3011_v50  ;;  %v845_v12 = vpack.c.bf16 %v831_v17, %v830_v25  ;;  %v834_v17 = vld [vmem:[#allocation3 + $0x30] sm:$0xff] }
  0xe2   :  { %v825_v59 = vpack.c.bf16 %v809_v26, %v808_v24  ;;  %v3031_v50 = vpop.permute.xlu2 %3030 }
  0xe3   :  { %v806_v1 = vmul.f32 %v3012_v30, %v3465_v35  ;;  %v807_v52 = vmul.f32 %v3013_v22, %v3467_v45  ;;  %v3033_v34 = vunpack.i.h.bf16 %v3031_v50  ;;  %v3032_v40 = vunpack.i.l.bf16 %v3031_v50 }
  0xe4   :  { %902 = vmatpush.bf16.msra.mxu1 %v825_v59  ;;  %v833_v59 = vld [vmem:[#allocation3 + $0x28] sm:$0xff]  ;;  %v977_v50 = vxor.u32 13107, %v3318_v31 }
  0xe5   :  { %v823_v63 = vpack.c.bf16 %v807_v52, %v806_v1  ;;  %v798_v52 = vmul.f32 %v3032_v40, %v3489_v46 }
  0xe6   :  { %865 = vmatmul.bf16.gmra.mxu0 %v845_v12 }
  0xe8   :  { %903 = vmatpush.bf16.msra.mxu1 %v823_v63  ;;  %v846_v63 = vpack.c.bf16 %v833_v59, %v832_v53 }
  0xec   :  { %904 = vmatpush.bf16.msra.mxu1 %v821_v20 }
  0xf2   :  { %v3021_v15 = vpop.permute.xlu0 %3020 }
  0xf3   :  { %v3023_v18 = vunpack.i.h.bf16 %v3021_v15  ;;  %v3022_v41 = vunpack.i.l.bf16 %v3021_v15  ;;  %v835_v15 = vld [vmem:[#allocation3 + $0x38] sm:$0xff] }
  0xf4   :  { %v847_v46 = vpack.c.bf16 %v835_v15, %v834_v17 }
  0xf5   :  { %v802_v35 = vmul.f32 %v3022_v41, %v3477_v13  ;;  %v803_v45 = vmul.f32 %v3023_v18, %v3479_v55  ;;  %v799_v13 = vmul.f32 %v3033_v34, %v3491_v36  ;;  %v836_v36 = vld [vmem:[#allocation3 + $0x40] sm:$0xff]  ;;  %v837_v18 = vld [vmem:[#allocation3 + $0x48] sm:$0xff] }
  0xf6   :  { %870 = vmatmul.bf16.gmra.mxu0 %v846_v63  ;;  %v3515_v41 = vpack.c.bf16 %v837_v18, %v836_v36  ;;  %v840_v18 = vld [vmem:[#allocation3 + $0x60] sm:$0xff] }
  0xf7   :  { %v3026_v24 = vpop.permute.xlu1 %3025  ;;  %v819_v26 = vpack.c.bf16 %v803_v45, %v802_v35  ;;  %v815_v20 = vpack.c.bf16 %v799_v13, %v798_v52  ;;  %v993_v35 = vshrl.u32 %v977_v50, 16 }
  0xf8   :  { %v3028_v48 = vunpack.i.h.bf16 %v3026_v24  ;;  %v3027_v22 = vunpack.i.l.bf16 %v3026_v24 }
  0xf9   :  { %905 = vmatpush.bf16.msra.mxu1 %v819_v26  ;;  %v1009_v45 = vxor.u32 %v993_v35, %v977_v50  ;;  %v839_v26 = vld [vmem:[#allocation3 + $0x58] sm:$0xff]  ;;  %v841_v50 = vld [vmem:[#allocation3 + $0x68] sm:$0xff]  ;;  %v980_v35 = vxor.u32 13107, %v3308_v27 }
  0xfa   :  { %v800_v30 = vmul.f32 %v3027_v22, %v3483_v44  ;;  %v801_v47 = vmul.f32 %v3028_v48, %v3485_v43  ;;  %v979_v48 = vxor.u32 13107, %v3324_v33 }
  0xfb   :  { %v1025_v34 = vmul.u32 73244475, %v1009_v45  ;;  %v3531_v45 = vsel %vm100_vm0, 1.0, %v5128_v16  ;;  %vm93_vm0 = vcmp.eq.s32.totalorder %v3355_v37, %v3260_v3  ;;  %v971_v37 = vxor.u32 13107, %v3391_v62 }
  0xfc   :  { %v817_v1 = vpack.c.bf16 %v801_v47, %v800_v30  ;;  %v978_v30 = vxor.u32 13107, %v3321_v32  ;;  %v995_v59 = vshrl.u32 %v979_v48, 16  ;;  %5129 = vst [vmem:[#allocation30_spill] sm:$0xff] %v3531_v45 }
  0xfe   :  { %906 = vmatpush.bf16.msra.mxu1 %v817_v1  ;;  %v994_v52 = vshrl.u32 %v978_v30, 16 }
  0xff   :  { %v3036_v55 = vpop.permute.xlu0 %3035 }
 0x100   :  { %v3038_v14 = vunpack.i.h.bf16 %v3036_v55  ;;  %v3037_v21 = vunpack.i.l.bf16 %v3036_v55  ;;  %v1011_v55 = vxor.u32 %v995_v59, %v979_v48  ;;  %v996_v48 = vshrl.u32 %v980_v35, 16 }
 0x102   :  { %907 = vmatpush.bf16.msra.mxu1 %v815_v20  ;;  %v796_v25 = vmul.f32 %v3037_v21, %v3495_v0  ;;  %v797_v44 = vmul.f32 %v3038_v14, %v3497_v6  ;;  %v976_v0 = vxor.u32 13107, %v3314_v29  ;;  %v1027_v20 = vmul.u32 73244475, %v1011_v55 }
 0x104   :  { %v813_v43 = vpack.c.bf16 %v797_v44, %v796_v25  ;;  %v992_v6 = vshrl.u32 %v976_v0, 16  ;;  %v1043_v17 = vshrl.u32 %v1027_v20, 16 }
 0x106   :  { %908 = vmatpush.bf16.msra.mxu1 %v813_v43  ;;  %875 = vmatmul.bf16.gmra.mxu0 %v847_v46  ;;  %v1008_v24 = vxor.u32 %v992_v6, %v976_v0  ;;  %v981_v0 = vxor.u32 13107, %v3311_v28  ;;  %v1559_v6 = vxor.u32 17476, %v3412_v49 }
 0x108   :  { %v1024_v40 = vmul.u32 73244475, %v1008_v24 }
 0x109   :  { %909 = vmatmul.bf16.vlgmr.msra.gmra.mxu1 %v844_v60  ;;  %v838_v60 = vld [vmem:[#allocation3 + $0x50] sm:$0xff] }
 0x10a   :  { %v1040_v22 = vshrl.u32 %v1024_v40, 16  ;;  %v3522_v47 = vpack.c.bf16 %v839_v26, %v838_v60  ;;  %v1059_v60 = vxor.u32 %v1043_v17, %v1027_v20  ;;  %v3552_v20 = vsel %vm99_vm4, 1.0, %v5128_v16 }
 0x10b   :  { %5131 = vst [vmem:[#allocation32_spill] sm:$0xff] %v3552_v20 }
 0x10c   :  { %v1056_v1 = vxor.u32 %v1040_v22, %v1024_v40  ;;  %v1575_v22 = vshrl.u32 %v1559_v6, 16 }
 0x10e   :  { %v1072_v14 = vmul.u32 73244475, %v1056_v1  ;;  %v842_v1 = vld [vmem:[#allocation3 + $0x70] sm:$0xff] }
 0x110   :  { %v1088_v25 = vshrl.u32 %v1072_v14, 16 }
 0x112   :  { %v1104_v15 = vxor.u32 %v1088_v25, %v1072_v14 }
 0x114   :  { %v1120_v26 = vshrl.u32 %v1104_v15, 8  ;;  %v3561_v15 = vsel %vm101_vm5, 1.0, %v5128_v16  ;;  %vm97_vm5 = vcmp.eq.s32.totalorder %v3287_v11, %v3260_v3 }
 0x115   :  { %5133 = vst [vmem:[#allocation34_spill] sm:$0xff] %v3561_v15 }
 0x116   :  { %880 = vmatmul.bf16.gmra.mxu0 %v3515_v41  ;;  %vm1136_vm2 = vcmp.ge.s32.totalorder %v1120_v26, 3355443  ;;  %v1012_v26 = vxor.u32 %v996_v48, %v980_v35 }
 0x119   :  { %914 = vmatmul.bf16.gmra.mxu1 %v845_v12  ;;  %v1041_v12 = vshrl.u32 %v1025_v34, 16 }
 0x11b   :  { %v1057_v53 = vxor.u32 %v1041_v12, %v1025_v34  ;;  %v3533_v34 = vld [vmem:[#allocation6 + $0x58] sm:$0xff]  ;;  %v997_v12 = vshrl.u32 %v981_v0, 16 }
 0x11d   :  { %v1073_v13 = vmul.u32 73244475, %v1057_v53  ;;  %v1075_v53 = vmul.u32 73244475, %v1059_v60 }
 0x11f   :  { %v1089_v21 = vshrl.u32 %v1073_v13, 16 }
 0x121   :  { %v1105_v43 = vxor.u32 %v1089_v21, %v1073_v13  ;;  %v2789_v13 = vsel %vm1136_vm2, 1.0, %v5128_v16  ;;  %v3549_v21 = vld [vmem:[#allocation6 + $0x50] sm:$0xff] }
 0x122   :  { %v1184_v25 = vmul.f32 %v2789_v13, %v3549_v21 }
 0x123   :  { %v1121_v24 = vshrl.u32 %v1105_v43, 8 }
 0x125   :  { %vm1137_vm1 = vcmp.ge.s32.totalorder %v1121_v24, 3355443  ;;  %v1013_v24 = vxor.u32 %v997_v12, %v981_v0  ;;  %v1560_v0 = vxor.u32 17476, %v3415_v54  ;;  %v1028_v12 = vmul.u32 73244475, %v1012_v26 }
 0x126   :  { %885 = vmatmul.bf16.gmra.mxu0 %v3522_v47  ;;  %v2790_v59 = vsel %vm1137_vm1, 1.0, %v5128_v16 }
 0x127   :  { %v1185_v55 = vmul.f32 %v2790_v59, %v3533_v34 }
 0x129   :  { %919 = vmatmul.bf16.gmra.mxu1 %v846_v63  ;;  %v1010_v63 = vxor.u32 %v994_v52, %v978_v30  ;;  %v3535_v30 = vpack.c.bf16 %v841_v50, %v840_v18  ;;  %v843_v52 = vld [vmem:[#allocation3 + $0x78] sm:$0xff]  ;;  %v3558_v43 = vmax.f32 %v1185_v55, %v3531_v45  ;;  %v3569_v50 = vsel %vm104_vm6, 1.0, %v5128_v16 }
 0x12a   :  { %v3544_v14 = vpack.c.bf16 %v843_v52, %v842_v1  ;;  %5135 = vst [vmem:[#allocation36_spill] sm:$0xff] %v3569_v50  ;;  %v1029_v1 = vmul.u32 73244475, %v1013_v24  ;;  %v3579_v52 = vsel %vm103_vm7, 1.0, %v5128_v16  ;;  %v1591_v55 = vxor.u32 %v1575_v22, %v1559_v6 }
 0x12b   :  { %v1026_v44 = vmul.u32 73244475, %v1010_v63  ;;  %v3547_v63 = vsel %vm102_vm3, 1.0, %v5128_v16  ;;  %5132 = vst [vmem:[#allocation33_spill] sm:$0xff] %v3558_v43  ;;  %1228 = vadd.xlane.f32.xlu2 %v3558_v43  ;;  %vm92_vm3 = vcmp.eq.s32.totalorder %v3371_v51, %v3260_v3 }
 0x12c   :  { %5130 = vst [vmem:[#allocation31_spill] sm:$0xff] %v3547_v63  ;;  %v1607_v7 = vmul.u32 73244475, %v1591_v55 }
 0x12d   :  { %v1042_v36 = vshrl.u32 %v1026_v44, 16  ;;  %5136 = vst [vmem:[#allocation37_spill] sm:$0xff] %v3579_v52 }
 0x12e   :  { %v1623_v5 = vshrl.u32 %v1607_v7, 16 }
 0x12f   :  { %v1058_v40 = vxor.u32 %v1042_v36, %v1026_v44  ;;  %v3566_v36 = vmax.f32 %v1184_v25, %v3552_v20  ;;  %v1576_v25 = vshrl.u32 %v1560_v0, 16 }
 0x131   :  { %v1074_v44 = vmul.u32 73244475, %v1058_v40  ;;  %5134 = vst [vmem:[#allocation35_spill] sm:$0xff] %v3566_v36  ;;  %v1561_v40 = vxor.u32 17476, %v3401_v19  ;;  %1226 = vadd.xlane.f32.xlu1 %v3566_v36  ;;  %v987_v36 = vshrl.u32 %v971_v37, 16 }
 0x133   :  { %v1090_v18 = vshrl.u32 %v1074_v44, 16  ;;  %v1577_v13 = vshrl.u32 %v1561_v40, 16 }
 0x135   :  { %v1106_v59 = vxor.u32 %v1090_v18, %v1074_v44  ;;  %v3585_v44 = vld [vmem:[#allocation6 + $0x60] sm:$0xff]  ;;  %v1044_v18 = vshrl.u32 %v1028_v12, 16  ;;  %v1593_v24 = vxor.u32 %v1577_v13, %v1561_v40 }
 0x136   :  { %890 = vmatmul.bf16.gmra.mxu0 %v3535_v30 }
 0x137   :  { %v1122_v48 = vshrl.u32 %v1106_v59, 8  ;;  %v1060_v59 = vxor.u32 %v1044_v18, %v1028_v12  ;;  %v1609_v9 = vmul.u32 73244475, %v1593_v24  ;;  %v1639_v12 = vxor.u32 %v1623_v5, %v1607_v7 }
 0x138   :  { %v3609_v7 = vsel %vm90_vm11, 1.0, %v5128_v16 }
 0x139   :  { %924 = vmatmul.bf16.gmra.mxu1 %v847_v46  ;;  %v1091_v46 = vshrl.u32 %v1075_v53, 16  ;;  %vm1138_vm9 = vcmp.ge.s32.totalorder %v1122_v48, 3355443  ;;  %v1076_v40 = vmul.u32 73244475, %v1060_v59  ;;  %v1625_v13 = vshrl.u32 %v1609_v9, 16 }
 0x13a   :  { %v2791_v22 = vsel %vm1138_vm9, 1.0, %v5128_v16  ;;  %5140 = vst [vmem:[#allocation41_spill] sm:$0xff] %v3609_v7 }
 0x13b   :  { %v1107_v17 = vxor.u32 %v1091_v46, %v1075_v53  ;;  %v3575_v53 = vld [vmem:[#allocation6 + $0x68] sm:$0xff]  ;;  %v1045_v46 = vshrl.u32 %v1029_v1, 16  ;;  %v1186_v10 = vmul.f32 %v2791_v22, %v3585_v44  ;;  %v3606_v22 = vsel %vm91_vm10, 1.0, %v5128_v16 }
 0x13c   :  { %5139 = vst [vmem:[#allocation40_spill] sm:$0xff] %v3606_v22 }
 0x13d   :  { %v1123_v60 = vshrl.u32 %v1107_v17, 8  ;;  %v1061_v8 = vxor.u32 %v1045_v46, %v1029_v1  ;;  %v1564_v1 = vxor.u32 17476, %v3391_v62  ;;  %v3597_v55 = vmax.f32 %v1186_v10, %v3561_v15 }
 0x13e   :  { %v1655_v10 = vmul.u32 73244475, %v1639_v12  ;;  %v3616_v12 = vsel %vm89_vm12, 1.0, %v5128_v16 }
 0x13f   :  { %vm1139_vm8 = vcmp.ge.s32.totalorder %v1123_v60, 3355443  ;;  %v1592_v60 = vxor.u32 %v1576_v25, %v1560_v0  ;;  %v1563_v0 = vxor.u32 17476, %v3388_v61  ;;  %5138 = vst [vmem:[#allocation39_spill] sm:$0xff] %v3597_v55  ;;  %v1092_v25 = vshrl.u32 %v1076_v40, 16  ;;  %1230 = vadd.xlane.f32.xlu0 %v3597_v55 }
 0x140   :  { %v2792_v35 = vsel %vm1139_vm8, 1.0, %v5128_v16  ;;  %v1580_v18 = vshrl.u32 %v1564_v1, 16  ;;  %v1671_v59 = vshrl.u32 %v1655_v10, 16  ;;  %5142 = vst [vmem:[#allocation43_spill] sm:$0xff] %v3616_v12 }
 0x141   :  { %v1187_v17 = vmul.f32 %v2792_v35, %v3575_v53  ;;  %v1077_v35 = vmul.u32 73244475, %v1061_v8  ;;  %v1608_v4 = vmul.u32 73244475, %v1592_v60  ;;  %v1579_v8 = vshrl.u32 %v1563_v0, 16 }
 0x142   :  { %v1108_v60 = vxor.u32 %v1092_v25, %v1076_v40  ;;  %v3620_v40 = vld [vmem:[#allocation6 + $0x70] sm:$0xff] }
 0x143   :  { %v3589_v6 = vmax.f32 %v1187_v17, %v3547_v63  ;;  %v1093_v48 = vshrl.u32 %v1077_v35, 16  ;;  %v1624_v46 = vshrl.u32 %v1608_v4, 16  ;;  %v1641_v17 = vxor.u32 %v1625_v13, %v1609_v9 }
 0x144   :  { %v1124_v13 = vshrl.u32 %v1108_v60, 8  ;;  %v1596_v60 = vxor.u32 %v1580_v18, %v1564_v1  ;;  %v3637_v1 = vld [vmem:[#allocation6 + $0x10] sm:$0xff] }
 0x145   :  { %5137 = vst [vmem:[#allocation38_spill] sm:$0xff] %v3589_v6  ;;  %1232 = vadd.xlane.f32.xlu2 %v3589_v6  ;;  %v1109_v24 = vxor.u32 %v1093_v48, %v1077_v35  ;;  %v1657_v5 = vmul.u32 73244475, %v1641_v17  ;;  %v3613_v35 = vld [vmem:[#allocation6 + $0x78] sm:$0xff]  ;;  %v1687_v17 = vxor.u32 %v1671_v59, %v1655_v10  ;;  %v3629_v6 = vld [vmem:[#allocation6] sm:$0xff] }
 0x146   :  { %5141 = vst [vmem:[#allocation42_spill] sm:$0xff] %v3613_v35  ;;  %vm1140_vm15 = vcmp.ge.s32.totalorder %v1124_v13, 3355443  ;;  %v1612_v10 = vmul.u32 73244475, %v1596_v60  ;;  %895 = vmatmul.bf16.gmra.mxu0 %v3544_v14 }
 0x147   :  { %v1125_v9 = vshrl.u32 %v1109_v24, 8  ;;  %v1673_v48 = vshrl.u32 %v1657_v5, 16  ;;  %v2793_v2 = vsel %vm1140_vm15, 1.0, %v5128_v16  ;;  %v1703_v39 = vshrl.u32 %v1687_v17, 8  ;;  %5145 = vst [vmem:[#allocation46_spill] sm:$0xff] %v3637_v1 }
 0x148   :  { %v1628_v13 = vshrl.u32 %v1612_v10, 16 }
 0x149   :  { %929 = vmatmul.bf16.gmra.mxu1 %v3515_v41  ;;  %v1640_v41 = vxor.u32 %v1624_v46, %v1608_v4  ;;  %vm1141_vm14 = vcmp.ge.s32.totalorder %v1125_v9, 3355443  ;;  %v3623_v4 = vsel %vm94_vm13, 1.0, %v5128_v16  ;;  %v1689_v24 = vxor.u32 %v1673_v48, %v1657_v5 }
 0x14a   :  { %5143 = vst [vmem:[#allocation44_spill] sm:$0xff] %v3623_v4  ;;  %v2794_v46 = vsel %vm1141_vm14, 1.0, %v5128_v16  ;;  %v1188_v9 = vmul.f32 %v2793_v2, %v3620_v40  ;;  %vm1719_vm1 = vcmp.ge.s32.totalorder %v1703_v39, 3355443 }
 0x14b   :  { %v1656_v25 = vmul.u32 73244475, %v1640_v41  ;;  %v1189_v26 = vmul.f32 %v2794_v46, %v3613_v35  ;;  %v1705_v38 = vshrl.u32 %v1689_v24, 8  ;;  %v3640_v41 = vsel %vm93_vm0, 1.0, %v5128_v16 }
 0x14c   :  { %5146 = vst [vmem:[#allocation47_spill] sm:$0xff] %v3640_v41  ;;  %v3643_v2 = vmax.f32 %v1188_v9, %v3579_v52  ;;  %v2795_v59 = vsel %vm1719_vm1, 1.0, %v5128_v16  ;;  %v1595_v46 = vxor.u32 %v1579_v8, %v1563_v0  ;;  %v3661_v0 = vsel %vm92_vm3, 1.0, %v5128_v16 }
 0x14d   :  { %v1672_v56 = vshrl.u32 %v1656_v25, 16  ;;  %v3635_v5 = vmax.f32 %v1189_v26, %v3569_v50  ;;  %vm1721_vm2 = vcmp.ge.s32.totalorder %v1705_v38, 3355443  ;;  %v1767_v17 = vmul.f32 %v2795_v59, %v3629_v6  ;;  %5150 = vst [vmem:[#allocation50_spill] sm:$0xff] %v3661_v0 }
 0x14e   :  { %5147 = vst [vmem:[#allocation48_spill] sm:$0xff] %v3643_v2  ;;  %v2797_v48 = vsel %vm1721_vm2, 1.0, %v5128_v16  ;;  %1234 = vadd.xlane.f32.xlu1 %v3643_v2  ;;  %v5148_v38 = vxor.u32 17476, %v3404_v23  ;;  %v1611_v9 = vmul.u32 73244475, %v1595_v46  ;;  %v1566_v46 = vxor.u32 17476, %v3383_v58 }
 0x14f   :  { %5144 = vst [vmem:[#allocation45_spill] sm:$0xff] %v3635_v5  ;;  %v1688_v18 = vxor.u32 %v1672_v56, %v1656_v25  ;;  %1236 = vadd.xlane.f32.xlu2 %v3635_v5  ;;  %v1769_v39 = vmul.f32 %v2797_v48, %v3637_v1  ;;  %v3651_v56 = vld [vmem:[#allocation6 + $0x8] sm:$0xff]  ;;  %v1644_v25 = vxor.u32 %v1628_v13, %v1612_v10  ;;  %v970_v1 = vxor.u32 13107, %v3388_v61 }
 0x150   :  { %v1578_v24 = vshrl.u32 %v5148_v38, 16  ;;  %v3658_v60 = vmax.f32 %v1767_v17, %v3616_v12  ;;  %v5152_v59 = vmov %v5148_v38  ;;  %v1567_v17 = vxor.u32 17476, %v3335_v42  ;;  %v3693_v5 = vld [vmem:[#allocation6 + $0x28] sm:$0xff] }
 0x151   :  { %v1704_v26 = vshrl.u32 %v1688_v18, 8  ;;  %v3664_v8 = vmax.f32 %v1769_v39, %v3606_v22  ;;  %v1660_v10 = vmul.u32 73244475, %v1644_v25  ;;  %v1565_v39 = vxor.u32 17476, %v3380_v57 }
 0x152   :  { %5149 = vst [vmem:[#allocation49_spill] sm:$0xff] %v3658_v60  ;;  %v1594_v13 = vxor.u32 %v1578_v24, %v5152_v59  ;;  %1799 = vadd.xlane.f32.xlu0 %v3658_v60  ;;  %v3682_v60 = vsel %vm97_vm5, 1.0, %v5128_v16  ;;  %v1003_v22 = vxor.u32 %v987_v36, %v971_v37 }
 0x153   :  { %vm1720_vm4 = vcmp.ge.s32.totalorder %v1704_v26, 3355443  ;;  %5151 = vst [vmem:[#allocation51_spill] sm:$0xff] %v3664_v8  ;;  %v1627_v26 = vshrl.u32 %v1611_v9, 16  ;;  %v1676_v38 = vshrl.u32 %v1660_v10, 16 }
 0x154   :  { %v2796_v18 = vsel %vm1720_vm4, 1.0, %v5128_v16  ;;  %v1610_v51 = vmul.u32 73244475, %v1594_v13  ;;  %5154 = vst [vmem:[#allocation53_spill] sm:$0xff] %v3682_v60  ;;  %v5155_v13 = vld [vmem:[#allocation24_spill] sm:$0xff] }
 0x155   :  { %v1768_v48 = vmul.f32 %v2796_v18, %v3651_v56  ;;  %v1643_v24 = vxor.u32 %v1627_v26, %v1611_v9  ;;  %v1583_v18 = vshrl.u32 %v1567_v17, 16  ;;  %v1692_v59 = vxor.u32 %v1676_v38, %v1660_v10  ;;  %v5157_v10 = vld [vmem:[#allocation23_spill] sm:$0xff] }
 0x156   :  { %v1626_v55 = vshrl.u32 %v1610_v51, 16  ;;  %vm96_vm6 = vcmp.eq.s32.totalorder %v5155_v13, %v3260_v3  ;;  %v1582_v9 = vshrl.u32 %v1566_v46, 16  ;;  %vm95_vm7 = vcmp.eq.s32.totalorder %v5157_v10, %v3260_v3 }
 0x157   :  { %v3677_v25 = vmax.f32 %v1768_v48, %v3609_v7  ;;  %1803 = vadd.xlane.f32.xlu2 %v3664_v8  ;;  %v1659_v62 = vmul.u32 73244475, %v1643_v24  ;;  %v3688_v48 = vsel %vm96_vm6, 1.0, %v5128_v16  ;;  %v1708_v26 = vshrl.u32 %v1692_v59, 8 }
 0x158   :  { %5156 = vst [vmem:[#allocation54_spill] sm:$0xff] %v3688_v48  ;;  %v1642_v11 = vxor.u32 %v1626_v55, %v1610_v51  ;;  %v1581_v38 = vshrl.u32 %v1565_v39, 16  ;;  %v1598_v43 = vxor.u32 %v1582_v9, %v1566_v46  ;;  %v3696_v24 = vsel %vm95_vm7, 1.0, %v5128_v16 }
 0x159   :  { %934 = vmatmul.bf16.gmra.mxu1 %v3522_v47  ;;  %5153 = vst [vmem:[#allocation52_spill] sm:$0xff] %v3677_v25  ;;  %v1599_v47 = vxor.u32 %v1583_v18, %v1567_v17  ;;  %1801 = vadd.xlane.f32.xlu1 %v3677_v25  ;;  %v1675_v2 = vshrl.u32 %v1659_v62, 16  ;;  %v861_v17 = vpop.f32.mrf.mxu0  ;;  %vm1724_vm8 = vcmp.ge.s32.totalorder %v1708_v26, 3355443 }
 0x15a   :  { %5158 = vst [vmem:[#allocation55_spill] sm:$0xff] %v3696_v24  ;;  %v1658_v18 = vmul.u32 73244475, %v1642_v11  ;;  %v1597_v8 = vxor.u32 %v1581_v38, %v1565_v39  ;;  %v2800_v59 = vsel %vm1724_vm8, 1.0, %v5128_v16  ;;  %v1614_v25 = vmul.u32 73244475, %v1598_v43 }
 0x15b   :  { %v1615_v13 = vmul.u32 73244475, %v1599_v47  ;;  %v1691_v51 = vxor.u32 %v1675_v2, %v1659_v62  ;;  %v1772_v10 = vmul.f32 %v2800_v59, %v3693_v5  ;;  %v3704_v11 = vld [vmem:[#allocation6 + $0x20] sm:$0xff]  ;;  %v1019_v2 = vmul.u32 73244475, %v1003_v22 }
 0x15c   :  { %v1674_v50 = vshrl.u32 %v1658_v18, 16  ;;  %v1613_v35 = vmul.u32 73244475, %v1597_v8  ;;  %v1630_v9 = vshrl.u32 %v1614_v25, 16  ;;  %v986_v59 = vshrl.u32 %v970_v1, 16 }
 0x15d   :  { %v1631_v55 = vshrl.u32 %v1615_v13, 16  ;;  %v1707_v47 = vshrl.u32 %v1691_v51, 8  ;;  %v3702_v26 = vmax.f32 %v1772_v10, %v3623_v4  ;;  %v3709_v10 = vld [vmem:[#allocation6 + $0x18] sm:$0xff] }
 0x15e   :  { %v1690_v39 = vxor.u32 %v1674_v50, %v1658_v18  ;;  %v1629_v38 = vshrl.u32 %v1613_v35, 16  ;;  %v1646_v62 = vxor.u32 %v1630_v9, %v1614_v25  ;;  %v1002_v50 = vxor.u32 %v986_v59, %v970_v1  ;;  %v5159_v25 = vld [vmem:[#allocation21_spill] sm:$0xff] }
 0x15f   :  { %v1647_v46 = vxor.u32 %v1631_v55, %v1615_v13  ;;  %vm1723_vm9 = vcmp.ge.s32.totalorder %v1707_v47, 3355443  ;;  %1809 = vadd.xlane.f32.xlu2 %v3702_v26  ;;  %v1035_v13 = vshrl.u32 %v1019_v2, 16  ;;  %vm98_vm11 = vcmp.eq.s32.totalorder %v5159_v25, %v3260_v3 }
 0x160   :  { %v2799_v37 = vsel %vm1723_vm9, 1.0, %v5128_v16  ;;  %v1706_v36 = vshrl.u32 %v1690_v39, 8  ;;  %v1645_v8 = vxor.u32 %v1629_v38, %v1613_v35  ;;  %v1662_v55 = vmul.u32 73244475, %v1646_v62 }
 0x161   :  { %v1663_v43 = vmul.u32 73244475, %v1647_v46  ;;  %v1771_v61 = vmul.f32 %v2799_v37, %v3704_v11  ;;  %v863_v18 = vpop.f32.mrf.mxu0  ;;  %v1051_v47 = vxor.u32 %v1035_v13, %v1019_v2  ;;  %v1018_v59 = vmul.u32 73244475, %v1002_v50 }
 0x162   :  { %vm1722_vm10 = vcmp.ge.s32.totalorder %v1706_v36, 3355443  ;;  %v1661_v22 = vmul.u32 73244475, %v1645_v8  ;;  %v3713_v46 = vpack.c.bf16 %v863_v18, %v861_v17  ;;  %v1678_v37 = vshrl.u32 %v1662_v55, 16  ;;  %v5163_v17 = vld [vmem:[#allocation22_spill] sm:$0xff] }
 0x163   :  { %v1679_v51 = vshrl.u32 %v1663_v43, 16  ;;  %v3716_v9 = vmax.f32 %v1771_v61, %v3640_v41  ;;  %v2798_v35 = vsel %vm1722_vm10, 1.0, %v5128_v16  ;;  %v1067_v1 = vmul.u32 73244475, %v1051_v47 }
 0x164   :  { %5160 = vst [vmem:[#allocation56_spill] sm:$0xff] %v3713_v46  ;;  %v1770_v38 = vmul.f32 %v2798_v35, %v3709_v10  ;;  %v1677_v62 = vshrl.u32 %v1661_v22, 16  ;;  %v3723_v3 = vsel %vm98_vm11, 1.0, %v5128_v16  ;;  %v1568_v36 = vxor.u32 17476, %v5163_v17  ;;  %v3735_v46 = vld [vmem:[#allocation6 + $0x38] sm:$0xff] }
 0x165   :  { %5161 = vst [vmem:[#allocation57_spill] sm:$0xff] %v3716_v9  ;;  %v1695_v39 = vxor.u32 %v1679_v51, %v1663_v43  ;;  %1807 = vadd.xlane.f32.xlu1 %v3716_v9  ;;  %v3729_v43 = vld [vmem:[#allocation6 + $0x40] sm:$0xff]  ;;  %v1694_v13 = vxor.u32 %v1678_v37, %v1662_v55  ;;  %v1083_v51 = vshrl.u32 %v1067_v1, 16  ;;  %v1034_v18 = vshrl.u32 %v1018_v59, 16  ;;  %v3737_v9 = vld [vmem:[#allocation6 + $0x30] sm:$0xff] }
 0x166   :  { %5162 = vst [vmem:[#allocation58_spill] sm:$0xff] %v3723_v3  ;;  %v3727_v8 = vmax.f32 %v1770_v38, %v3661_v0  ;;  %v1693_v61 = vxor.u32 %v1677_v62, %v1661_v22  ;;  %v1569_v47 = vxor.u32 17476, %v3314_v29 }
 0x167   :  { %v1711_v2 = vshrl.u32 %v1695_v39, 8  ;;  %v1710_v35 = vshrl.u32 %v1694_v13, 8  ;;  %v1099_v25 = vxor.u32 %v1083_v51, %v1067_v1  ;;  %v1050_v55 = vxor.u32 %v1034_v18, %v1018_v59 }
 0x168   :  { %5164 = vst [vmem:[#allocation22_spill] sm:$0xff] %v3727_v8  ;;  %1805 = vadd.xlane.f32.xlu0 %v3727_v8  ;;  %v1709_v39 = vshrl.u32 %v1693_v61, 8  ;;  %v1585_v37 = vshrl.u32 %v1569_v47, 16 }
 0x169   :  { %939 = vmatmul.bf16.gmra.mxu1 %v3535_v30  ;;  %vm1727_vm12 = vcmp.ge.s32.totalorder %v1711_v2, 3355443  ;;  %v1584_v30 = vshrl.u32 %v1568_v36, 16  ;;  %v866_v62 = vpop.f32.mrf.mxu0  ;;  %vm1726_vm13 = vcmp.ge.s32.totalorder %v1710_v35, 3355443  ;;  %v1115_v29 = vshrl.u32 %v1099_v25, 8 }
 0x16a   :  { %v2803_v50 = vsel %vm1727_vm12, 1.0, %v5128_v16  ;;  %vm1725_vm14 = vcmp.ge.s32.totalorder %v1709_v39, 3355443  ;;  %v972_v2 = vxor.u32 13107, %v3380_v57  ;;  %v2802_v1 = vsel %vm1726_vm13, 1.0, %v5128_v16 }
 0x16b   :  { %v1775_v38 = vmul.f32 %v2803_v50, %v3729_v43  ;;  %v1600_v22 = vxor.u32 %v1584_v30, %v1568_v36  ;;  %v2801_v13 = vsel %vm1725_vm14, 1.0, %v5128_v16  ;;  %v1066_v61 = vmul.u32 73244475, %v1050_v55 }
 0x16c   :  { %v1774_v51 = vmul.f32 %v2802_v1, %v3735_v46  ;;  %v1773_v59 = vmul.f32 %v2801_v13, %v3737_v9  ;;  %vm1131_vm15 = vcmp.ge.s32.totalorder %v1115_v29, 3355443  ;;  %v1601_v57 = vxor.u32 %v1585_v37, %v1569_v47 }
 0x16d   :  { %v3741_v8 = vmax.f32 %v1775_v38, %v3682_v60  ;;  %v1616_v36 = vmul.u32 73244475, %v1600_v22  ;;  %v2784_v25 = vsel %vm1131_vm15, 1.0, %v5128_v16  ;;  %v1082_v18 = vshrl.u32 %v1066_v61, 16 }
 0x16e   :  { %v988_v30 = vshrl.u32 %v972_v2, 16  ;;  %v3750_v50 = vmax.f32 %v1774_v51, %v3688_v48  ;;  %v3753_v35 = vmax.f32 %v1773_v59, %v3696_v24  ;;  %v1179_v39 = vmul.f32 %v2784_v25, %v3693_v5 }
 0x16f   :  { %5165 = vst [vmem:[#allocation59_spill] sm:$0xff] %v3741_v8  ;;  %1815 = vadd.xlane.f32.xlu2 %v3741_v8  ;;  %v1632_v38 = vshrl.u32 %v1616_v36, 16  ;;  %v1098_v55 = vxor.u32 %v1082_v18, %v1066_v61  ;;  %v1617_v1 = vmul.u32 73244475, %v1601_v57  ;;  %v1570_v22 = vxor.u32 17476, %v3318_v31 }
 0x170   :  { %5166 = vst [vmem:[#allocation60_spill] sm:$0xff] %v3750_v50  ;;  %v1004_v29 = vxor.u32 %v988_v30, %v972_v2  ;;  %1813 = vadd.xlane.f32.xlu1 %v3750_v50  ;;  %1811 = vadd.xlane.f32.xlu0 %v3753_v35  ;;  %v3760_v47 = vmax.f32 %v1179_v39, %v3623_v4  ;;  %v973_v13 = vxor.u32 13107, %v3383_v58  ;;  %v1571_v51 = vxor.u32 17476, %v3321_v32 }
 0x171   :  { %5167 = vst [vmem:[#allocation61_spill] sm:$0xff] %v3753_v35  ;;  %v1648_v37 = vxor.u32 %v1632_v38, %v1616_v36  ;;  %v1114_v59 = vshrl.u32 %v1098_v55, 8  ;;  %v1633_v5 = vshrl.u32 %v1617_v1, 16  ;;  %v1586_v61 = vshrl.u32 %v1570_v22, 16  ;;  %v868_v18 = vpop.f32.mrf.mxu0 }
 0x172   :  { %v1020_v25 = vmul.u32 73244475, %v1004_v29  ;;  %v989_v57 = vshrl.u32 %v973_v13, 16  ;;  %v1587_v31 = vshrl.u32 %v1571_v51, 16  ;;  %v1572_v30 = vxor.u32 17476, %v3324_v33 }
 0x173   :  { %v1664_v2 = vmul.u32 73244475, %v1648_v37  ;;  %v3765_v8 = vpack.c.bf16 %v868_v18, %v866_v62  ;;  %vm1130_vm0 = vcmp.ge.s32.totalorder %v1114_v59, 3355443  ;;  %v1649_v39 = vxor.u32 %v1633_v5, %v1617_v1 }
 0x174   :  { %v1036_v4 = vshrl.u32 %v1020_v25, 16  ;;  %v2783_v36 = vsel %vm1130_vm0, 1.0, %v5128_v16  ;;  %v1602_v38 = vxor.u32 %v1586_v61, %v1570_v22  ;;  %v1005_v32 = vxor.u32 %v989_v57, %v973_v13 }
 0x175   :  { %v1680_v58 = vshrl.u32 %v1664_v2, 16  ;;  %v1178_v55 = vmul.f32 %v2783_v36, %v3704_v11  ;;  %v1665_v29 = vmul.u32 73244475, %v1649_v39  ;;  %v1603_v35 = vxor.u32 %v1587_v31, %v1571_v51  ;;  %v3775_v11 = vld [vmem:[#allocation6 + $0x48] sm:$0xff] }
 0x176   :  { %v1052_v37 = vxor.u32 %v1036_v4, %v1020_v25  ;;  %v1618_v62 = vmul.u32 73244475, %v1602_v38  ;;  %v1021_v18 = vmul.u32 73244475, %v1005_v32  ;;  %v1588_v59 = vshrl.u32 %v1572_v30, 16 }
 0x177   :  { %1216 = vadd.xlane.f32.xlu2 %v3760_v47  ;;  %v1696_v33 = vxor.u32 %v1680_v58, %v1664_v2  ;;  %v3772_v1 = vmax.f32 %v1178_v55, %v3640_v41  ;;  %v1681_v5 = vshrl.u32 %v1665_v29, 16  ;;  %v1619_v22 = vmul.u32 73244475, %v1603_v35 }
 0x178   :  { %v1068_v50 = vmul.u32 73244475, %v1052_v37  ;;  %v1634_v61 = vshrl.u32 %v1618_v62, 16  ;;  %v1604_v57 = vxor.u32 %v1588_v59, %v1572_v30  ;;  %v974_v2 = vxor.u32 13107, %v3335_v42 }
 0x179   :  { %944 = vmatmul.bf16.gmra.mxu1 %v3544_v14  ;;  %v1712_v13 = vshrl.u32 %v1696_v33, 8  ;;  %v1037_v14 = vshrl.u32 %v1021_v18, 16  ;;  %1214 = vadd.xlane.f32.xlu1 %v3772_v1  ;;  %v1697_v4 = vxor.u32 %v1681_v5, %v1665_v29  ;;  %v1635_v25 = vshrl.u32 %v1619_v22, 16  ;;  %v871_v31 = vpop.f32.mrf.mxu0 }
 0x17a   :  { %v1084_v51 = vshrl.u32 %v1068_v50, 16  ;;  %v1650_v39 = vxor.u32 %v1634_v61, %v1618_v62  ;;  %v1620_v58 = vmul.u32 73244475, %v1604_v57  ;;  %v990_v41 = vshrl.u32 %v974_v2, 16 }
 0x17b   :  { %vm1728_vm1 = vcmp.ge.s32.totalorder %v1712_v13, 3355443  ;;  %v1053_v36 = vxor.u32 %v1037_v14, %v1021_v18  ;;  %v1713_v38 = vshrl.u32 %v1697_v4, 8  ;;  %v1651_v55 = vxor.u32 %v1635_v25, %v1619_v22 }
 0x17c   :  { %v2804_v35 = vsel %vm1728_vm1, 1.0, %v5128_v16  ;;  %v1100_v32 = vxor.u32 %v1084_v51, %v1068_v50  ;;  %v1666_v37 = vmul.u32 73244475, %v1650_v39  ;;  %v1636_v59 = vshrl.u32 %v1620_v58, 16 }
 0x17d   :  { %v1776_v30 = vmul.f32 %v2804_v35, %v3775_v11  ;;  %v1069_v33 = vmul.u32 73244475, %v1053_v36  ;;  %vm1729_vm2 = vcmp.ge.s32.totalorder %v1713_v38, 3355443  ;;  %v1667_v5 = vmul.u32 73244475, %v1651_v55 }
 0x17e   :  { %v1116_v29 = vshrl.u32 %v1100_v32, 8  ;;  %v2805_v62 = vsel %vm1729_vm2, 1.0, %v5128_v16  ;;  %v1682_v18 = vshrl.u32 %v1666_v37, 16  ;;  %v1652_v22 = vxor.u32 %v1636_v59, %v1620_v58 }
 0x17f   :  { %v3781_v42 = vmax.f32 %v1776_v30, %v3723_v3  ;;  %v1085_v13 = vshrl.u32 %v1069_v33, 16  ;;  %v1777_v61 = vmul.f32 %v2805_v62, %v3549_v21  ;;  %v1683_v50 = vshrl.u32 %v1667_v5, 16 }
 0x180   :  { %vm1132_vm3 = vcmp.ge.s32.totalorder %v1116_v29, 3355443  ;;  %v1698_v57 = vxor.u32 %v1682_v18, %v1666_v37  ;;  %v1006_v51 = vxor.u32 %v990_v41, %v974_v2  ;;  %v1668_v35 = vmul.u32 73244475, %v1652_v22 }
 0x181   :  { %1817 = vadd.xlane.f32.xlu0 %v3781_v42  ;;  %v2785_v14 = vsel %vm1132_vm3, 1.0, %v5128_v16  ;;  %v1101_v4 = vxor.u32 %v1085_v13, %v1069_v33  ;;  %v3788_v25 = vmax.f32 %v1777_v61, %v3552_v20  ;;  %v1699_v36 = vxor.u32 %v1683_v50, %v1667_v5  ;;  %v873_v21 = vpop.f32.mrf.mxu0 }
 0x182   :  { %v1180_v39 = vmul.f32 %v2785_v14, %v3737_v9  ;;  %v1714_v32 = vshrl.u32 %v1698_v57, 8  ;;  %v1022_v58 = vmul.u32 73244475, %v1006_v51  ;;  %v975_v30 = vxor.u32 13107, %v5163_v17 }
 0x183   :  { %v1117_v55 = vshrl.u32 %v1101_v4, 8  ;;  %v3794_v59 = vpack.c.bf16 %v873_v21, %v871_v31  ;;  %v1715_v41 = vshrl.u32 %v1699_v36, 8  ;;  %v1684_v2 = vshrl.u32 %v1668_v35, 16 }
 0x184   :  { %v3797_v37 = vmax.f32 %v1180_v39, %v3696_v24  ;;  %vm1730_vm4 = vcmp.ge.s32.totalorder %v1714_v32, 3355443  ;;  %v1038_v9 = vshrl.u32 %v1022_v58, 16  ;;  %v991_v33 = vshrl.u32 %v975_v30, 16 }
 0x185   :  { %vm1133_vm5 = vcmp.ge.s32.totalorder %v1117_v55, 3355443  ;;  %v2806_v29 = vsel %vm1730_vm4, 1.0, %v5128_v16  ;;  %vm1731_vm6 = vcmp.ge.s32.totalorder %v1715_v41, 3355443  ;;  %v1700_v62 = vxor.u32 %v1684_v2, %v1668_v35 }
 0x186   :  { %v3791_v38 = vpop.f32.mrf.mxu1  ;;  %1218 = vadd.xlane.f32.xlu2 %v3797_v37  ;;  %v2786_v5 = vsel %vm1133_vm5, 1.0, %v5128_v16  ;;  %v1778_v17 = vmul.f32 %v2806_v29, %v3533_v34  ;;  %v2807_v18 = vsel %vm1731_vm6, 1.0, %v5128_v16  ;;  %v1054_v13 = vxor.u32 %v1038_v9, %v1022_v58 }
 0x187   :  { %5168 = vst [vmem:[#allocation62_spill] sm:$0xff] %v3791_v38  ;;  %v1181_v31 = vmul.f32 %v2786_v5, %v3735_v46  ;;  %v1779_v61 = vmul.f32 %v2807_v18, %v3585_v44  ;;  %v1716_v50 = vshrl.u32 %v1700_v62, 8  ;;  %v1007_v22 = vxor.u32 %v991_v33, %v975_v30 }
 0x188   :  { %v967_v14 = vxor.u32 13107, %v3415_v54  ;;  %v3809_v57 = vmax.f32 %v1778_v17, %v3531_v45  ;;  %v1070_v34 = vmul.u32 73244475, %v1054_v13  ;;  %v966_v46 = vxor.u32 13107, %v3412_v49 }
 0x189   :  { %1819 = vadd.xlane.f32.xlu0 %v3788_v25  ;;  %v3812_v4 = vmax.f32 %v1181_v31, %v3688_v48  ;;  %v3816_v51 = vmax.f32 %v1779_v61, %v3561_v15  ;;  %vm1732_vm7 = vcmp.ge.s32.totalorder %v1716_v50, 3355443  ;;  %v1023_v44 = vmul.u32 73244475, %v1007_v22  ;;  %v876_v54 = vpop.f32.mrf.mxu0 }
 0x18a   :  { %v983_v39 = vshrl.u32 %v967_v14, 16  ;;  %1821 = vadd.xlane.f32.xlu1 %v3809_v57  ;;  %v2808_v35 = vsel %vm1732_vm7, 1.0, %v5128_v16  ;;  %v1086_v21 = vshrl.u32 %v1070_v34, 16  ;;  %v982_v32 = vshrl.u32 %v966_v46, 16 }
 0x18b   :  { %5169 = vst [vmem:[#allocation63_spill] sm:$0xff] %v3816_v51  ;;  %v1573_v55 = vxor.u32 17476, %v3308_v27  ;;  %v1780_v58 = vmul.f32 %v2808_v35, %v3575_v53  ;;  %v1039_v30 = vshrl.u32 %v1023_v44, 16  ;;  %v969_v29 = vxor.u32 13107, %v3404_v23 }
 0x18c   :  { %v999_v41 = vxor.u32 %v983_v39, %v967_v14  ;;  %v1102_v2 = vxor.u32 %v1086_v21, %v1070_v34  ;;  %v998_v9 = vxor.u32 %v982_v32, %v966_v46  ;;  %v968_v31 = vxor.u32 13107, %v3401_v19 }
 0x18d   :  { %v1589_v33 = vshrl.u32 %v1573_v55, 16  ;;  %v3828_v5 = vmax.f32 %v1780_v58, %v3547_v63  ;;  %v1055_v62 = vxor.u32 %v1039_v30, %v1023_v44  ;;  %v985_v61 = vshrl.u32 %v969_v29, 16 }
 0x18e   :  { %v3818_v36 = vpop.f32.mrf.mxu1  ;;  %v1015_v17 = vmul.u32 73244475, %v999_v41  ;;  %v1118_v27 = vshrl.u32 %v1102_v2, 8  ;;  %v1014_v18 = vmul.u32 73244475, %v998_v9  ;;  %v984_v22 = vshrl.u32 %v968_v31, 16 }
 0x18f   :  { %5170 = vst [vmem:[#allocation64_spill] sm:$0xff] %v3818_v36  ;;  %v1605_v13 = vxor.u32 %v1589_v33, %v1573_v55  ;;  %1825 = vadd.xlane.f32.xlu2 %v3828_v5  ;;  %v1071_v53 = vmul.u32 73244475, %v1055_v62  ;;  %v1574_v14 = vxor.u32 17476, %v3311_v28  ;;  %v1001_v46 = vxor.u32 %v985_v61, %v969_v29 }
 0x190   :  { %5171 = vst [vmem:[#allocation65_spill] sm:$0xff] %v3828_v5  ;;  %v1031_v50 = vshrl.u32 %v1015_v17, 16  ;;  %vm1134_vm8 = vcmp.ge.s32.totalorder %v1118_v27, 3355443  ;;  %v1030_v23 = vshrl.u32 %v1014_v18, 16  ;;  %v1000_v35 = vxor.u32 %v984_v22, %v968_v31 }
 0x191   :  { %1220 = vadd.xlane.f32.xlu0 %v3812_v4  ;;  %v1621_v34 = vmul.u32 73244475, %v1605_v13  ;;  %v2787_v44 = vsel %vm1134_vm8, 1.0, %v5128_v16  ;;  %v1087_v19 = vshrl.u32 %v1071_v53, 16  ;;  %v878_v55 = vpop.f32.mrf.mxu0  ;;  %v1017_v30 = vmul.u32 73244475, %v1001_v46 }
 0x192   :  { %v1047_v39 = vxor.u32 %v1031_v50, %v1015_v17  ;;  %1823 = vadd.xlane.f32.xlu1 %v3816_v51  ;;  %v1182_v32 = vmul.f32 %v2787_v44, %v3729_v43  ;;  %v1046_v58 = vxor.u32 %v1030_v23, %v1014_v18  ;;  %v3839_v41 = vpack.c.bf16 %v878_v55, %v876_v54 }
 0x193   :  { %v1637_v28 = vshrl.u32 %v1621_v34, 16  ;;  %v1103_v2 = vxor.u32 %v1087_v19, %v1071_v53  ;;  %v1016_v33 = vmul.u32 73244475, %v1000_v35  ;;  %v1033_v31 = vshrl.u32 %v1017_v30, 16 }
 0x194   :  { %v1063_v9 = vmul.u32 73244475, %v1047_v39  ;;  %v3842_v29 = vmax.f32 %v1182_v32, %v3682_v60  ;;  %v1062_v62 = vmul.u32 73244475, %v1046_v58  ;;  %v1590_v50 = vshrl.u32 %v1574_v14, 16 }
 0x195   :  { %v1653_v17 = vxor.u32 %v1637_v28, %v1621_v34  ;;  %v1119_v27 = vshrl.u32 %v1103_v2, 8  ;;  %v1032_v61 = vshrl.u32 %v1016_v33, 16  ;;  %v1049_v18 = vxor.u32 %v1033_v31, %v1017_v30 }
 0x196   :  { %v3835_v21 = vpop.f32.mrf.mxu1  ;;  %5172 = vst [vmem:[#allocation66_spill] sm:$0xff] %v3842_v29  ;;  %v1079_v13 = vshrl.u32 %v1063_v9, 16  ;;  %v1078_v43 = vshrl.u32 %v1062_v62, 16  ;;  %v1606_v46 = vxor.u32 %v1590_v50, %v1574_v14 }
 0x197   :  { %v1669_v22 = vmul.u32 73244475, %v1653_v17  ;;  %vm1135_vm9 = vcmp.ge.s32.totalorder %v1119_v27, 3355443  ;;  %v1048_v54 = vxor.u32 %v1032_v61, %v1016_v33  ;;  %v1065_v39 = vmul.u32 73244475, %v1049_v18 }
 0x198   :  { %v1095_v23 = vxor.u32 %v1079_v13, %v1063_v9  ;;  %v2788_v53 = vsel %vm1135_vm9, 1.0, %v5128_v16  ;;  %v1094_v44 = vxor.u32 %v1078_v43, %v1062_v62  ;;  %v1622_v55 = vmul.u32 73244475, %v1606_v46 }
 0x199   :  { %1222 = vadd.xlane.f32.xlu0 %v3842_v29  ;;  %v1685_v19 = vshrl.u32 %v1669_v22, 16  ;;  %v1183_v34 = vmul.f32 %v2788_v53, %v3775_v11  ;;  %v1064_v32 = vmul.u32 73244475, %v1048_v54  ;;  %v3849_v30 = vpop.f32.mrf.mxu0  ;;  %v1081_v9 = vshrl.u32 %v1065_v39, 16 }
 0x19a   :  { %v1111_v35 = vshrl.u32 %v1095_v23, 8  ;;  %v1110_v28 = vshrl.u32 %v1094_v44, 8  ;;  %v1638_v50 = vshrl.u32 %v1622_v55, 16 }
 0x19b   :  { %v1701_v2 = vxor.u32 %v1685_v19, %v1669_v22  ;;  %v3854_v33 = vmax.f32 %v1183_v34, %v3723_v3  ;;  %v1080_v62 = vshrl.u32 %v1064_v32, 16  ;;  %v1097_v31 = vxor.u32 %v1081_v9, %v1065_v39 }
 0x19c   :  { %vm1127_vm10 = vcmp.ge.s32.totalorder %v1111_v35, 3355443  ;;  %vm1126_vm11 = vcmp.ge.s32.totalorder %v1110_v28, 3355443  ;;  %v1654_v46 = vxor.u32 %v1638_v50, %v1622_v55 }
 0x19d   :  { %5173 = vst [vmem:[#allocation67_spill] sm:$0xff] %v3854_v33  ;;  %v2780_v11 = vsel %vm1127_vm10, 1.0, %v5128_v16  ;;  %v1717_v17 = vshrl.u32 %v1701_v2, 8  ;;  %1224 = vadd.xlane.f32.xlu1 %v3854_v33  ;;  %v2779_v13 = vsel %vm1126_vm11, 1.0, %v5128_v16  ;;  %v1096_v61 = vxor.u32 %v1080_v62, %v1064_v32  ;;  %v5177_v32 = vld [vmem:[#allocation46_spill] sm:$0xff]  ;;  %v5178_v2 = vld [vmem:[#allocation40_spill] sm:$0xff] }
 0x19e   :  { %v3847_v58 = vpop.f32.mrf.mxu1  ;;  %v1175_v27 = vmul.f32 %v2780_v11, %v3651_v56  ;;  %v1174_v43 = vmul.f32 %v2779_v13, %v3629_v6  ;;  %v1113_v22 = vshrl.u32 %v1097_v31, 8  ;;  %v1670_v44 = vmul.u32 73244475, %v1654_v46 }
 0x19f   :  { %vm1733_vm12 = vcmp.ge.s32.totalorder %v1717_v17, 3355443  ;;  %v1112_v54 = vshrl.u32 %v1096_v61, 8  ;;  %v5181_v61 = vld [vmem:[#allocation42_spill] sm:$0xff] }
 0x1a0   :  { %v3862_v18 = vmax.f32 %v1175_v27, %v3609_v7  ;;  %v2809_v23 = vsel %vm1733_vm12, 1.0, %v5128_v16  ;;  %v3866_v53 = vmax.f32 %v1174_v43, %v3616_v12  ;;  %vm1129_vm13 = vcmp.ge.s32.totalorder %v1113_v22, 3355443  ;;  %v1229_v43 = vpop.xlane.xlu2 %1228  ;;  %v5182_v22 = vld [vmem:[#allocation36_spill] sm:$0xff] }
 0x1a1   :  { %v1781_v56 = vmul.f32 %v2809_v23, %v3620_v40  ;;  %vm1128_vm14 = vcmp.ge.s32.totalorder %v1112_v54, 3355443  ;;  %v3876_v39 = vpop.f32.mrf.mxu0  ;;  %v2782_v34 = vsel %vm1129_vm13, 1.0, %v5128_v16  ;;  %v1686_v55 = vshrl.u32 %v1670_v44, 16 }
 0x1a2   :  { %5174 = vst [vmem:[#allocation68_spill] sm:$0xff] %v3862_v18  ;;  %1208 = vadd.xlane.f32.xlu0 %v3862_v18  ;;  %1206 = vadd.xlane.f32.xlu2 %v3866_v53  ;;  %v2781_v35 = vsel %vm1128_vm14, 1.0, %v5128_v16  ;;  %v1177_v28 = vmul.f32 %v2782_v34, %v3709_v10  ;;  %3040 = vrcp.f32 %v1229_v43  ;;  %vm1408_vm2 = vweird.f32 %v1229_v43 }
 0x1a3   :  { %5175 = vst [vmem:[#allocation69_spill] sm:$0xff] %v3866_v53  ;;  %v3874_v19 = vmax.f32 %v1781_v56, %v3579_v52  ;;  %v1176_v40 = vmul.f32 %v2781_v35, %v5177_v32  ;;  %v1702_v62 = vxor.u32 %v1686_v55, %v1670_v44 }
 0x1a4   :  { %v3887_v17 = vmax.f32 %v1177_v28, %v3661_v0  ;;  %v1227_v54 = vpop.xlane.xlu1 %1226 }
 0x1a5   :  { %5176 = vst [vmem:[#allocation70_spill] sm:$0xff] %v3874_v19  ;;  %1827 = vadd.xlane.f32.xlu1 %v3874_v19  ;;  %v3884_v9 = vmax.f32 %v1176_v40, %v5178_v2  ;;  %v1718_v11 = vshrl.u32 %v1702_v62, 8  ;;  %3042 = vrcp.f32 %v1227_v54  ;;  %vm1393_vm0 = vweird.f32 %v1227_v54 }
 0x1a6   :  { %v3870_v6 = vpop.f32.mrf.mxu1  ;;  %5180 = vst [vmem:[#allocation71_spill] sm:$0xff] %v3887_v17  ;;  %v1399_v49 = vand.u32 2147483648, %v1227_v54  ;;  %v1397_v14 = vand.u32 2147483647, %v1227_v54 }
 0x1a7   :  { %5179 = vst [vmem:[#allocation46_spill] sm:$0xff] %v3884_v9  ;;  %vm1734_vm15 = vcmp.ge.s32.totalorder %v1718_v11, 3355443 }
 0x1a8   :  { %v2810_v13 = vsel %vm1734_vm15, 1.0, %v5128_v16  ;;  %v3041_v16 = vpop.eup %3040  ;;  %vm1398_vm6 = vcmp.eq.f32.partialorder %v1397_v14, 8.507059e+37 }
 0x1a9   :  { %v3892_v27 = vpop.f32.mrf.mxu0  ;;  %v1782_v50 = vmul.f32 %v2810_v13, %v5181_v61  ;;  %v1404_v34 = vmul.f32 %v3041_v16, %v1229_v43  ;;  %vm1409_vm3 = vweird.f32 %v3041_v16  ;;  %v1412_v13 = vand.u32 2147483647, %v1229_v43 }
 0x1aa   :  { %1210 = vadd.xlane.f32.xlu0 %v3884_v9  ;;  %vm3925_vm5 = vmor %vm1408_vm2, %vm1409_vm3 }
 0x1ab   :  { %v3900_v23 = vmax.f32 %v1782_v50, %v5182_v22  ;;  %v3043_v44 = vpop.eup %3042  ;;  %v1405_v40 = vsub.f32 1.0, %v1404_v34  ;;  %vm1413_vm7 = vcmp.eq.f32.partialorder %v1412_v13, 8.507059e+37 }
 0x1ac   :  { %v1389_v32 = vmul.f32 %v3043_v44, %v1227_v54  ;;  %vm1394_vm1 = vweird.f32 %v3043_v44 }
 0x1ad   :  { %1212 = vadd.xlane.f32.xlu1 %v3887_v17  ;;  %5183 = vst [vmem:[#allocation42_spill] sm:$0xff] %v3900_v23  ;;  %1829 = vadd.xlane.f32.xlu2 %v3900_v23  ;;  %v1406_v61 = vmul.f32 %v3041_v16, %v1405_v40  ;;  %vm3921_vm4 = vmor %vm1393_vm0, %vm1394_vm1 }
 0x1ae   :  { %v3890_v31 = vpop.f32.mrf.mxu1  ;;  %v1390_v55 = vsub.f32 1.0, %v1389_v32  ;;  %v1414_v32 = vand.u32 2147483648, %v1229_v43  ;;  %v1400_v43 = vor.u32 1.1754944e-38, %v1399_v49  ;;  %v3949_v49 = vpack.c.bf16 %v3876_v39, %v3849_v30  ;;  %v5189_v30 = vld [vmem:[#allocation33_spill] sm:$0xff] }
 0x1af   :  { %v1407_v63 = vadd.f32 %v3041_v16, %v1406_v61 }
 0x1b0   :  { %v1391_v50 = vmul.f32 %v3043_v44, %v1390_v55  ;;  %v1415_v61 = vor.u32 1.1754944e-38, %v1414_v32 }
 0x1b1   :  { %v888_v56 = vpop.f32.mrf.mxu0  ;;  %v1411_v60 = vsel %vm3925_vm5, %v3041_v16, %v1407_v63 }
 0x1b2   :  { %v3907_v28 = vpop.xlane.xlu0 %1230  ;;  %v1392_v22 = vadd.f32 %v3043_v44, %v1391_v50  ;;  %v1416_v7 = vsel %vm1413_vm7, %v1415_v61, %v1411_v60  ;;  %v3952_v14 = vpack.c.bf16 %v888_v56, %v3892_v27  ;;  %v5188_v60 = vld [vmem:[#allocation35_spill] sm:$0xff] }
 0x1b3   :  { %v3967_v39 = vmul.f32 %v1416_v7, %v5189_v30 }
 0x1b4   :  { %v1396_v3 = vsel %vm3921_vm4, %v3043_v44, %v1392_v22 }
 0x1b5   :  { %v1401_v2 = vsel %vm1398_vm6, %v1400_v43, %v1396_v3  ;;  %vm1423_vm6 = vweird.f32 %v3907_v28 }
 0x1b6   :  { %v3903_v46 = vpop.f32.mrf.mxu1  ;;  %v3964_v44 = vmul.f32 %v1401_v2, %v5188_v60 }
 0x1b8   :  { %v3905_v35 = vpop.xlane.xlu2 %1232 }
 0x1b9   :  { %3044 = vrcp.f32 %v3905_v35  ;;  %v3912_v11 = vpop.f32.mrf.mxu0  ;;  %vm1438_vm7 = vweird.f32 %v3905_v35 }
 0x1ba   :  { %3046 = vrcp.f32 %v3907_v28 }
 0x1be   :  { %v3910_v62 = vpop.f32.mrf.mxu1 }
 0x1bf   :  { %v3917_v34 = vpop.eup %3044 }
 0x1c0   :  { %v3919_v10 = vpop.eup %3046  ;;  %v1434_v15 = vmul.f32 %v3917_v34, %v3905_v35 }
 0x1c1   :  { %v3933_v45 = vpop.f32.mrf.mxu0  ;;  %v1419_v54 = vmul.f32 %v3919_v10, %v3907_v28  ;;  %v3939_v20 = vpop.xlane.xlu1 %1234 }
 0x1c2   :  { %v3937_v50 = vpop.xlane.xlu2 %1236  ;;  %v1435_v48 = vsub.f32 1.0, %v1434_v15  ;;  %vm1453_vm9 = vweird.f32 %v3939_v20  ;;  %v1457_v61 = vand.u32 2147483647, %v3939_v20  ;;  %v1459_v30 = vand.u32 2147483648, %v3939_v20 }
 0x1c3   :  { %3048 = vrcp.f32 %v3937_v50  ;;  %v1420_v0 = vsub.f32 1.0, %v1419_v54  ;;  %vm1468_vm8 = vweird.f32 %v3937_v50  ;;  %v1474_v2 = vand.u32 2147483648, %v3937_v50 }
 0x1c4   :  { %3050 = vrcp.f32 %v3939_v20  ;;  %v3960_v15 = vmul.f32 %v3917_v34, %v1435_v48  ;;  %vm4007_vm0 = vcmp.eq.f32.partialorder %v1457_v61, 8.507059e+37  ;;  %v1460_v5 = vor.u32 1.1754944e-38, %v1459_v30 }
 0x1c5   :  { %v1800_v24 = vpop.xlane.xlu0 %1799  ;;  %v3972_v56 = vmul.f32 %v3919_v10, %v1420_v0 }
 0x1c6   :  { %v3929_v55 = vpop.f32.mrf.mxu1  ;;  %3052 = vrcp.f32 %v1800_v24  ;;  %v1840_v40 = vand.u32 2147483647, %v1800_v24  ;;  %v1842_v54 = vand.u32 2147483648, %v1800_v24  ;;  %vm1836_vm10 = vweird.f32 %v1800_v24 }
 0x1c8   :  { %vm3993_vm11 = vcmp.eq.f32.partialorder %v1840_v40, 8.507059e+37  ;;  %v1843_v23 = vor.u32 1.1754944e-38, %v1842_v54 }
 0x1c9   :  { %v3955_v22 = vpop.eup %3048  ;;  %v896_v3 = vpop.f32.mrf.mxu0 }
 0x1ca   :  { %v3969_v27 = vpop.eup %3050  ;;  %v1464_v13 = vmul.f32 %v3955_v22, %v3937_v50  ;;  %v3976_v32 = vpop.xlane.xlu2 %1803  ;;  %vm1469_vm1 = vweird.f32 %v3955_v22 }
 0x1cb   :  { %v1449_v7 = vmul.f32 %v3969_v27, %v3939_v20  ;;  %3054 = vrcp.f32 %v3976_v32  ;;  %vm1454_vm12 = vweird.f32 %v3969_v27  ;;  %vm4022_vm2 = vmor %vm1468_vm8, %vm1469_vm1  ;;  %vm1424_vm8 = vweird.f32 %v3919_v10 }
 0x1cc   :  { %v3978_v48 = vpop.xlane.xlu1 %1801  ;;  %v3985_v0 = vpop.eup %3052  ;;  %v1465_v43 = vsub.f32 1.0, %v1464_v13  ;;  %vm4003_vm15 = vmor %vm1453_vm9, %vm1454_vm12  ;;  %vm1866_vm12 = vweird.f32 %v3976_v32 }
 0x1cd   :  { %3056 = vrcp.f32 %v3978_v48  ;;  %v1450_v60 = vsub.f32 1.0, %v1449_v7  ;;  %v1832_v52 = vmul.f32 %v3985_v0, %v1800_v24  ;;  %vm1851_vm13 = vweird.f32 %v3978_v48  ;;  %v5200_v7 = vld [vmem:[#allocation48_spill] sm:$0xff] }
 0x1ce   :  { %v3957_v63 = vpop.f32.mrf.mxu1  ;;  %v1466_v16 = vmul.f32 %v3955_v22, %v1465_v43  ;;  %vm1837_vm14 = vweird.f32 %v3985_v0  ;;  %v1472_v43 = vand.u32 2147483647, %v3937_v50  ;;  %v1855_v18 = vand.u32 2147483647, %v3978_v48 }
 0x1cf   :  { %v1451_v13 = vmul.f32 %v3969_v27, %v1450_v60  ;;  %v1833_v19 = vsub.f32 1.0, %v1832_v52  ;;  %vm4031_vm3 = vmor %vm1836_vm10, %vm1837_vm14  ;;  %v1857_v29 = vand.u32 2147483648, %v3978_v48 }
 0x1d0   :  { %v1467_v54 = vadd.f32 %v3955_v22, %v1466_v16  ;;  %v1475_v16 = vor.u32 1.1754944e-38, %v1474_v2  ;;  %vm1473_vm4 = vcmp.eq.f32.partialorder %v1472_v43, 8.507059e+37  ;;  %v1492_v43 = vpack.c.bf16 %v3933_v45, %v3912_v11 }
 0x1d1   :  { %v4014_v60 = vpop.eup %3054  ;;  %v1834_v20 = vmul.f32 %v3985_v0, %v1833_v19  ;;  %v898_v17 = vpop.f32.mrf.mxu0  ;;  %v1452_v9 = vadd.f32 %v3969_v27, %v1451_v13  ;;  %v4071_v45 = vadd.f32 %v3917_v34, %v3960_v15  ;;  %vm4090_vm10 = vcmp.eq.f32.partialorder %v1855_v18, 8.507059e+37  ;;  %v5207_v18 = vld [vmem:[#allocation49_spill] sm:$0xff] }
 0x1d2   :  { %v1862_v53 = vmul.f32 %v4014_v60, %v3976_v32  ;;  %v1493_v13 = vpack.c.bf16 %v898_v17, %v896_v3  ;;  %v4035_v30 = vpop.xlane.xlu2 %1809  ;;  %v1471_v50 = vsel %vm4022_vm2, %v3955_v22, %v1467_v54  ;;  %vm4156_vm2 = vmor %vm1423_vm6, %vm1424_vm8 }
 0x1d3   :  { %v3057_v51 = vpop.eup %3056  ;;  %v1835_v33 = vadd.f32 %v3985_v0, %v1834_v20  ;;  %3058 = vrcp.f32 %v4035_v30  ;;  %v1456_v17 = vsel %vm4003_vm15, %v3969_v27, %v1452_v9  ;;  %v1476_v54 = vsel %vm1473_vm4, %v1475_v16, %v1471_v50  ;;  %v5201_v27 = vld [vmem:[#allocation45_spill] sm:$0xff] }
 0x1d4   :  { %v1847_v2 = vmul.f32 %v3057_v51, %v3978_v48  ;;  %v1863_v24 = vsub.f32 1.0, %v1862_v53  ;;  %vm1852_vm5 = vweird.f32 %v3057_v51  ;;  %1494 = vmatpush.bf16.msra.mxu0 %v1493_v13  ;;  %2843 = vmatpush.bf16.msra.mxu2 %v1493_v13  ;;  %v1461_v3 = vsel %vm4007_vm0, %v1460_v5, %v1456_v17 }
 0x1d5   :  { %2844 = vmatpush.bf16.msra.mxu3 %v1493_v13  ;;  %v1839_v53 = vsel %vm4031_vm3, %v3985_v0, %v1835_v33  ;;  %v4059_v9 = vmul.f32 %v1461_v3, %v5200_v7  ;;  %v4062_v61 = vmul.f32 %v1476_v54, %v5201_v27  ;;  %vm4076_vm9 = vmor %vm1851_vm13, %vm1852_vm5  ;;  %v1858_v0 = vor.u32 1.1754944e-38, %v1857_v29  ;;  %v5209_v7 = vld [vmem:[#allocation52_spill] sm:$0xff] }
 0x1d6   :  { %v4016_v52 = vpop.f32.mrf.mxu1  ;;  %v1848_v22 = vsub.f32 1.0, %v1847_v2  ;;  %v1844_v19 = vsel %vm3993_vm11, %v1843_v23, %v1839_v53  ;;  %v1864_v48 = vmul.f32 %v4014_v60, %v1863_v24  ;;  %v4096_v29 = vadd.f32 %v3919_v10, %v3972_v56 }
 0x1d7   :  { %v5206_v17 = vand.u32 2147483648, %v3907_v28  ;;  %vm1439_vm11 = vweird.f32 %v3917_v34  ;;  %vm1867_vm13 = vweird.f32 %v4014_v60  ;;  %v1872_v3 = vand.u32 2147483648, %v3976_v32 }
 0x1d8   :  { %v1849_v5 = vmul.f32 %v3057_v51, %v1848_v22  ;;  %v4065_v40 = vpop.xlane.xlu1 %1807  ;;  %1495 = vmatpush.bf16.msra.mxu0 %v1492_v43  ;;  %2845 = vmatpush.bf16.msra.mxu2 %v1492_v43  ;;  %v4110_v22 = vmul.f32 %v1844_v19, %v5207_v18  ;;  %vm1911_vm14 = vweird.f32 %v4035_v30  ;;  %vm4137_vm0 = vmor %vm1866_vm12, %vm1867_vm13 }
 0x1d9   :  { %3060 = vrcp.f32 %v4065_v40  ;;  %v4085_v15 = vpop.eup %3058  ;;  %2846 = vmatpush.bf16.msra.mxu3 %v1492_v43  ;;  %v4105_v24 = vor.u32 1.1754944e-38, %v5206_v17  ;;  %v1870_v43 = vand.u32 2147483647, %v3976_v32  ;;  %vm1896_vm15 = vweird.f32 %v4065_v40  ;;  %vm4193_vm6 = vmor %vm1438_vm7, %vm1439_vm11 }
 0x1da   :  { %v1850_v50 = vadd.f32 %v3057_v51, %v1849_v5  ;;  %v1907_v12 = vmul.f32 %v4085_v15, %v4035_v30  ;;  %5208 = vst [vmem:[#allocation35_spill] sm:$0xff] %v4110_v22  ;;  %v1865_v5 = vadd.f32 %v4014_v60, %v1864_v48  ;;  %vm1912_vm1 = vweird.f32 %v4085_v15 }
 0x1db   :  { %v4101_v23 = vpop.xlane.xlu0 %1805  ;;  %v1902_v48 = vand.u32 2147483648, %v4065_v40  ;;  %v1915_v17 = vand.u32 2147483647, %v4035_v30  ;;  %vm4160_vm3 = vcmp.eq.f32.partialorder %v1870_v43, 8.507059e+37  ;;  %vm4180_vm5 = vmor %vm1911_vm14, %vm1912_vm1 }
 0x1dc   :  { %3062 = vrcp.f32 %v4101_v23  ;;  %v1854_v56 = vsel %vm4076_vm9, %v3057_v51, %v1850_v50  ;;  %v1908_v54 = vsub.f32 1.0, %v1907_v12  ;;  %1496 = vmatpush.bf16.msra.mxu0 %v3952_v14  ;;  %2847 = vmatpush.bf16.msra.mxu2 %v3952_v14  ;;  %v1917_v50 = vand.u32 2147483648, %v4035_v30 }
 0x1dd   :  { %v1859_v53 = vsel %vm4090_vm10, %v1858_v0, %v1854_v56  ;;  %2848 = vmatpush.bf16.msra.mxu3 %v3952_v14  ;;  %v1873_v56 = vor.u32 1.1754944e-38, %v1872_v3  ;;  %vm1881_vm4 = vweird.f32 %v4101_v23  ;;  %v1887_v20 = vand.u32 2147483648, %v4101_v23 }
 0x1de   :  { %v4087_v13 = vpop.f32.mrf.mxu1  ;;  %v4125_v27 = vmul.f32 %v1859_v53, %v5209_v7  ;;  %v1909_v19 = vmul.f32 %v4085_v15, %v1908_v54  ;;  %v1900_v54 = vand.u32 2147483647, %v4065_v40  ;;  %v1869_v43 = vsel %vm4137_vm0, %v4014_v60, %v1865_v5 }
 0x1df   :  { %v4128_v11 = vpop.eup %3060  ;;  %v1885_v60 = vand.u32 2147483647, %v4101_v23  ;;  %vm4203_vm9 = vcmp.eq.f32.partialorder %v1915_v17, 8.507059e+37  ;;  %v1918_v51 = vor.u32 1.1754944e-38, %v1917_v50  ;;  %v1888_v3 = vor.u32 1.1754944e-38, %v1887_v20 }
 0x1e0   :  { %5210 = vst [vmem:[#allocation33_spill] sm:$0xff] %v4125_v27  ;;  %v1892_v0 = vmul.f32 %v4128_v11, %v4065_v40  ;;  %1497 = vmatpush.bf16.msra.mxu0 %v3949_v49  ;;  %2849 = vmatpush.bf16.msra.mxu2 %v3949_v49  ;;  %v1910_v53 = vadd.f32 %v4085_v15, %v1909_v19  ;;  %vm1897_vm8 = vweird.f32 %v4128_v11  ;;  %vm4239_vm12 = vcmp.eq.f32.partialorder %v1900_v54, 8.507059e+37 }
 0x1e1   :  { %2850 = vmatpush.bf16.msra.mxu3 %v3949_v49  ;;  %vm4232_vm10 = vmor %vm1896_vm15, %vm1897_vm8  ;;  %vm4252_vm13 = vcmp.eq.f32.partialorder %v1885_v60, 8.507059e+37  ;;  %v1903_v18 = vor.u32 1.1754944e-38, %v1902_v48 }
 0x1e2   :  { %v4145_v2 = vpop.xlane.xlu2 %1815  ;;  %v4166_v7 = vpop.eup %3062  ;;  %v1893_v16 = vsub.f32 1.0, %v1892_v0 }
 0x1e3   :  { %v1877_v19 = vmul.f32 %v4166_v7, %v4101_v23  ;;  %3064 = vrcp.f32 %v4145_v2  ;;  %v4187_v0 = vpop.xlane.xlu1 %1813  ;;  %v4201_v5 = vpop.xlane.xlu0 %1811  ;;  %vm1882_vm7 = vweird.f32 %v4166_v7 }
 0x1e4   :  { %v1894_v30 = vmul.f32 %v4128_v11, %v1893_v16  ;;  %3066 = vrcp.f32 %v4187_v0  ;;  %1498 = vmatpush.bf16.msra.mxu0 %v3839_v41  ;;  %2851 = vmatpush.bf16.msra.mxu2 %v3839_v41  ;;  %v1914_v16 = vsel %vm4180_vm5, %v4085_v15, %v1910_v53  ;;  %v1874_v53 = vsel %vm4160_vm3, %v1873_v56, %v1869_v43  ;;  %vm4248_vm11 = vmor %vm1881_vm4, %vm1882_vm7 }
 0x1e5   :  { %v1878_v33 = vsub.f32 1.0, %v1877_v19  ;;  %3068 = vrcp.f32 %v4201_v5  ;;  %2852 = vmatpush.bf16.msra.mxu3 %v3839_v41  ;;  %v5223_v19 = vand.u32 2147483648, %v3905_v35  ;;  %v1919_v20 = vsel %vm4203_vm9, %v1918_v51, %v1914_v16  ;;  %v5232_v51 = vld [vmem:[#allocation51_spill] sm:$0xff] }
 0x1e6   :  { %v4168_v12 = vpop.f32.mrf.mxu1  ;;  %v1895_v27 = vadd.f32 %v4128_v11, %v1894_v30  ;;  %v1932_v30 = vand.u32 2147483648, %v4201_v5  ;;  %v1947_v54 = vand.u32 2147483648, %v4187_v0  ;;  %vm1941_vm14 = vweird.f32 %v4187_v0 }
 0x1e7   :  { %v4225_v22 = vor.u32 1.1754944e-38, %v5223_v19  ;;  %v1879_v15 = vmul.f32 %v4166_v7, %v1878_v33  ;;  %v4275_v14 = vmul.f32 %v1874_v53, %v5232_v51  ;;  %v1930_v16 = vand.u32 2147483647, %v4201_v5 }
 0x1e8   :  { %1499 = vmatpush.bf16.msra.mxu0 %v3794_v59  ;;  %2853 = vmatpush.bf16.msra.mxu2 %v3794_v59  ;;  %v1899_v43 = vsel %vm4232_vm10, %v4128_v11, %v1895_v27  ;;  %v1945_v50 = vand.u32 2147483647, %v4187_v0  ;;  %vm1926_vm15 = vweird.f32 %v4201_v5  ;;  %v5234_v51 = vand.u32 2147483647, %v3907_v28 }
 0x1e9   :  { %v4258_v56 = vpop.eup %3064  ;;  %v1880_v23 = vadd.f32 %v4166_v7, %v1879_v15  ;;  %2854 = vmatpush.bf16.msra.mxu3 %v3794_v59  ;;  %v4288_v59 = vmul.f32 %v1919_v20, %v3702_v26  ;;  %v1933_v40 = vor.u32 1.1754944e-38, %v1932_v30  ;;  %v5237_v28 = vand.u32 2147483647, %v3905_v35  ;;  %v5240_v30 = vld [vmem:[#allocation22_spill] sm:$0xff] }
 0x1ea   :  { %v4244_v19 = vpop.xlane.xlu2 %1216  ;;  %v4268_v48 = vpop.eup %3066  ;;  %vm4296_vm0 = vcmp.eq.f32.partialorder %v5234_v51, 8.507059e+37  ;;  %v1952_v26 = vmul.f32 %v4258_v56, %v4145_v2  ;;  %vm4319_vm3 = vcmp.eq.f32.partialorder %v1930_v16, 8.507059e+37  ;;  %vm4323_vm4 = vcmp.eq.f32.partialorder %v1945_v50, 8.507059e+37  ;;  %v5247_v16 = vld [vmem:[#allocation56_spill] sm:$0xff] }
 0x1eb   :  { %3070 = vrcp.f32 %v4244_v19  ;;  %v4279_v15 = vpop.eup %3068  ;;  %v1937_v27 = vmul.f32 %v4268_v48, %v4187_v0  ;;  %v1884_v11 = vsel %vm4248_vm11, %v4166_v7, %v1880_v23  ;;  %5233 = vst [vmem:[#allocation48_spill] sm:$0xff] %v4288_v59  ;;  %v1904_v7 = vsel %vm4239_vm12, %v1903_v18, %v1899_v43 }
 0x1ec   :  { %v1922_v41 = vmul.f32 %v4279_v15, %v4201_v5  ;;  %v4292_v53 = vpop.xlane.xlu1 %1214  ;;  %v1889_v36 = vsel %vm4252_vm13, %v1888_v3, %v1884_v11  ;;  %1500 = vmatpush.bf16.msra.mxu0 %v3765_v8  ;;  %2855 = vmatpush.bf16.msra.mxu2 %v3765_v8  ;;  %vm4311_vm1 = vcmp.eq.f32.partialorder %v5237_v28, 8.507059e+37  ;;  %v1948_v3 = vor.u32 1.1754944e-38, %v1947_v54  ;;  %v5245_v54 = vld [vmem:[#allocation57_spill] sm:$0xff] }
 0x1ed   :  { %v1938_v20 = vsub.f32 1.0, %v1937_v27  ;;  %3072 = vrcp.f32 %v4292_v53  ;;  %2856 = vmatpush.bf16.msra.mxu3 %v3765_v8  ;;  %v4317_v33 = vmul.f32 %v1889_v36, %v5240_v30  ;;  %v1324_v11 = vand.u32 2147483648, %v4244_v19 }
 0x1ee   :  { %v4270_v60 = vpop.f32.mrf.mxu1  ;;  %v1923_v17 = vsub.f32 1.0, %v1922_v41  ;;  %v4330_v41 = vmul.f32 %v1904_v7, %v5245_v54  ;;  %vm1927_vm5 = vweird.f32 %v4279_v15  ;;  %vm1318_vm8 = vweird.f32 %v4244_v19 }
 0x1ef   :  { %v1939_v27 = vmul.f32 %v4268_v48, %v1938_v20  ;;  %v1322_v50 = vand.u32 2147483647, %v4244_v19  ;;  %vm4345_vm9 = vmor %vm1926_vm15, %vm1927_vm5  ;;  %vm1942_vm7 = vweird.f32 %v4268_v48  ;;  %vm1303_vm11 = vweird.f32 %v4292_v53 }
 0x1f0   :  { %5246 = vst [vmem:[#allocation45_spill] sm:$0xff] %v4330_v41  ;;  %v1924_v8 = vmul.f32 %v4279_v15, %v1923_v17  ;;  %1501 = vmatpush.bf16.msra.mxu0 %v5247_v16  ;;  %2857 = vmatpush.bf16.msra.mxu2 %v5247_v16  ;;  %v1953_v17 = vsub.f32 1.0, %v1952_v26  ;;  %vm4355_vm12 = vmor %vm1941_vm14, %vm1942_vm7  ;;  %v1325_v26 = vor.u32 1.1754944e-38, %v1324_v11  ;;  %v1307_v0 = vand.u32 2147483647, %v4292_v53 }
 0x1f1   :  { %v3071_v35 = vpop.eup %3070  ;;  %v1940_v28 = vadd.f32 %v4268_v48, %v1939_v27  ;;  %2858 = vmatpush.bf16.msra.mxu3 %v5247_v16  ;;  %v1309_v27 = vand.u32 2147483648, %v4292_v53  ;;  %v5252_v59 = vpack.c.bf16 %v3967_v39, %v3964_v44  ;;  %vm4379_vm15 = vcmp.eq.f32.partialorder %v1322_v50, 8.507059e+37 }
 0x1f2   :  { %v1314_v36 = vmul.f32 %v3071_v35, %v4244_v19  ;;  %vm1319_vm10 = vweird.f32 %v3071_v35  ;;  %v1925_v51 = vadd.f32 %v4279_v15, %v1924_v8  ;;  %v5258_v50 = vsel %vm4156_vm2, %v3919_v10, %v4096_v29 }
 0x1f3   :  { %v3073_v7 = vpop.eup %3072  ;;  %vm4375_vm14 = vmor %vm1318_vm8, %vm1319_vm10  ;;  %v5260_v10 = vsel %vm4193_vm6, %v3917_v34, %v4071_v45  ;;  %vm1956_vm2 = vweird.f32 %v4145_v2  ;;  %vm4430_vm6 = vcmp.eq.f32.partialorder %v1307_v0, 8.507059e+37  ;;  %v2085_v0 = vpack.c.bf16 %v4270_v60, %v4168_v12  ;;  %v5268_v60 = vld [vmem:[#allocation38_spill] sm:$0xff] }
 0x1f4   :  { %v1315_v54 = vsub.f32 1.0, %v1314_v36  ;;  %v4361_v41 = vpop.xlane.xlu0 %1817  ;;  %v1944_v36 = vsel %vm4355_vm12, %v4268_v48, %v1940_v28  ;;  %v1299_v8 = vmul.f32 %v3073_v7, %v4292_v53  ;;  %1527 = vmatmul.bf16.vlgmr.msra.gmra.mxu3 %v5252_v59  ;;  %vm1304_vm13 = vweird.f32 %v3073_v7 }
 0x1f5   :  { %3074 = vrcp.f32 %v4361_v41  ;;  %v1929_v28 = vsel %vm4345_vm9, %v4279_v15, %v1925_v51  ;;  %v1949_v44 = vsel %vm4323_vm4, %v1948_v3, %v1944_v36  ;;  %v1431_v15 = vsel %vm4296_vm0, %v4105_v24, %v5258_v50  ;;  %v5259_v51 = vld [vmem:[#allocation61_spill] sm:$0xff]  ;;  %vm4422_vm0 = vmor %vm1303_vm11, %vm1304_vm13 }
 0x1f6   :  { %v945_v30 = vpop.f32.mrf.mxu1  ;;  %v1316_v16 = vmul.f32 %v3071_v35, %v1315_v54  ;;  %v1300_v39 = vsub.f32 1.0, %v1299_v8  ;;  %v1934_v19 = vsel %vm4319_vm3, %v1933_v40, %v1929_v28  ;;  %v5257_v54 = vld [vmem:[#allocation60_spill] sm:$0xff]  ;;  %v1954_v3 = vmul.f32 %v4258_v56, %v1953_v17  ;;  %v5265_v28 = vld [vmem:[#allocation39_spill] sm:$0xff] }
 0x1f7   :  { %v4391_v5 = vmul.f32 %v1949_v44, %v5257_v54  ;;  %v4402_v43 = vmul.f32 %v1934_v19, %v5259_v51  ;;  %v1446_v38 = vsel %vm4311_vm1, %v4225_v22, %v5260_v10  ;;  %v1310_v24 = vor.u32 1.1754944e-38, %v1309_v27 }
 0x1f8   :  { %v1317_v59 = vadd.f32 %v3071_v35, %v1316_v16  ;;  %v1301_v20 = vmul.f32 %v3073_v7, %v1300_v39  ;;  %vm1957_vm1 = vweird.f32 %v4258_v56  ;;  %v1962_v53 = vand.u32 2147483648, %v4145_v2 }
 0x1f9   :  { %v4405_v18 = vpop.xlane.xlu2 %1218  ;;  %v2074_v23 = vpack.c.bf16 %v4391_v5, %v4402_v43  ;;  %v1955_v8 = vadd.f32 %v4258_v56, %v1954_v3  ;;  %v1432_v44 = vmul.f32 %v1431_v15, %v5265_v28  ;;  %vm4459_vm3 = vmor %vm1956_vm2, %vm1957_vm1  ;;  %v1447_v39 = vmul.f32 %v1446_v38, %v5268_v60  ;;  %v5336_v5 = vld [vmem:[#allocation19_spill] sm:$0xff]  ;;  %v5337_v43 = vld [vmem:[#allocation18_spill] sm:$0xff] }
 0x1fa   :  { %v1321_v40 = vsel %vm4375_vm14, %v3071_v35, %v1317_v59  ;;  %3076 = vrcp.f32 %v4405_v18  ;;  %v1302_v49 = vadd.f32 %v3073_v7, %v1301_v20  ;;  %vm1971_vm4 = vweird.f32 %v4361_v41 }
 0x1fb   :  { %v1326_v32 = vsel %vm4379_vm15, %v1325_v26, %v1321_v40  ;;  %v4428_v34 = vpop.eup %3074  ;;  %v1960_v26 = vand.u32 2147483647, %v4145_v2  ;;  %v1963_v54 = vor.u32 1.1754944e-38, %v1962_v53  ;;  %v1959_v15 = vsel %vm4459_vm3, %v4258_v56, %v1955_v8 }
 0x1fc   :  { %v1967_v35 = vmul.f32 %v4428_v34, %v4361_v41  ;;  %v4440_v27 = vpop.xlane.xlu0 %1819  ;;  %v1306_v36 = vsel %vm4422_vm0, %v3073_v7, %v1302_v49  ;;  %v1327_v16 = vmul.f32 %v1326_v32, %v3760_v47  ;;  %v1977_v7 = vand.u32 2147483648, %v4361_v41 }
 0x1fd   :  { %3078 = vrcp.f32 %v4440_v27  ;;  %v4450_v48 = vpop.xlane.xlu1 %1821  ;;  %vm1972_vm5 = vweird.f32 %v4428_v34  ;;  %vm4477_vm8 = vcmp.eq.f32.partialorder %v1960_v26, 8.507059e+37  ;;  %v2083_v51 = vpack.c.bf16 %v3957_v63, %v3929_v55 }
 0x1fe   :  { %v947_v45 = vpop.f32.mrf.mxu1  ;;  %v1968_v11 = vsub.f32 1.0, %v1967_v35  ;;  %3080 = vrcp.f32 %v4450_v48  ;;  %v1975_v20 = vand.u32 2147483647, %v4361_v41  ;;  %v2084_v10 = vpack.c.bf16 %v4087_v13, %v4016_v52  ;;  %vm4495_vm9 = vmor %vm1971_vm4, %vm1972_vm5 }
 0x1ff   :  { %v2086_v17 = vpack.c.bf16 %v947_v45, %v945_v30  ;;  %v1311_v30 = vsel %vm4430_vm6, %v1310_v24, %v1306_v36  ;;  %v1484_v29 = vpack.c.bf16 %v1447_v39, %v1432_v44  ;;  %v1978_v63 = vor.u32 1.1754944e-38, %v1977_v7  ;;  %v5273_v36 = vld [vmem:[#allocation59_spill] sm:$0xff] }
 0x200   :  { %v1312_v12 = vmul.f32 %v1311_v30, %v3772_v1  ;;  %v4467_v59 = vpop.eup %3076  ;;  %v1969_v19 = vmul.f32 %v4428_v34, %v1968_v11  ;;  %v1337_v52 = vand.u32 2147483647, %v4405_v18  ;;  %v1964_v13 = vsel %vm4477_vm8, %v1963_v54, %v1959_v15 }
 0x201   :  { %2087 = vmatpush.bf16.msrb.mxu3 %v2086_v17  ;;  %v1329_v2 = vmul.f32 %v4467_v59, %v4405_v18  ;;  %v1992_v41 = vand.u32 2147483648, %v4440_v27  ;;  %v1339_v22 = vand.u32 2147483648, %v4405_v18  ;;  %vm1976_vm7 = vcmp.eq.f32.partialorder %v1975_v20, 8.507059e+37 }
 0x202   :  { %v1480_v50 = vpack.c.bf16 %v1327_v16, %v1312_v12  ;;  %v1970_v3 = vadd.f32 %v4428_v34, %v1969_v19  ;;  %v4489_v56 = vpop.xlane.xlu2 %1825  ;;  %vm1333_vm10 = vweird.f32 %v4405_v18  ;;  %vm1334_vm12 = vweird.f32 %v4467_v59 }
 0x203   :  { %v4485_v40 = vpop.eup %3078  ;;  %v1330_v38 = vsub.f32 1.0, %v1329_v2  ;;  %3082 = vrcp.f32 %v4489_v56  ;;  %v4524_v16 = vmul.f32 %v1964_v13, %v5273_v36  ;;  %vm1986_vm11 = vweird.f32 %v4440_v27  ;;  %vm4540_vm15 = vmor %vm1333_vm10, %vm1334_vm12 }
 0x204   :  { %1512 = vmatmul.bf16.vlgmr.msra.gmra.mxu2 %v1480_v50  ;;  %v1982_v24 = vmul.f32 %v4485_v40, %v4440_v27  ;;  %v4501_v32 = vpop.xlane.xlu0 %1220  ;;  %v4507_v45 = vpop.eup %3080  ;;  %v1974_v26 = vsel %vm4495_vm9, %v4428_v34, %v1970_v3  ;;  %1532 = vmatmul.bf16.gmra.mxu3 %v1484_v29  ;;  %vm4527_vm13 = vcmp.eq.f32.partialorder %v1337_v52, 8.507059e+37  ;;  %v1990_v34 = vand.u32 2147483647, %v4440_v27 }
 0x205   :  { %2088 = vmatpush.bf16.msrb.mxu3 %v2085_v0  ;;  %v1331_v49 = vmul.f32 %v4467_v59, %v1330_v38  ;;  %3084 = vrcp.f32 %v4501_v32  ;;  %v1997_v35 = vmul.f32 %v4507_v45, %v4450_v48  ;;  %v4515_v17 = vpop.xlane.xlu1 %1823  ;;  %v1340_v28 = vor.u32 1.1754944e-38, %v1339_v22 }
 0x206   :  { %v1983_v53 = vsub.f32 1.0, %v1982_v24  ;;  %3086 = vrcp.f32 %v4515_v17  ;;  %v1979_v44 = vsel %vm1976_vm7, %v1978_v63, %v1974_v26  ;;  %vm2001_vm14 = vweird.f32 %v4450_v48  ;;  %v5298_v24 = vld [vmem:[#allocation64_spill] sm:$0xff] }
 0x207   :  { %v1998_v8 = vsub.f32 1.0, %v1997_v35  ;;  %v1332_v30 = vadd.f32 %v4467_v59, %v1331_v49  ;;  %v2007_v7 = vand.u32 2147483648, %v4450_v48  ;;  %v4545_v60 = vmul.f32 %v1979_v44, %v3781_v42 }
 0x208   :  { %v1984_v11 = vmul.f32 %v4485_v40, %v1983_v53  ;;  %v1993_v39 = vor.u32 1.1754944e-38, %v1992_v41  ;;  %vm1987_vm2 = vweird.f32 %v4485_v40  ;;  %v2005_v50 = vand.u32 2147483647, %v4450_v48 }
 0x209   :  { %2089 = vmatpush.bf16.msrb.mxu3 %v2084_v10  ;;  %v4534_v47 = vpop.eup %3082  ;;  %v1999_v54 = vmul.f32 %v4507_v45, %v1998_v8  ;;  %v2075_v42 = vpack.c.bf16 %v4545_v60, %v4524_v16  ;;  %vm4560_vm0 = vcmp.eq.f32.partialorder %v1990_v34, 8.507059e+37  ;;  %vm2002_vm6 = vweird.f32 %v4507_v45  ;;  %vm4581_vm1 = vmor %vm1986_vm11, %vm1987_vm2  ;;  %v5339_v60 = vld [vmem:[#allocation16_spill] sm:$0xff] }
 0x20a   :  { %v2027_v2 = vmul.f32 %v4534_v47, %v4489_v56  ;;  %v1336_v3 = vsel %vm4540_vm15, %v4467_v59, %v1332_v30  ;;  %v1352_v20 = vand.u32 2147483647, %v4501_v32  ;;  %v1985_v10 = vadd.f32 %v4485_v40, %v1984_v11  ;;  %vm4592_vm5 = vmor %vm2001_vm14, %vm2002_vm6 }
 0x20b   :  { %v4547_v19 = vpop.eup %3084  ;;  %v1354_v29 = vand.u32 2147483648, %v4501_v32  ;;  %v5280_v55 = vpack.c.bf16 %v3910_v62, %v3903_v46  ;;  %v2008_v59 = vor.u32 1.1754944e-38, %v2007_v7  ;;  %vm1348_vm3 = vweird.f32 %v4501_v32 }
 0x20c   :  { %v1344_v18 = vmul.f32 %v4547_v19, %v4501_v32  ;;  %v4556_v15 = vpop.xlane.xlu0 %1222  ;;  %v2028_v63 = vsub.f32 1.0, %v2027_v2  ;;  %vm1349_vm4 = vweird.f32 %v4547_v19  ;;  %v2000_v52 = vadd.f32 %v4507_v45, %v1999_v54 }
 0x20d   :  { %2090 = vmatpush.bf16.msrb.mxu3 %v2083_v51  ;;  %v4565_v51 = vpop.eup %3086  ;;  %3088 = vrcp.f32 %v4556_v15  ;;  %vm4596_vm8 = vcmp.eq.f32.partialorder %v2005_v50, 8.507059e+37  ;;  %vm2031_vm9 = vweird.f32 %v4489_v56  ;;  %v1341_v41 = vsel %vm4527_vm13, %v1340_v28, %v1336_v3  ;;  %vm4626_vm10 = vmor %vm1348_vm3, %vm1349_vm4 }
 0x20e   :  { %v1345_v38 = vsub.f32 1.0, %v1344_v18  ;;  %v2012_v13 = vmul.f32 %v4565_v51, %v4515_v17  ;;  %v2022_v48 = vand.u32 2147483648, %v4515_v17  ;;  %v2037_v49 = vand.u32 2147483648, %v4489_v56 }
 0x20f   :  { %vm4610_vm7 = vcmp.eq.f32.partialorder %v1352_v20, 8.507059e+37  ;;  %v1989_v35 = vsel %vm4581_vm1, %v4485_v40, %v1985_v10  ;;  %v2029_v26 = vmul.f32 %v4534_v47, %v2028_v63  ;;  %v5289_v36 = vpack.c.bf16 %v3890_v31, %v3870_v6 }
 0x210   :  { %v1346_v27 = vmul.f32 %v4547_v19, %v1345_v38  ;;  %v4608_v22 = vpop.xlane.xlu1 %1224  ;;  %v1355_v0 = vor.u32 1.1754944e-38, %v1354_v29  ;;  %v2004_v40 = vsel %vm4592_vm5, %v4507_v45, %v2000_v52  ;;  %v1369_v6 = vand.u32 2147483648, %v4556_v15 }
 0x211   :  { %2091 = vmatpush.bf16.msrb.mxu3 %v5280_v55  ;;  %3090 = vrcp.f32 %v4608_v22  ;;  %v1342_v31 = vmul.f32 %v1341_v41, %v3797_v37  ;;  %v2020_v30 = vand.u32 2147483647, %v4515_v17  ;;  %v2013_v32 = vsub.f32 1.0, %v2012_v13 }
 0x212   :  { %v1347_v11 = vadd.f32 %v4547_v19, %v1346_v27  ;;  %vm2016_vm12 = vweird.f32 %v4515_v17  ;;  %v1994_v44 = vsel %vm4560_vm0, %v1993_v39, %v1989_v35  ;;  %vm2032_vm11 = vweird.f32 %v4534_v47 }
 0x213   :  { %v4633_v34 = vpop.eup %3088  ;;  %v1367_v7 = vand.u32 2147483647, %v4556_v15  ;;  %v2009_v12 = vsel %vm4596_vm8, %v2008_v59, %v2004_v40  ;;  %v4653_v54 = vor.u32 1.1754944e-38, %v2022_v48  ;;  %vm1363_vm13 = vweird.f32 %v4556_v15  ;;  %vm4679_vm14 = vmor %vm2031_vm9, %vm2032_vm11  ;;  %v5299_v59 = vld [vmem:[#allocation62_spill] sm:$0xff] }
 0x214   :  { %v1359_v28 = vmul.f32 %v4633_v34, %v4556_v15  ;;  %v1351_v37 = vsel %vm4626_vm10, %v4547_v19, %v1347_v11  ;;  %v5292_v39 = vpack.c.bf16 %v3847_v58, %v3835_v21  ;;  %v4663_v19 = vadd.f32 %v4534_v47, %v2029_v26 }
 0x215   :  { %2092 = vmatpush.bf16.msrb.mxu3 %v5289_v36  ;;  %v4645_v45 = vpop.xlane.xlu0 %1208  ;;  %v4660_v50 = vpop.xlane.xlu2 %1206  ;;  %v1384_v18 = vand.u32 2147483648, %v4608_v22  ;;  %v5293_v1 = vpack.c.bf16 %v4062_v61, %v4059_v9  ;;  %v4670_v3 = vor.u32 1.1754944e-38, %v1369_v6  ;;  %v4673_v21 = vmul.f32 %v1994_v44, %v3788_v25 }
 0x216   :  { %v1360_v2 = vsub.f32 1.0, %v1359_v28  ;;  %3092 = vrcp.f32 %v4645_v45  ;;  %v2014_v10 = vmul.f32 %v4565_v51, %v2013_v32  ;;  %v1356_v61 = vsel %vm4610_vm7, %v1355_v0, %v1351_v37 }
 0x217   :  { %3094 = vrcp.f32 %v4660_v50  ;;  %1537 = vmatmul.bf16.gmra.mxu3 %v5293_v1  ;;  %v4683_v20 = vpop.eup %3090  ;;  %v4690_v25 = vmul.f32 %v2009_v12, %v3809_v57  ;;  %v1357_v29 = vmul.f32 %v1356_v61, %v3812_v4  ;;  %vm4697_vm15 = vcmp.eq.f32.partialorder %v1367_v7, 8.507059e+37  ;;  %v5322_v4 = vld [vmem:[#allocation33_spill] sm:$0xff] }
 0x218   :  { %v1361_v9 = vmul.f32 %v4633_v34, %v1360_v2  ;;  %v1374_v38 = vmul.f32 %v4683_v20, %v4608_v22  ;;  %v4695_v55 = vpop.xlane.xlu1 %1827  ;;  %vm2017_vm2 = vweird.f32 %v4565_v51  ;;  %vm1378_vm0 = vweird.f32 %v4608_v22 }
 0x219   :  { %2093 = vmatpush.bf16.msrb.mxu3 %v5292_v39  ;;  %v5300_v52 = vpack.c.bf16 %v5298_v24, %v5299_v59  ;;  %vm1364_vm6 = vweird.f32 %v4633_v34  ;;  %v1382_v57 = vand.u32 2147483647, %v4608_v22  ;;  %vm4708_vm1 = vcmp.eq.f32.partialorder %v2020_v30, 8.507059e+37  ;;  %vm4754_vm7 = vmor %vm2016_vm12, %vm2017_vm2 }
 0x21a   :  { %v2034_v46 = vsel %vm4679_vm14, %v4534_v47, %v4663_v19  ;;  %v1375_v62 = vsub.f32 1.0, %v1374_v38  ;;  %v1481_v27 = vpack.c.bf16 %v1357_v29, %v1342_v31  ;;  %vm1379_vm3 = vweird.f32 %v4683_v20  ;;  %vm4732_vm5 = vmor %vm1363_vm13, %vm1364_vm6  ;;  %v5325_v31 = vld [vmem:[#allocation69_spill] sm:$0xff] }
 0x21b   :  { %v1385_v13 = vor.u32 1.1754944e-38, %v1384_v18  ;;  %v1362_v48 = vadd.f32 %v4633_v34, %v1361_v9  ;;  %v2076_v53 = vpack.c.bf16 %v4690_v25, %v4673_v21  ;;  %v2015_v35 = vadd.f32 %v4565_v51, %v2014_v10  ;;  %vm4744_vm8 = vmor %vm1378_vm0, %vm1379_vm3  ;;  %v5345_v25 = vld [vmem:[#allocation25_spill] sm:$0xff] }
 0x21c   :  { %v3093_v41 = vpop.eup %3092  ;;  %v2035_v26 = vand.u32 2147483647, %v4489_v56  ;;  %v1376_v8 = vmul.f32 %v4683_v20, %v1375_v62  ;;  %vm1258_vm4 = vweird.f32 %v4645_v45  ;;  %v1262_v40 = vand.u32 2147483647, %v4645_v45  ;;  %1517 = vmatmul.bf16.gmra.mxu2 %v1481_v27 }
 0x21d   :  { %2094 = vmatpush.bf16.msrb.mxu3 %v5300_v52  ;;  %v3095_v36 = vpop.eup %3094  ;;  %v1254_v0 = vmul.f32 %v3093_v41, %v4645_v45  ;;  %v4726_v6 = vpop.xlane.xlu0 %1210  ;;  %v1264_v11 = vand.u32 2147483648, %v4645_v45  ;;  %v1247_v32 = vand.u32 2147483647, %v4660_v50  ;;  %vm1259_vm9 = vweird.f32 %v3093_v41 }
 0x21e   :  { %v1239_v30 = vmul.f32 %v3095_v36, %v4660_v50  ;;  %3096 = vrcp.f32 %v4726_v6  ;;  %v1249_v44 = vand.u32 2147483648, %v4660_v50  ;;  %v1377_v37 = vadd.f32 %v4683_v20, %v1376_v8  ;;  %vm4771_vm2 = vmor %vm1258_vm4, %vm1259_vm9  ;;  %v5321_v8 = vld [vmem:[#allocation68_spill] sm:$0xff] }
 0x21f   :  { %v1255_v15 = vsub.f32 1.0, %v1254_v0  ;;  %vm1243_vm10 = vweird.f32 %v4660_v50  ;;  %vm1244_vm11 = vweird.f32 %v3095_v36  ;;  %v1366_v22 = vsel %vm4732_vm5, %v4633_v34, %v1362_v48 }
 0x220   :  { %v1240_v12 = vsub.f32 1.0, %v1239_v30  ;;  %vm4762_vm13 = vcmp.eq.f32.partialorder %v1262_v40, 8.507059e+37  ;;  %v1213_v18 = vpop.xlane.xlu1 %1212  ;;  %v1381_v17 = vsel %vm4744_vm8, %v4683_v20, %v1377_v37  ;;  %vm1383_vm12 = vcmp.eq.f32.partialorder %v1382_v57, 8.507059e+37  ;;  %vm4778_vm0 = vmor %vm1243_vm10, %vm1244_vm11  ;;  %v1830_v16 = vpop.xlane.xlu2 %1829 }
 0x221   :  { %v1256_v2 = vmul.f32 %v3093_v41, %v1255_v15  ;;  %v1265_v1 = vor.u32 1.1754944e-38, %v1264_v11  ;;  %3098 = vrcp.f32 %v1213_v18  ;;  %v2019_v34 = vsel %vm4754_vm7, %v4565_v51, %v2015_v35 }
 0x222   :  { %v1241_v10 = vmul.f32 %v3095_v36, %v1240_v12  ;;  %vm4782_vm6 = vcmp.eq.f32.partialorder %v1247_v32, 8.507059e+37  ;;  %v1250_v45 = vor.u32 1.1754944e-38, %v1249_v44  ;;  %v1371_v38 = vsel %vm4697_vm15, %v4670_v3, %v1366_v22  ;;  %v5326_v32 = vld [vmem:[#allocation63_spill] sm:$0xff] }
 0x223   :  { %v1257_v9 = vadd.f32 %v3093_v41, %v1256_v2  ;;  %v1386_v59 = vsel %vm1383_vm12, %v1385_v13, %v1381_v17  ;;  %vm4789_vm3 = vcmp.eq.f32.partialorder %v2035_v26, 8.507059e+37  ;;  %v2038_v51 = vor.u32 1.1754944e-38, %v2037_v49  ;;  %v5319_v13 = vld [vmem:[#allocation66_spill] sm:$0xff]  ;;  %v5327_v2 = vld [vmem:[#allocation65_spill] sm:$0xff] }
 0x224   :  { %v3097_v29 = vpop.eup %3096  ;;  %v1242_v24 = vadd.f32 %v3095_v36, %v1241_v10  ;;  %vm1273_vm4 = vweird.f32 %v4726_v6  ;;  %v2024_v3 = vsel %vm4708_vm1, %v4653_v54, %v2019_v34  ;;  %v1279_v27 = vand.u32 2147483648, %v4726_v6  ;;  %v5323_v54 = vld [vmem:[#allocation35_spill] sm:$0xff] }
 0x225   :  { %v1261_v57 = vsel %vm4771_vm2, %v3093_v41, %v1257_v9  ;;  %v1269_v62 = vmul.f32 %v3097_v29, %v4726_v6  ;;  %v1372_v48 = vmul.f32 %v1371_v38, %v5319_v13  ;;  %v5320_v41 = vld [vmem:[#allocation67_spill] sm:$0xff]  ;;  %v5324_v40 = vpack.c.bf16 %v5322_v4, %v5323_v54 }
 0x226   :  { %v1246_v63 = vsel %vm4778_vm0, %v3095_v36, %v1242_v24  ;;  %v1266_v56 = vsel %vm4762_vm13, %v1265_v1, %v1261_v57  ;;  %v1387_v35 = vmul.f32 %v1386_v59, %v5320_v41  ;;  %vm1274_vm15 = vweird.f32 %v3097_v29  ;;  %v5329_v38 = vld [vmem:[#allocation71_spill] sm:$0xff]  ;;  %v4849_v57 = vld [vmem:[%s5021_s4] ss:$0 sm:$0xff] }
 0x227   :  { %v1270_v49 = vsub.f32 1.0, %v1269_v62  ;;  %v1251_v26 = vsel %vm4782_vm6, %v1250_v45, %v1246_v63  ;;  %v1267_v0 = vmul.f32 %v1266_v56, %v5321_v8  ;;  %2095 = vmatmul.bf16.vlgmr.msrb.gmra.mxu3 %v5324_v40  ;;  %v3099_v36 = vpop.eup %3098  ;;  %v1277_v30 = vand.u32 2147483647, %v4726_v6  ;;  %vm1275_vm5 = vmor %vm1273_vm4, %vm1274_vm15  ;;  %v5328_v6 = vld [vmem:[#allocation46_spill] sm:$0xff]  ;;  %v5334_v62 = vld [vmem:[#allocation15_spill] sm:$0xff] }
 0x228   :  { %v1252_v11 = vmul.f32 %v1251_v26, %v5325_v31  ;;  %v4818_v28 = vmul.f32 %v2024_v3, %v5326_v32  ;;  %v1284_v15 = vmul.f32 %v3099_v36, %v1213_v18  ;;  %vm1288_vm1 = vweird.f32 %v1213_v18  ;;  %v5341_v3 = vld [vmem:[#allocation20_spill] sm:$0xff]  ;;  %v5343_v8 = vld [vmem:[#allocation23_spill] sm:$0xff] }
 0x229   :  { %v1271_v44 = vmul.f32 %v3097_v29, %v1270_v49  ;;  %v2039_v37 = vsel %vm4789_vm3, %v2038_v51, %v2034_v46  ;;  %v1294_v7 = vand.u32 2147483648, %v1213_v18  ;;  %v1292_v22 = vand.u32 2147483647, %v1213_v18  ;;  %v5332_v51 = vld [vmem:[#allocation45_spill] sm:$0xff]  ;;  %v5342_v63 = vld [vmem:[#allocation24_spill] sm:$0xff] }
 0x22a   :  { %v1478_v12 = vpack.c.bf16 %v1267_v0, %v1252_v11  ;;  %v4828_v39 = vmul.f32 %v2039_v37, %v5327_v2  ;;  %v1285_v17 = vsub.f32 1.0, %v1284_v15  ;;  %v1482_v50 = vpack.c.bf16 %v1387_v35, %v1372_v48  ;;  %v5344_v0 = vld [vmem:[#allocation26_spill] sm:$0xff]  ;;  %v5353_v2 = vld [vmem:[#allocation13_spill] sm:$0xff] }
 0x22b   :  { %v1272_v1 = vadd.f32 %v3097_v29, %v1271_v44  ;;  %vm1289_vm8 = vweird.f32 %v3099_v36  ;;  %v1280_v58 = vor.u32 1.1754944e-38, %v1279_v27  ;;  %vm1278_vm14 = vcmp.eq.f32.partialorder %v1277_v30, 8.507059e+37  ;;  %v5351_v44 = vld [vmem:[#allocation27_spill] sm:$0xff] }
 0x22c   :  { %1502 = vmatmul.bf16.vlgmr.msra.gmra.mxu0 %v1478_v12  ;;  %v2077_v47 = vpack.c.bf16 %v4828_v39, %v4818_v28  ;;  %v1286_v19 = vmul.f32 %v3099_v36, %v1285_v17  ;;  %1522 = vmatmul.bf16.gmra.mxu2 %v1482_v50  ;;  %vm1290_vm9 = vmor %vm1288_vm1, %vm1289_vm8  ;;  %v1295_v10 = vor.u32 1.1754944e-38, %v1294_v7  ;;  %vm1293_vm7 = vcmp.eq.f32.partialorder %v1292_v22, 8.507059e+37  ;;  %v5352_v28 = vld [vmem:[#allocation29_spill] sm:$0xff] }
 0x22d   :  { %v1276_v46 = vsel %vm1275_vm5, %v3097_v29, %v1272_v1  ;;  %v5330_v59 = vpack.c.bf16 %v4317_v33, %v4275_v14  ;;  %v5331_v29 = vld [vmem:[#allocation48_spill] sm:$0xff]  ;;  %vm2169_vm10 = vcmp.eq.s32.totalorder %v5334_v62, %v4849_v57  ;;  %v3213_v14 = vmov 1.0   ;;  %v5335_v33 = vld [vmem:[#allocation14_spill] sm:$0xff] }
 0x22e   :  { %v1287_v34 = vadd.f32 %v3099_v36, %v1286_v19  ;;  %v1281_v9 = vsel %vm1278_vm14, %v1280_v58, %v1276_v46  ;;  %v5333_v18 = vpack.c.bf16 %v5331_v29, %v5332_v51  ;;  %2907 = vmatpush.lsf.msk.msk.msrb.mxu0 %vm2169_vm10, %v3213_v14  ;;  %2923 = vmatpush.lsf.msk.msk.msrb.mxu1 %vm2169_vm10, %v3213_v14  ;;  %3100 = vrcp.f32 %v4695_v55  ;;  %v5354_v1 = vld [vmem:[#allocation70_spill] sm:$0xff] }
 0x22f   :  { %v1282_v45 = vmul.f32 %v1281_v9, %v5328_v6  ;;  %vm2168_vm11 = vcmp.eq.s32.totalorder %v5335_v33, %v4849_v57  ;;  %vm2167_vm13 = vcmp.eq.s32.totalorder %v5336_v5, %v4849_v57  ;;  %vm2166_vm12 = vcmp.eq.s32.totalorder %v5337_v43, %v4849_v57  ;;  %v5355_v19 = vld [vmem:[#allocation42_spill] sm:$0xff] }
 0x230   :  { %v1291_v61 = vsel %vm1290_vm9, %v3099_v36, %v1287_v34  ;;  %2908 = vmatpush.lsf.msk.msk.msrb.mxu0 %vm2168_vm11, %v3213_v14  ;;  %2924 = vmatpush.lsf.msk.msk.msrb.mxu1 %vm2168_vm11, %v3213_v14  ;;  %vm2164_vm0 = vcmp.eq.s32.totalorder %v5339_v60, %v4849_v57  ;;  %3102 = vrcp.f32 %v1830_v16  ;;  %vm2162_vm3 = vcmp.eq.s32.totalorder %v5341_v3, %v4849_v57 }
 0x231   :  { %v1296_v20 = vsel %vm1293_vm7, %v1295_v10, %v1291_v61  ;;  %vm2161_vm4 = vcmp.eq.s32.totalorder %v5342_v63, %v4849_v57  ;;  %vm2160_vm15 = vcmp.eq.s32.totalorder %v5343_v8, %v4849_v57  ;;  %vm2159_vm1 = vcmp.eq.s32.totalorder %v5344_v0, %v4849_v57 }
 0x232   :  { %v1297_v24 = vmul.f32 %v1296_v20, %v5329_v38  ;;  %2909 = vmatpush.lsf.msk.msk.msrb.mxu0 %vm2167_vm13, %v3213_v14  ;;  %2925 = vmatpush.lsf.msk.msk.msrb.mxu1 %vm2167_vm13, %v3213_v14  ;;  %vm2158_vm5 = vcmp.eq.s32.totalorder %v5345_v25, %v4849_v57  ;;  %vm2046_vm8 = vweird.f32 %v4695_v55  ;;  %vm2061_vm9 = vweird.f32 %v1830_v16 }
 0x233   :  { %v2052_v54 = vand.u32 2147483648, %v4695_v55  ;;  %v2067_v40 = vand.u32 2147483648, %v1830_v16  ;;  %v2050_v11 = vand.u32 2147483647, %v4695_v55  ;;  %v2065_v32 = vand.u32 2147483647, %v1830_v16 }
 0x234   :  { %v1479_v52 = vpack.c.bf16 %v1297_v24, %v1282_v45  ;;  %2910 = vmatpush.lsf.msk.msk.msrb.mxu0 %vm2166_vm12, %v3213_v14  ;;  %2926 = vmatpush.lsf.msk.msk.msrb.mxu1 %vm2166_vm12, %v3213_v14  ;;  %v3101_v27 = vpop.eup %3100  ;;  %vm2156_vm12 = vcmp.eq.s32.totalorder %v5351_v44, %v4849_v57 }
 0x235   :  { %v2042_v56 = vmul.f32 %v3101_v27, %v4695_v55  ;;  %vm2047_vm14 = vweird.f32 %v3101_v27  ;;  %v2053_v7 = vor.u32 1.1754944e-38, %v2052_v54  ;;  %v2068_v12 = vor.u32 1.1754944e-38, %v2067_v40 }
 0x236   :  { %v3103_v13 = vpop.eup %3102  ;;  %vm4918_vm11 = vmor %vm2046_vm8, %vm2047_vm14 }
 0x237   :  { %2100 = vmatmul.bf16.gmra.mxu3 %v5330_v59  ;;  %v2057_v49 = vmul.f32 %v3103_v13, %v1830_v16  ;;  %v2043_v41 = vsub.f32 1.0, %v2042_v56  ;;  %vm2062_vm7 = vweird.f32 %v3103_v13 }
 0x238   :  { %vm4923_vm13 = vmor %vm2061_vm9, %vm2062_vm7 }
 0x239   :  { %v2058_v35 = vsub.f32 1.0, %v2057_v49  ;;  %v2044_v4 = vmul.f32 %v3101_v27, %v2043_v41 }
 0x23b   :  { %v2059_v21 = vmul.f32 %v3103_v13, %v2058_v35  ;;  %v2045_v36 = vadd.f32 %v3101_v27, %v2044_v4 }
 0x23c   :  { %1507 = vmatmul.bf16.gmra.mxu0 %v1479_v52 }
 0x23d   :  { %v2060_v30 = vadd.f32 %v3103_v13, %v2059_v21  ;;  %v2049_v55 = vsel %vm4918_vm11, %v3101_v27, %v2045_v36 }
 0x23f   :  { %v2064_v22 = vsel %vm4923_vm13, %v3103_v13, %v2060_v30 }
 0x247   :  { %2105 = vmatmul.bf16.gmra.mxu3 %v5333_v18 }
 0x257   :  { %2110 = vmatmul.bf16.gmra.mxu3 %v2074_v23  ;;  %v5338_v23 = vld [vmem:[#allocation17_spill] sm:$0xff] }
 0x258   :  { %vm2165_vm2 = vcmp.eq.s32.totalorder %v5338_v23, %v4849_v57 }
 0x259   :  { %2911 = vmatpush.lsf.msk.msk.msrb.mxu0 %vm2165_vm2, %v3213_v14  ;;  %2927 = vmatpush.lsf.msk.msk.msrb.mxu1 %vm2165_vm2, %v3213_v14  ;;  %vm2155_vm2 = vcmp.eq.s32.totalorder %v5352_v28, %v4849_v57 }
 0x25b   :  { %2912 = vmatpush.lsf.msk.msk.msrb.mxu0 %vm2164_vm0, %v3213_v14  ;;  %2928 = vmatpush.lsf.msk.msk.msrb.mxu1 %vm2164_vm0, %v3213_v14  ;;  %vm2051_vm0 = vcmp.eq.f32.partialorder %v2050_v11, 8.507059e+37 }
 0x25c   :  { %v2054_v17 = vsel %vm2051_vm0, %v2053_v7, %v2049_v55 }
 0x267   :  { %2115 = vmatmul.bf16.gmra.mxu3 %v2075_v42  ;;  %v5340_v42 = vld [vmem:[#allocation21_spill] sm:$0xff] }
 0x268   :  { %vm2163_vm6 = vcmp.eq.s32.totalorder %v5340_v42, %v4849_v57 }
 0x269   :  { %2913 = vmatpush.lsf.msk.msk.msrb.mxu0 %vm2163_vm6, %v3213_v14  ;;  %2929 = vmatpush.lsf.msk.msk.msrb.mxu1 %vm2163_vm6, %v3213_v14  ;;  %vm2066_vm6 = vcmp.eq.f32.partialorder %v2065_v32, 8.507059e+37 }
 0x26a   :  { %v2069_v50 = vsel %vm2066_vm6, %v2068_v12, %v2064_v22  ;;  %vm2456_vm6 = vcmask 261120  }
 0x26b   :  { %2914 = vmatpush.lsf.msk.msk.msrb.mxu0 %vm2162_vm3, %v3213_v14  ;;  %2930 = vmatpush.lsf.msk.msk.msrb.mxu1 %vm2162_vm3, %v3213_v14  ;;  %vm2154_vm3 = vcmp.eq.s32.totalorder %v5353_v2, %v4849_v57  ;;  %v2070_v58 = vmul.f32 %v2069_v50, %v5355_v19 }
 0x26d   :  { %2915 = vmatpush.lsf.msk.msk.msrb.mxu0 %vm2161_vm4, %v3213_v14  ;;  %2931 = vmatpush.lsf.msk.msk.msrb.mxu1 %vm2161_vm4, %v3213_v14 }
 0x26f   :  { %2916 = vmatpush.lsf.msk.msk.msrb.mxu0 %vm2160_vm15, %v3213_v14  ;;  %2932 = vmatpush.lsf.msk.msk.msrb.mxu1 %vm2160_vm15, %v3213_v14 }
 0x271   :  { %2917 = vmatpush.lsf.msk.msk.msrb.mxu0 %vm2159_vm1, %v3213_v14  ;;  %2933 = vmatpush.lsf.msk.msk.msrb.mxu1 %vm2159_vm1, %v3213_v14 }
 0x273   :  { %2918 = vmatpush.lsf.msk.msk.msrb.mxu0 %vm2158_vm5, %v3213_v14  ;;  %2934 = vmatpush.lsf.msk.msk.msrb.mxu1 %vm2158_vm5, %v3213_v14 }
 0x277   :  { %2120 = vmatmul.bf16.gmra.mxu3 %v2076_v53  ;;  %v4894_v48 = vpop.f32.mrf.mxu3  ;;  %v5346_v53 = vld [vmem:[#allocation28_spill] sm:$0xff] }
 0x278   :  { %vm2157_vm10 = vcmp.eq.s32.totalorder %v5346_v53, %v4849_v57  ;;  %v1553_v18 = vmax.f32 %v4894_v48, 0.0 }
 0x279   :  { %2919 = vmatpush.lsf.msk.msk.msrb.mxu0 %vm2157_vm10, %v3213_v14  ;;  %2935 = vmatpush.lsf.msk.msk.msrb.mxu1 %vm2157_vm10, %v3213_v14 }
 0x27b   :  { %2920 = vmatpush.lsf.msk.msk.msrb.mxu0 %vm2156_vm12, %v3213_v14  ;;  %2936 = vmatpush.lsf.msk.msk.msrb.mxu1 %vm2156_vm12, %v3213_v14 }
 0x27d   :  { %2921 = vmatpush.lsf.msk.msk.msrb.mxu0 %vm2155_vm2, %v3213_v14  ;;  %2937 = vmatpush.lsf.msk.msk.msrb.mxu1 %vm2155_vm2, %v3213_v14 }
 0x27f   :  { %v4897_v26 = vpop.f32.mrf.mxu3  ;;  %2922 = vmatpush.lsf.msk.msk.msrb.mxu0 %vm2154_vm3, %v3213_v14  ;;  %2938 = vmatpush.lsf.msk.msk.msrb.mxu1 %vm2154_vm3, %v3213_v14 }
 0x280   :  { %2878 = vllmr.4.mxu0  ;;  %2902 = vllmr.4.mxu1  ;;  %v1554_v51 = vmax.f32 %v4897_v26, 0.0 }
 0x287   :  { %2125 = vmatmul.bf16.gmra.mxu3 %v2077_v47  ;;  %v1533_v37 = vpop.f32.mrf.mxu3  ;;  %v1513_v39 = vpop.f32.mrf.mxu2  ;;  %v2055_v47 = vmul.f32 %v2054_v17, %v5354_v1 }
 0x288   :  { %v1555_v59 = vmax.f32 %v1533_v37, 0.0  ;;  %v1547_v13 = vmax.f32 %v1513_v39, 0.0 }
 0x289   :  { %v2078_v10 = vpack.c.bf16 %v2070_v58, %v2055_v47  ;;  %v3214_v58 = vmov 32.0  }
 0x28a   :  { %3104 = vrcp.f32 %v3214_v58 }
 0x28f   :  { %v1535_v46 = vpop.f32.mrf.mxu3  ;;  %v1515_v34 = vpop.f32.mrf.mxu2 }
 0x290   :  { %v1556_v38 = vmax.f32 %v1535_v46, 0.0  ;;  %v1548_v3 = vmax.f32 %v1515_v34, 0.0 }
 0x297   :  { %2130 = vmatmul.bf16.gmra.mxu3 %v2078_v10  ;;  %v3105_v10 = vpop.eup %3104 }
 0x298   :  { %v2302_v34 = vmul.f32 32.0, %v3105_v10  ;;  %vm2306_vm4 = vweird.f32 %v3105_v10 }
 0x29a   :  { %v1538_v9 = vpop.f32.mrf.mxu3 }
 0x29b   :  { %v1557_v45 = vmax.f32 %v1538_v9, 0.0 }
 0x29f   :  { %v1518_v61 = vpop.f32.mrf.mxu2 }
 0x2a0   :  { %v1549_v42 = vmax.f32 %v1518_v61, 0.0 }
 0x2a2   :  { %v1540_v20 = vpop.f32.mrf.mxu3 }
 0x2a3   :  { %v1558_v6 = vmax.f32 %v1540_v20, 0.0 }
 0x2a5   :  { %2234 = vmatpush.msra.mxu0 %v1558_v6  ;;  %v2303_v6 = vsub.f32 1.0, %v2302_v34 }
 0x2a7   :  { %2235 = vmatpush.msra.mxu0 %v1557_v45  ;;  %v1520_v24 = vpop.f32.mrf.mxu2 }
 0x2a8   :  { %v1550_v60 = vmax.f32 %v1520_v24, 0.0  ;;  %v2304_v24 = vmul.f32 %v3105_v10, %v2303_v6 }
 0x2a9   :  { %v1503_v52 = vpop.f32.mrf.mxu0  ;;  %2236 = vmatpush.msra.mxu0 %v1556_v38 }
 0x2aa   :  { %v4947_v29 = vpop.f32.mrf.mxu3  ;;  %v1543_v35 = vmax.f32 %v1503_v52, 0.0 }
 0x2ab   :  { %2237 = vmatpush.msra.mxu0 %v1555_v59  ;;  %v2136_v1 = vmax.f32 %v4947_v29, 0.0  ;;  %v2305_v29 = vadd.f32 %v3105_v10, %v2304_v24 }
 0x2ad   :  { %2238 = vmatpush.msra.mxu0 %v1554_v51 }
 0x2af   :  { %2239 = vmatpush.msra.mxu0 %v1553_v18  ;;  %v1523_v57 = vpop.f32.mrf.mxu2 }
 0x2b0   :  { %v1551_v16 = vmax.f32 %v1523_v57, 0.0  ;;  %v3215_v57 = vmov 31.0  }
 0x2b1   :  { %v1505_v62 = vpop.f32.mrf.mxu0  ;;  %3106 = vrcp.f32 %v3215_v57 }
 0x2b2   :  { %v4951_v14 = vpop.f32.mrf.mxu3  ;;  %v1544_v49 = vmax.f32 %v1505_v62, 0.0  ;;  %v4958_v62 = vsel %vm2306_vm4, %v3105_v10, %v2305_v29 }
 0x2b3   :  { %v2137_v50 = vmax.f32 %v4951_v14, 0.0 }
 0x2b7   :  { %v1525_v33 = vpop.f32.mrf.mxu2 }
 0x2b8   :  { %v1552_v5 = vmax.f32 %v1525_v33, 0.0 }
 0x2b9   :  { %v1508_v43 = vpop.f32.mrf.mxu0 }
 0x2ba   :  { %v4953_v23 = vpop.f32.mrf.mxu3  ;;  %2240 = vmatpush.msra.mxu0 %v1552_v5  ;;  %v1545_v56 = vmax.f32 %v1508_v43, 0.0  ;;  %v3107_v5 = vpop.eup %3106 }
 0x2bb   :  { %v2138_v17 = vmax.f32 %v4953_v23, 0.0  ;;  %vm2345_vm15 = vweird.f32 %v3107_v5 }
 0x2bc   :  { %2241 = vmatpush.msra.mxu0 %v1551_v16 }
 0x2be   :  { %2242 = vmatpush.msra.mxu0 %v1550_v60 }
 0x2c0   :  { %2243 = vmatpush.msra.mxu0 %v1549_v42 }
 0x2c1   :  { %v1510_v63 = vpop.f32.mrf.mxu0 }
 0x2c2   :  { %v2103_v27 = vpop.f32.mrf.mxu3  ;;  %2244 = vmatpush.msra.mxu0 %v1548_v3  ;;  %v1546_v48 = vmax.f32 %v1510_v63, 0.0  ;;  %v2341_v63 = vmul.f32 31.0, %v3107_v5 }
 0x2c3   :  { %v2139_v39 = vmax.f32 %v2103_v27, 0.0 }
 0x2c4   :  { %2245 = vmatpush.msra.mxu0 %v1547_v13 }
 0x2c6   :  { %2246 = vmatpush.msra.mxu0 %v1546_v48 }
 0x2c8   :  { %2247 = vmatpush.msra.mxu0 %v1545_v56 }
 0x2ca   :  { %v2106_v41 = vpop.f32.mrf.mxu3  ;;  %2248 = vmatpush.msra.mxu0 %v1544_v49  ;;  %v2342_v49 = vsub.f32 1.0, %v2341_v63 }
 0x2cb   :  { %v2140_v2 = vmax.f32 %v2106_v41, 0.0 }
 0x2cc   :  { %2249 = vmatpush.msra.mxu0 %v1543_v35 }
 0x2cd   :  { %2879 = vmatmul.lmr.bf16.vlgmr.msra.gmra.4.mxu0 }
 0x2d2   :  { %v2108_v26 = vpop.f32.mrf.mxu3 }
 0x2d3   :  { %v2141_v22 = vmax.f32 %v2108_v26, 0.0  ;;  %v2343_v26 = vmul.f32 %v3107_v5, %v2342_v49 }
 0x2d5   :  { %2880 = vmatmul.lmr.bf16.gmra.4.mxu0 }
 0x2da   :  { %v2111_v8 = vpop.f32.mrf.mxu3 }
 0x2db   :  { %v2142_v12 = vmax.f32 %v2111_v8, 0.0 }
 0x2dd   :  { %2881 = vmatmul.lmr.bf16.gmra.4.mxu0 }
 0x2e2   :  { %v2113_v0 = vpop.f32.mrf.mxu3 }
 0x2e3   :  { %v2143_v7 = vmax.f32 %v2113_v0, 0.0 }
 0x2e5   :  { %2882 = vmatmul.lmr.bf16.gmra.4.mxu0 }
 0x2ea   :  { %v2116_v4 = vpop.f32.mrf.mxu3 }
 0x2eb   :  { %v2144_v55 = vmax.f32 %v2116_v4, 0.0  ;;  %v2344_v4 = vadd.f32 %v3107_v5, %v2343_v26 }
 0x2f2   :  { %v2118_v21 = vpop.f32.mrf.mxu3 }
 0x2f3   :  { %v2145_v37 = vmax.f32 %v2118_v21, 0.0 }
 0x2fa   :  { %v2121_v25 = vpop.f32.mrf.mxu3 }
 0x2fb   :  { %v2146_v28 = vmax.f32 %v2121_v25, 0.0 }
 0x302   :  { %v2123_v53 = vpop.f32.mrf.mxu3 }
 0x303   :  { %v2147_v44 = vmax.f32 %v2123_v53, 0.0  ;;  %v4961_v53 = vsel %vm2345_vm15, %v3107_v5, %v2344_v4 }
 0x30a   :  { %v2126_v54 = vpop.f32.mrf.mxu3 }
 0x30b   :  { %v2148_v15 = vmax.f32 %v2126_v54, 0.0 }
 0x312   :  { %v2128_v40 = vpop.f32.mrf.mxu3 }
 0x313   :  { %v2149_v32 = vmax.f32 %v2128_v40, 0.0 }
 0x31a   :  { %v2131_v36 = vpop.f32.mrf.mxu3 }
 0x31b   :  { %v2150_v30 = vmax.f32 %v2131_v36, 0.0 }
 0x322   :  { %v2133_v31 = vpop.f32.mrf.mxu3 }
 0x323   :  { %v2151_v11 = vmax.f32 %v2133_v31, 0.0 }
 0x325   :  { %2263 = vmatpush.msra.mxu1 %v2151_v11 }
 0x327   :  { %2264 = vmatpush.msra.mxu1 %v2150_v30 }
 0x329   :  { %2265 = vmatpush.msra.mxu1 %v2149_v32 }
 0x32b   :  { %2266 = vmatpush.msra.mxu1 %v2148_v15 }
 0x32d   :  { %2267 = vmatpush.msra.mxu1 %v2147_v44 }
 0x32f   :  { %2268 = vmatpush.msra.mxu1 %v2146_v28 }
 0x331   :  { %2269 = vmatpush.msra.mxu1 %v2145_v37 }
 0x333   :  { %2270 = vmatpush.msra.mxu1 %v2144_v55 }
 0x335   :  { %2271 = vmatpush.msra.mxu1 %v2143_v7 }
 0x337   :  { %2272 = vmatpush.msra.mxu1 %v2142_v12 }
 0x339   :  { %2273 = vmatpush.msra.mxu1 %v2141_v22 }
 0x33b   :  { %2274 = vmatpush.msra.mxu1 %v2140_v2 }
 0x33d   :  { %2275 = vmatpush.msra.mxu1 %v2139_v39 }
 0x33f   :  { %2276 = vmatpush.msra.mxu1 %v2138_v17 }
 0x341   :  { %2277 = vmatpush.msra.mxu1 %v2137_v50 }
 0x343   :  { %2278 = vmatpush.msra.mxu1 %v2136_v1 }
 0x344   :  { %2903 = vmatmul.lmr.bf16.vlgmr.msra.gmra.4.mxu1 }
 0x34a   :  { %v2251_v47 = vpop.f32.mrf.mxu0 }
 0x34c   :  { %2904 = vmatmul.lmr.bf16.gmra.4.mxu1 }
 0x352   :  { %v2254_v19 = vpop.f32.mrf.mxu0 }
 0x353   :  { %v2292_v9 = vadd.f32 %v2254_v19, %v2251_v47 }
 0x354   :  { %2905 = vmatmul.lmr.bf16.gmra.4.mxu1 }
 0x35a   :  { %v2257_v46 = vpop.f32.mrf.mxu0 }
 0x35b   :  { %v2293_v61 = vadd.f32 %v2292_v9, %v2257_v46 }
 0x35c   :  { %2906 = vmatmul.lmr.bf16.gmra.4.mxu1 }
 0x362   :  { %v2260_v20 = vpop.f32.mrf.mxu0 }
 0x363   :  { %v2294_v45 = vadd.f32 %v2293_v61, %v2260_v20 }
 0x365   :  { %v2295_v38 = vrot.slane %v2294_v45, 4 }
 0x367   :  { %v2296_v59 = vadd.f32 %v2295_v38, %v2294_v45 }
 0x369   :  { %v2297_v52 = vrot.slane %v2296_v59, 2 }
 0x36b   :  { %v2298_v51 = vadd.f32 %v2297_v52, %v2296_v59 }
 0x36d   :  { %v2299_v18 = vrot.slane %v2298_v51, 1 }
 0x36f   :  { %v2300_v14 = vadd.f32 %v2299_v18, %v2298_v51 }
 0x371   :  { %v2308_v33 = vmul.f32 %v4958_v62, %v2300_v14 }
 0x373   :  { %v2309_v43 = vsub.f32 %v2251_v47, %v2308_v33  ;;  %v2310_v23 = vsub.f32 %v2254_v19, %v2308_v33  ;;  %v2311_v16 = vsub.f32 %v2257_v46, %v2308_v33  ;;  %v2312_v60 = vsub.f32 %v2260_v20, %v2308_v33 }
 0x375   :  { %v2327_v42 = vmul.f32 %v2309_v43, %v2309_v43  ;;  %v2328_v3 = vmul.f32 %v2310_v23, %v2310_v23  ;;  %v2329_v27 = vmul.f32 %v2311_v16, %v2311_v16  ;;  %v2330_v48 = vmul.f32 %v2312_v60, %v2312_v60 }
 0x377   :  { %v2331_v13 = vadd.f32 %v2328_v3, %v2327_v42 }
 0x379   :  { %v2332_v56 = vadd.f32 %v2331_v13, %v2329_v27 }
 0x37b   :  { %v2333_v41 = vadd.f32 %v2332_v56, %v2330_v48 }
 0x37d   :  { %v2334_v35 = vrot.slane %v2333_v41, 4 }
 0x37f   :  { %v2335_v8 = vadd.f32 %v2334_v35, %v2333_v41 }
 0x381   :  { %v2336_v0 = vrot.slane %v2335_v8, 2 }
 0x383   :  { %v2337_v21 = vadd.f32 %v2336_v0, %v2335_v8 }
 0x385   :  { %v2338_v25 = vrot.slane %v2337_v21, 1 }
 0x387   :  { %v2339_v54 = vadd.f32 %v2338_v25, %v2337_v21 }
 0x389   :  { %v2347_v40 = vmul.f32 %v4961_v53, %v2339_v54 }
 0x38b   :  { %3108 = vrsqrt.f32 %v2347_v40  ;;  %vm2355_vm1 = vcmp.eq.f32.partialorder %v2347_v40, inf  ;;  %v2358_v28 = vand.u32 2147483648, %v2347_v40  ;;  %vm2357_vm5 = vcmp.eq.f32.partialorder %v2347_v40, 0.0 }
 0x391   :  { %v3109_v36 = vpop.eup %3108 }
 0x392   :  { %v2349_v31 = vmul.f32 %v3109_v36, %v2347_v40 }
 0x394   :  { %v2350_v11 = vmul.f32 %v3109_v36, %v2349_v31 }
 0x396   :  { %v2351_v30 = vmul.f32 0.5, %v2350_v11 }
 0x398   :  { %v2352_v32 = vsub.f32 1.5, %v2351_v30 }
 0x39a   :  { %v2353_v15 = vmul.f32 %v3109_v36, %v2352_v32 }
 0x39c   :  { %v2354_v44 = vmul.f32 %v2353_v15, %v2347_v40 }
 0x39e   :  { %v2356_v37 = vsel %vm2355_vm1, %v2347_v40, %v2354_v44 }
 0x39f   :  { %v2359_v55 = vsel %vm2357_vm5, %v2358_v28, %v2356_v37 }
 0x3a0   :  { %v2386_v7 = vadd.f32 1e-06, %v2359_v55 }
 0x3a2   :  { %3110 = vrcp.f32 %v2386_v7  ;;  %v2398_v39 = vand.u32 2147483648, %v2386_v7  ;;  %v2396_v50 = vand.u32 2147483647, %v2386_v7  ;;  %vm2392_vm14 = vweird.f32 %v2386_v7 }
 0x3a4   :  { %v2399_v47 = vor.u32 1.1754944e-38, %v2398_v39  ;;  %vm2397_vm7 = vcmp.eq.f32.partialorder %v2396_v50, 8.507059e+37 }
 0x3a8   :  { %v3111_v12 = vpop.eup %3110 }
 0x3a9   :  { %v2388_v22 = vmul.f32 %v3111_v12, %v2386_v7  ;;  %vm2393_vm8 = vweird.f32 %v3111_v12 }
 0x3aa   :  { %vm2394_vm9 = vmor %vm2392_vm14, %vm2393_vm8 }
 0x3ab   :  { %v2389_v2 = vsub.f32 1.0, %v2388_v22 }
 0x3ad   :  { %v2390_v17 = vmul.f32 %v3111_v12, %v2389_v2 }
 0x3af   :  { %v2391_v1 = vadd.f32 %v3111_v12, %v2390_v17 }
 0x3b1   :  { %v2395_v19 = vsel %vm2394_vm9, %v3111_v12, %v2391_v1 }
 0x3b2   :  { %v2400_v58 = vsel %vm2397_vm7, %v2399_v47, %v2395_v19 }
 0x3b3   :  { %v2401_v46 = vmul.f32 %v2400_v58, %v2309_v43  ;;  %v2402_v10 = vmul.f32 %v2400_v58, %v2310_v23  ;;  %v2403_v9 = vmul.f32 %v2400_v58, %v2311_v16  ;;  %v2404_v20 = vmul.f32 %v2400_v58, %v2312_v60 }
 0x3b5   :  { %2424 = vxpose.xlu2.b32.start [1/4] (short) %v2401_v46, 128 }
 0x3bd   :  { %2425 = vxpose.xlu2.b32.cont [2/4] (short) %v2402_v10, 128 }
 0x3c1   :  { %v2280_v34 = vpop.f32.mrf.mxu1 }
 0x3c5   :  { %2426 = vxpose.xlu2.b32.cont [3/4] (short) %v2403_v9, 128 }
 0x3c9   :  { %v2283_v61 = vpop.f32.mrf.mxu1 }
 0x3ca   :  { %v2313_v45 = vadd.f32 %v2283_v61, %v2280_v34 }
 0x3cd   :  { %2427 = vxpose.xlu2.b32.end [4/4] (short) %v2404_v20, 128 }
 0x3d1   :  { %v2286_v6 = vpop.f32.mrf.mxu1 }
 0x3d2   :  { %v2314_v38 = vadd.f32 %v2313_v45, %v2286_v6 }
 0x3d9   :  { %v2289_v24 = vpop.f32.mrf.mxu1 }
 0x3da   :  { %v2315_v59 = vadd.f32 %v2314_v38, %v2289_v24 }
 0x3dc   :  { %v2316_v52 = vrot.slane %v2315_v59, 4 }
 0x3de   :  { %v2317_v29 = vadd.f32 %v2316_v52, %v2315_v59 }
 0x3e0   :  { %v2318_v51 = vrot.slane %v2317_v29, 2 }
 0x3e2   :  { %v2319_v18 = vadd.f32 %v2318_v51, %v2317_v29 }
 0x3e4   :  { %v2320_v57 = vrot.slane %v2319_v18, 1 }
 0x3e6   :  { %v2321_v14 = vadd.f32 %v2320_v57, %v2319_v18 }
 0x3e8   :  { %v2322_v33 = vmul.f32 %v2321_v14, %v4958_v62 }
 0x3ea   :  { %v2323_v5 = vsub.f32 %v2280_v34, %v2322_v33  ;;  %v2324_v43 = vsub.f32 %v2283_v61, %v2322_v33  ;;  %v2325_v23 = vsub.f32 %v2286_v6, %v2322_v33  ;;  %v2326_v16 = vsub.f32 %v2289_v24, %v2322_v33 }
 0x3ec   :  { %v2360_v42 = vmul.f32 %v2323_v5, %v2323_v5  ;;  %v2361_v60 = vmul.f32 %v2324_v43, %v2324_v43  ;;  %v2362_v3 = vmul.f32 %v2325_v23, %v2325_v23  ;;  %v2363_v27 = vmul.f32 %v2326_v16, %v2326_v16 }
 0x3ee   :  { %v2364_v63 = vadd.f32 %v2361_v60, %v2360_v42 }
 0x3f0   :  { %v2365_v13 = vadd.f32 %v2364_v63, %v2362_v3 }
 0x3f2   :  { %v2366_v48 = vadd.f32 %v2365_v13, %v2363_v27 }
 0x3f4   :  { %v2367_v56 = vrot.slane %v2366_v48, 4 }
 0x3f6   :  { %v2368_v49 = vadd.f32 %v2367_v56, %v2366_v48 }
 0x3f8   :  { %v2369_v41 = vrot.slane %v2368_v49, 2 }
 0x3fa   :  { %v2370_v35 = vadd.f32 %v2369_v41, %v2368_v49  ;;  %v5358_v41 = vld [vmem:[#allocation40_spill] sm:$0xff] }
 0x3fc   :  { %v2371_v26 = vrot.slane %v2370_v35, 1 }
 0x3fe   :  { %v2372_v8 = vadd.f32 %v2371_v26, %v2370_v35 }
 0x400   :  { %v2373_v0 = vmul.f32 %v2372_v8, %v4961_v53 }
 0x402   :  { %3112 = vrsqrt.f32 %v2373_v0  ;;  %vm2381_vm10 = vcmp.eq.f32.partialorder %v2373_v0, inf  ;;  %v2384_v31 = vand.u32 2147483648, %v2373_v0  ;;  %vm2383_vm11 = vcmp.eq.f32.partialorder %v2373_v0, 0.0 }
 0x408   :  { %v3113_v62 = vpop.eup %3112 }
 0x409   :  { %v2375_v4 = vmul.f32 %v3113_v62, %v2373_v0 }
 0x40b   :  { %v2376_v21 = vmul.f32 %v3113_v62, %v2375_v4 }
 0x40d   :  { %v2377_v25 = vmul.f32 0.5, %v2376_v21 }
 0x40f   :  { %v2378_v54 = vsub.f32 1.5, %v2377_v25 }
 0x411   :  { %v2379_v40 = vmul.f32 %v3113_v62, %v2378_v54  ;;  %v5359_v54 = vld [vmem:[#allocation50_spill] sm:$0xff] }
 0x413   :  { %v2380_v36 = vmul.f32 %v2379_v40, %v2373_v0 }
 0x415   :  { %v2382_v11 = vsel %vm2381_vm10, %v2373_v0, %v2380_v36 }
 0x416   :  { %v2385_v30 = vsel %vm2383_vm11, %v2384_v31, %v2382_v11 }
 0x417   :  { %v2405_v32 = vadd.f32 1e-06, %v2385_v30 }
 0x419   :  { %3114 = vrcp.f32 %v2405_v32  ;;  %v2417_v37 = vand.u32 2147483648, %v2405_v32  ;;  %v2415_v55 = vand.u32 2147483647, %v2405_v32  ;;  %vm2411_vm12 = vweird.f32 %v2405_v32 }
 0x41b   :  { %v2418_v12 = vor.u32 1.1754944e-38, %v2417_v37  ;;  %vm2416_vm0 = vcmp.eq.f32.partialorder %v2415_v55, 8.507059e+37 }
 0x41f   :  { %v3115_v15 = vpop.eup %3114 }
 0x420   :  { %v2407_v44 = vmul.f32 %v3115_v15, %v2405_v32  ;;  %vm2412_vm13 = vweird.f32 %v3115_v15 }
 0x421   :  { %vm2413_vm2 = vmor %vm2411_vm12, %vm2412_vm13 }
 0x422   :  { %v2408_v28 = vsub.f32 1.0, %v2407_v44 }
 0x424   :  { %v2409_v53 = vmul.f32 %v3115_v15, %v2408_v28  ;;  %v5360_v28 = vld [vmem:[#allocation47_spill] sm:$0xff] }
 0x426   :  { %v2410_v7 = vadd.f32 %v3115_v15, %v2409_v53 }
 0x428   :  { %v2414_v22 = vsel %vm2413_vm2, %v3115_v15, %v2410_v7 }
 0x429   :  { %v2419_v2 = vsel %vm2416_vm0, %v2418_v12, %v2414_v22 }
 0x42a   :  { %v2423_v39 = vmul.f32 %v2419_v2, %v2326_v16  ;;  %v2422_v17 = vmul.f32 %v2419_v2, %v2325_v23  ;;  %v2421_v50 = vmul.f32 %v2419_v2, %v2324_v43  ;;  %v2420_v1 = vmul.f32 %v2419_v2, %v2323_v5  ;;  %v5356_v5 = vld [vmem:[#allocation43_spill] sm:$0xff]  ;;  %v5357_v16 = vld [vmem:[#allocation41_spill] sm:$0xff] }
 0x42c   :  { %2517 = vmatpush.msrb.mxu2 %v2423_v39 }
 0x42e   :  { %2518 = vmatpush.msrb.mxu2 %v2422_v17 }
 0x430   :  { %2519 = vmatpush.msrb.mxu2 %v2421_v50 }
 0x432   :  { %2520 = vmatpush.msrb.mxu2 %v2420_v1 }
 0x44e   :  { %v2440_v47 = vpop.trf.xlu2 }
 0x44f   :  { %2827 = vmatmul.msk.f32.vlgmr.msrb.gmra.mxu2 %vm2456_vm6, %v2440_v47 }
 0x456   :  { %v2441_v19 = vpop.trf.xlu2 }
 0x457   :  { %2828 = vmatmul.msk.f32.gmra.mxu2 %vm2456_vm6, %v2441_v19 }
 0x45e   :  { %v2442_v58 = vpop.trf.xlu2 }
 0x45f   :  { %2829 = vmatmul.msk.f32.gmra.mxu2 %vm2456_vm6, %v2442_v58 }
 0x466   :  { %v2443_v46 = vpop.trf.xlu2 }
 0x467   :  { %2830 = vmatmul.msk.f32.gmra.mxu2 %vm2456_vm6, %v2443_v46 }
 0x46e   :  { %v2444_v10 = vpop.trf.xlu2 }
 0x46f   :  { %2831 = vmatmul.msk.f32.gmra.mxu2 %vm2456_vm6, %v2444_v10 }
 0x476   :  { %v2445_v34 = vpop.trf.xlu2 }
 0x477   :  { %2832 = vmatmul.msk.f32.gmra.mxu2 %vm2456_vm6, %v2445_v34 }
 0x47e   :  { %v2446_v9 = vpop.trf.xlu2 }
 0x47f   :  { %2833 = vmatmul.msk.f32.gmra.mxu2 %vm2456_vm6, %v2446_v9  ;;  %v5361_v9 = vld [vmem:[#allocation44_spill] sm:$0xff] }
 0x486   :  { %v2447_v61 = vpop.trf.xlu2 }
 0x487   :  { %2834 = vmatmul.msk.f32.gmra.mxu2 %vm2456_vm6, %v2447_v61 }
 0x48e   :  { %v2448_v20 = vpop.trf.xlu2 }
 0x48f   :  { %2835 = vmatmul.msk.f32.gmra.mxu2 %vm2456_vm6, %v2448_v20 }
 0x496   :  { %v2449_v6 = vpop.trf.xlu2 }
 0x497   :  { %2836 = vmatmul.msk.f32.gmra.mxu2 %vm2456_vm6, %v2449_v6 }
 0x49e   :  { %v2450_v45 = vpop.trf.xlu2 }
 0x49f   :  { %2837 = vmatmul.msk.f32.gmra.mxu2 %vm2456_vm6, %v2450_v45  ;;  %v5362_v45 = vld [vmem:[#allocation55_spill] sm:$0xff] }
 0x4a6   :  { %v2451_v38 = vpop.trf.xlu2 }
 0x4a7   :  { %2838 = vmatmul.msk.f32.gmra.mxu2 %vm2456_vm6, %v2451_v38 }
 0x4ae   :  { %v2452_v24 = vpop.trf.xlu2 }
 0x4af   :  { %2839 = vmatmul.msk.f32.gmra.mxu2 %vm2456_vm6, %v2452_v24 }
 0x4b6   :  { %v2453_v59 = vpop.trf.xlu2 }
 0x4b7   :  { %2840 = vmatmul.msk.f32.gmra.mxu2 %vm2456_vm6, %v2453_v59 }
 0x4be   :  { %v2454_v52 = vpop.trf.xlu2 }
 0x4bf   :  { %2841 = vmatmul.msk.f32.gmra.mxu2 %vm2456_vm6, %v2454_v52 }
 0x4c6   :  { %v2455_v29 = vpop.trf.xlu2 }
 0x4c7   :  { %2842 = vmatmul.msk.f32.gmra.mxu2 %vm2456_vm6, %v2455_v29 }
 0x4d2   :  { %v2522_v51 = vpop.f32.mrf.mxu2 }
 0x4d3   :  { %v2570_v18 = vmul.f32 0.03125, %v2522_v51 }
 0x4d5   :  { %v2586_v14 = vmul.f32 %v2570_v18, %v2570_v18  ;;  %v2626_v43 = vmul.f32 %v5356_v5, %v2570_v18  ;;  %v5363_v18 = vld [vmem:[#allocation54_spill] sm:$0xff] }
 0x4d7   :  { %v2666_v60 = vmul.f32 %v5356_v5, %v2586_v14 }
 0x4da   :  { %v2525_v57 = vpop.f32.mrf.mxu2 }
 0x4db   :  { %v2571_v33 = vmul.f32 0.03125, %v2525_v57 }
 0x4dd   :  { %v2587_v23 = vmul.f32 %v2571_v33, %v2571_v33  ;;  %v2627_v42 = vmul.f32 %v5357_v16, %v2571_v33 }
 0x4df   :  { %v2602_v3 = vadd.f32 %v2587_v23, %v2586_v14  ;;  %v2642_v63 = vadd.f32 %v2627_v42, %v2626_v43  ;;  %v2667_v27 = vmul.f32 %v5357_v16, %v2587_v23  ;;  %v5364_v23 = vld [vmem:[#allocation53_spill] sm:$0xff] }
 0x4e1   :  { %v2682_v13 = vadd.f32 %v2667_v27, %v2666_v60  ;;  %v5365_v27 = vld [vmem:[#allocation58_spill] sm:$0xff] }
 0x4e2   :  { %v2528_v48 = vpop.f32.mrf.mxu2 }
 0x4e3   :  { %v2572_v56 = vmul.f32 0.03125, %v2528_v48 }
 0x4e5   :  { %v2588_v49 = vmul.f32 %v2572_v56, %v2572_v56  ;;  %v2628_v35 = vmul.f32 %v5358_v41, %v2572_v56 }
 0x4e7   :  { %v2603_v26 = vadd.f32 %v2602_v3, %v2588_v49  ;;  %v2643_v8 = vadd.f32 %v2642_v63, %v2628_v35  ;;  %v2668_v0 = vmul.f32 %v5358_v41, %v2588_v49 }
 0x4e9   :  { %v2683_v62 = vadd.f32 %v2682_v13, %v2668_v0 }
 0x4ea   :  { %v2531_v4 = vpop.f32.mrf.mxu2 }
 0x4eb   :  { %v2573_v21 = vmul.f32 0.03125, %v2531_v4 }
 0x4ed   :  { %v2589_v25 = vmul.f32 %v2573_v21, %v2573_v21  ;;  %v2629_v40 = vmul.f32 %v5359_v54, %v2573_v21 }
 0x4ef   :  { %v2604_v36 = vadd.f32 %v2603_v26, %v2589_v25  ;;  %v2644_v31 = vadd.f32 %v2643_v8, %v2629_v40  ;;  %v2669_v11 = vmul.f32 %v5359_v54, %v2589_v25  ;;  %v5366_v26 = vld [vmem:[#allocation32_spill] sm:$0xff] }
 0x4f1   :  { %v2684_v30 = vadd.f32 %v2683_v62, %v2669_v11 }
 0x4f2   :  { %v2534_v32 = vpop.f32.mrf.mxu2 }
 0x4f3   :  { %v2574_v15 = vmul.f32 0.03125, %v2534_v32 }
 0x4f5   :  { %v2590_v44 = vmul.f32 %v2574_v15, %v2574_v15  ;;  %v2630_v37 = vmul.f32 %v5360_v28, %v2574_v15 }
 0x4f7   :  { %v2605_v53 = vadd.f32 %v2604_v36, %v2590_v44  ;;  %v2645_v55 = vadd.f32 %v2644_v31, %v2630_v37  ;;  %v2670_v7 = vmul.f32 %v5360_v28, %v2590_v44  ;;  %v5367_v36 = vld [vmem:[#allocation30_spill] sm:$0xff] }
 0x4f8   :  { %v5368_v37 = vld [vmem:[#allocation34_spill] sm:$0xff] }
 0x4f9   :  { %v2685_v12 = vadd.f32 %v2684_v30, %v2670_v7 }
 0x4fa   :  { %v2537_v22 = vpop.f32.mrf.mxu2 }
 0x4fb   :  { %v2575_v19 = vmul.f32 0.03125, %v2537_v22 }
 0x4fd   :  { %v2591_v10 = vmul.f32 %v2575_v19, %v2575_v19  ;;  %v2631_v61 = vmul.f32 %v5361_v9, %v2575_v19 }
 0x4ff   :  { %v2606_v24 = vadd.f32 %v2605_v53, %v2591_v10  ;;  %v2646_v51 = vadd.f32 %v2645_v55, %v2631_v61  ;;  %v2671_v42 = vmul.f32 %v5361_v9, %v2591_v10  ;;  %v5370_v10 = vld [vmem:[#allocation37_spill] sm:$0xff] }
 0x501   :  { %v2686_v62 = vadd.f32 %v2685_v12, %v2671_v42 }
 0x502   :  { %v2540_v2 = vpop.f32.mrf.mxu2 }
 0x503   :  { %v2576_v46 = vmul.f32 0.03125, %v2540_v2 }
 0x505   :  { %v2592_v20 = vmul.f32 %v2576_v46, %v2576_v46  ;;  %v2632_v38 = vmul.f32 %v5362_v45, %v2576_v46 }
 0x507   :  { %v2607_v14 = vadd.f32 %v2606_v24, %v2592_v20  ;;  %v2647_v43 = vadd.f32 %v2646_v51, %v2632_v38  ;;  %v2672_v56 = vmul.f32 %v5362_v45, %v2592_v20 }
 0x509   :  { %v2687_v30 = vadd.f32 %v2686_v62, %v2672_v56 }
 0x50a   :  { %v2543_v39 = vpop.f32.mrf.mxu2 }
 0x50b   :  { %v2577_v34 = vmul.f32 0.03125, %v2543_v39 }
 0x50d   :  { %v2593_v59 = vmul.f32 %v2577_v34, %v2577_v34  ;;  %v2633_v57 = vmul.f32 %v5363_v18, %v2577_v34 }
 0x50f   :  { %v2608_v60 = vadd.f32 %v2607_v14, %v2593_v59  ;;  %v2648_v63 = vadd.f32 %v2647_v43, %v2633_v57  ;;  %v2673_v4 = vmul.f32 %v5363_v18, %v2593_v59 }
 0x511   :  { %v2688_v7 = vadd.f32 %v2687_v30, %v2673_v4 }
 0x512   :  { %v2546_v17 = vpop.f32.mrf.mxu2 }
 0x513   :  { %v2578_v6 = vmul.f32 0.03125, %v2546_v17  ;;  %v5369_v17 = vld [vmem:[#allocation31_spill] sm:$0xff] }
 0x515   :  { %v2594_v33 = vmul.f32 %v2578_v6, %v2578_v6  ;;  %v2634_v16 = vmul.f32 %v5364_v23, %v2578_v6 }
 0x517   :  { %v2609_v49 = vadd.f32 %v2608_v60, %v2594_v33  ;;  %v2649_v35 = vadd.f32 %v2648_v63, %v2634_v16  ;;  %v2674_v32 = vmul.f32 %v5364_v23, %v2594_v33 }
 0x51a   :  { %v2549_v50 = vpop.f32.mrf.mxu2 }
 0x51b   :  { %v2579_v52 = vmul.f32 0.03125, %v2549_v50 }
 0x51d   :  { %v2595_v3 = vmul.f32 %v2579_v52, %v2579_v52  ;;  %v2635_v13 = vmul.f32 %v5365_v27, %v2579_v52 }
 0x51f   :  { %v2610_v21 = vadd.f32 %v2609_v49, %v2595_v3  ;;  %v2650_v54 = vadd.f32 %v2649_v35, %v2635_v13  ;;  %v2675_v12 = vmul.f32 %v5365_v27, %v2595_v3 }
 0x522   :  { %v2552_v1 = vpop.f32.mrf.mxu2 }
 0x523   :  { %v2580_v5 = vmul.f32 0.03125, %v2552_v1  ;;  %v2689_v1 = vadd.f32 %v2688_v7, %v2674_v32 }
 0x525   :  { %v2596_v41 = vmul.f32 %v2580_v5, %v2580_v5  ;;  %v2636_v8 = vmul.f32 %v5366_v26, %v2580_v5  ;;  %v2690_v9 = vadd.f32 %v2689_v1, %v2675_v12 }
 0x527   :  { %v2611_v15 = vadd.f32 %v2610_v21, %v2596_v41  ;;  %v2651_v44 = vadd.f32 %v2650_v54, %v2636_v8 }
 0x52a   :  { %v2555_v47 = vpop.f32.mrf.mxu2 }
 0x52b   :  { %v2581_v48 = vmul.f32 0.03125, %v2555_v47  ;;  %v2676_v47 = vmul.f32 %v5366_v26, %v2596_v41 }
 0x52d   :  { %v2597_v40 = vmul.f32 %v2581_v48, %v2581_v48  ;;  %v2637_v31 = vmul.f32 %v5367_v36, %v2581_v48  ;;  %v2691_v24 = vadd.f32 %v2690_v9, %v2676_v47 }
 0x52f   :  { %v2612_v22 = vadd.f32 %v2611_v15, %v2597_v40  ;;  %v2652_v2 = vadd.f32 %v2651_v44, %v2637_v31  ;;  %v2677_v20 = vmul.f32 %v5367_v36, %v2597_v40 }
 0x531   :  { %v2692_v14 = vadd.f32 %v2691_v24, %v2677_v20 }
 0x532   :  { %v2558_v58 = vpop.f32.mrf.mxu2 }
 0x533   :  { %v2582_v0 = vmul.f32 0.03125, %v2558_v58 }
 0x535   :  { %v2598_v28 = vmul.f32 %v2582_v0, %v2582_v0  ;;  %v2638_v53 = vmul.f32 %v5368_v37, %v2582_v0 }
 0x537   :  { %v2613_v19 = vadd.f32 %v2612_v22, %v2598_v28  ;;  %v2653_v58 = vadd.f32 %v2652_v2, %v2638_v53  ;;  %v2678_v59 = vmul.f32 %v5368_v37, %v2598_v28 }
 0x539   :  { %v2693_v23 = vadd.f32 %v2692_v14, %v2678_v59 }
 0x53a   :  { %v2561_v29 = vpop.f32.mrf.mxu2 }
 0x53b   :  { %v2583_v11 = vmul.f32 0.03125, %v2561_v29  ;;  %v5371_v29 = vld [vmem:[#allocation36_spill] sm:$0xff] }
 0x53d   :  { %v2599_v39 = vmul.f32 %v2583_v11, %v2583_v11  ;;  %v2639_v50 = vmul.f32 %v5369_v17, %v2583_v11 }
 0x53f   :  { %v2614_v6 = vadd.f32 %v2613_v19, %v2599_v39  ;;  %v2654_v45 = vadd.f32 %v2653_v58, %v2639_v50  ;;  %v2679_v33 = vmul.f32 %v5369_v17, %v2599_v39 }
 0x541   :  { %v2694_v60 = vadd.f32 %v2693_v23, %v2679_v33 }
 0x542   :  { %v2564_v25 = vpop.f32.mrf.mxu2 }
 0x543   :  { %v2584_v55 = vmul.f32 0.03125, %v2564_v25 }
 0x545   :  { %v2600_v46 = vmul.f32 %v2584_v55, %v2584_v55  ;;  %v2640_v34 = vmul.f32 %v5370_v10, %v2584_v55 }
 0x547   :  { %v2655_v18 = vadd.f32 %v2654_v45, %v2640_v34  ;;  %v2615_v57 = vadd.f32 %v2614_v6, %v2600_v46  ;;  %v2680_v16 = vmul.f32 %v5370_v10, %v2600_v46 }
 0x549   :  { %v2695_v3 = vadd.f32 %v2694_v60, %v2680_v16 }
 0x54a   :  { %v2567_v61 = vpop.f32.mrf.mxu2 }
 0x54b   :  { %v2585_v38 = vmul.f32 0.03125, %v2567_v61 }
 0x54d   :  { %v2601_v52 = vmul.f32 %v2585_v38, %v2585_v38  ;;  %v2641_v51 = vmul.f32 %v5371_v29, %v2585_v38 }
 0x54f   :  { %v2656_v5 = vadd.f32 %v2655_v18, %v2641_v51  ;;  %v2616_v43 = vadd.f32 %v2615_v57, %v2601_v52  ;;  %v2681_v42 = vmul.f32 %v5371_v29, %v2601_v52 }
 0x551   :  { %2657 = vadd.xlane.f32.xlu1 %v2656_v5  ;;  %2617 = vadd.xlane.f32.xlu0 %v2616_v43  ;;  %v2696_v63 = vadd.f32 %v2695_v3, %v2681_v42 }
 0x559   :  { %2697 = vadd.xlane.f32.xlu0 %v2696_v63 }
 0x5c4   :  { %v2658_v27 = vpop.xlane.xlu1 %2657  ;;  %v2618_v13 = vpop.xlane.xlu0 %2617 }
 0x5c5   :  { %v2659_v48 = vrot.slane %v2658_v27, 4  ;;  %v2619_v56 = vrot.slane %v2618_v13, 4 }
 0x5c7   :  { %v2660_v49 = vadd.f32 %v2659_v48, %v2658_v27  ;;  %v2620_v41 = vadd.f32 %v2619_v56, %v2618_v13 }
 0x5c9   :  { %v2661_v35 = vrot.slane %v2660_v49, 2  ;;  %v2621_v26 = vrot.slane %v2620_v41, 2 }
 0x5cb   :  { %v2662_v8 = vadd.f32 %v2661_v35, %v2660_v49  ;;  %v2622_v0 = vadd.f32 %v2621_v26, %v2620_v41 }
 0x5cc   :  { %v2698_v62 = vpop.xlane.xlu0 %2697 }
 0x5cd   :  { %v2699_v4 = vrot.slane %v2698_v62, 4  ;;  %v2623_v21 = vrot.slane %v2622_v0, 1  ;;  %v2663_v25 = vrot.slane %v2662_v8, 1 }
 0x5cf   :  { %v2700_v54 = vadd.f32 %v2699_v4, %v2698_v62  ;;  %v2624_v40 = vadd.f32 %v2623_v21, %v2622_v0  ;;  %v2664_v36 = vadd.f32 %v2663_v25, %v2662_v8 }
 0x5d1   :  { %v2701_v31 = vrot.slane %v2700_v54, 2  ;;  %2939 = vpush %v2624_v40 }
 0x5d2   :  { %2941 = vpush %v2664_v36 }
 0x5d3   :  { %v2702_v11 = vadd.f32 %v2701_v31, %v2700_v54 }
 0x5d5   :  { %v2703_v30 = vrot.slane %v2702_v11, 1 }
 0x5d7   :  { %v2704_v32 = vadd.f32 %v2703_v30, %v2702_v11 }
 0x5d9   :  { %2943 = vpush %v2704_v32 }
 0x602   :  { %s2940_s4 = spop %2939 }
 0x603   :  { %s2942_s11 = spop %2941 }
 0x604   :  { %s2706_s12 = smul.f32 2.0, %s2942_s11 }
 0x606   :  { %s2707_s14 = ssub.f32 128.0, %s2706_s12 }
 0x60a   :  { %s2944_s13 = spop %2943 }
 0x60b   :  { %s2709_s15 = ssub.f32 %s2940_s4, %s2944_s13 }
 0x60c   :  { %s2708_s19 = sadd.f32 %s2944_s13, %s2707_s14 }
 0x60d   :  { %s2710_s20 = smul.f32 0.0078125, %s2709_s15 }
 0x60f   :  { %s2711_s21 = sadd.f32 %s2710_s20, %s2708_s19 }
 0x611   :  { %2713 = sst [smem:[#allocation9]] %s2711_s21 }
 0x612   :  { %2722 = dma.smem_to_hbm %s3216_s22, 16, %s2720_s18, [#allocation5]  }
 0x613   :  { %3204 = dma.done.wait [#allocation5], 16  }
 0x614   :  { %3205 = vsyncadd [#allocation5], 4294967280 }
 0x615   :  { %2727 = sfence }
 0x616   :  { %2728 = vsyncpa [#allocation4], 1 }
 0x617   :  { %2729 = vsyncpa [#allocation7], 1 }
 0x618   :  { %2730 = vsyncpa [#allocation5], 1 }

</bundles_post_ra>
